<compile_context>
chip_gen: v7x
topology: tpu7x:2x2x1
jax: 0.10.0
libtpu: 0.0.40
codegen_flags: <defaults>
</compile_context>

<pallas_src>
import jax
import jax.numpy as jnp
from jax import lax
from jax.experimental import pallas as pl
from jax.experimental.pallas import tpu as pltpu

EPS = 1e-5


# ---------------------------------------------------------------------------
# Single fused kernel: whole forward pass for `bt` images per grid step.
# ---------------------------------------------------------------------------
def make_net_kernel(bt):
    f32 = jnp.float32
    bf16 = jnp.bfloat16

    def _net_kernel(x_ref,                       # (bt, 28, 28) input images (Cin = 1)
                    m1_ref, sb1_ref,             # conv1  (3,28,208)  bf16 / (2,208)
                    m2_ref, sb2_ref,             # conv2  (3,208,512) bf16 / (2,512)
                    sel_ref,                     # (2,12,24) f32 row selectors (max-pool H)
                    mt_ref,                      # (256,96) bf16 transition 1x1 conv
                    m3_ref, sb3_ref,             # conv3  (3,96,160)  bf16 / (2,160)
                    m4_ref, sb4_ref,             # conv4  (3,160,192) bf16 / (2,192)
                    a5_ref, sb5_ref,             # GAP⊗conv5 (192,32) f32 / (2,32)
                    w6_ref, sb6_ref,             # conv6 (32,16) f32 / (2,16)
                    w7_ref,                      # conv7 (16,10) f32
                    out_ref,                     # (bt, 128) lane-padded logits
                    a1_ref, a2_ref, t1_ref, a3_ref):   # VMEM scratch (reused per image)

        def relu_affine(y, sb_ref):
            # Conv -> ReLU -> BatchNorm(eval) folded to: relu(y) * scale + bias
            return jnp.maximum(y, 0.0) * sb_ref[0:1, :] + sb_ref[1:2, :]

        gap_rows = []
        for b in range(bt):
            # ---- convblock1: 3x3, 1->8 : (28,28) -> (26, 26*8) ----------------
            y1 = None
            for dy in range(3):
                part = jnp.dot(x_ref[b, dy:dy + 26, :].astype(bf16), m1_ref[dy],
                               preferred_element_type=f32)
                y1 = part if y1 is None else y1 + part
            a1_ref[...] = relu_affine(y1, sb1_ref)

            # ---- convblock2: 3x3, 8->16 : (26,208) -> (24, 512) ----------------
            # Output columns laid out as [even-W (192) | pad (64) | odd-W (192) | pad].
            y2 = None
            for dy in range(3):
                part = jnp.dot(a1_ref[dy:dy + 24, :].astype(bf16), m2_ref[dy],
                               preferred_element_type=f32)
                y2 = part if y2 is None else y2 + part
            a2_ref[...] = relu_affine(y2, sb2_ref)

            # ---- transblock1: MaxPool2d(2,2) + 1x1 conv 16->8 ------------------
            # W-direction pair-max: aligned 256-lane halves of the permuted layout.
            wmax = jnp.maximum(a2_ref[:, 0:256], a2_ref[:, 256:512])          # (24,256)
            # H-direction pair-max via 0/1 row-selection matmuls (f32, exact).
            h_even = jnp.dot(sel_ref[0], wmax, preferred_element_type=f32)    # (12,256)
            h_odd = jnp.dot(sel_ref[1], wmax, preferred_element_type=f32)
            pooled = jnp.maximum(h_even, h_odd)                               # (12,256)
            # Block-diagonal 1x1 conv also compacts the pooled layout to (12, 12*8).
            t1_ref[...] = jnp.dot(pooled.astype(bf16), mt_ref[...],
                                  preferred_element_type=f32)                 # (12,96)

            # ---- convblock3: 3x3, 8->16 : (12,96) -> (10, 160) -----------------
            y3 = None
            for dy in range(3):
                part = jnp.dot(t1_ref[dy:dy + 10, :].astype(bf16), m3_ref[dy],
                               preferred_element_type=f32)
                y3 = part if y3 is None else y3 + part
            a3_ref[...] = relu_affine(y3, sb3_ref)

            # ---- convblock4: 3x3, 16->24 : (10,160) -> (8, 192) ----------------
            y4 = None
            for dy in range(3):
                part = jnp.dot(a3_ref[dy:dy + 8, :].astype(bf16), m4_ref[dy],
                               preferred_element_type=f32)
                y4 = part if y4 is None else y4 + part
            y4 = relu_affine(y4, sb4_ref)                                     # (8,192)

            # Row-sum of the 8x8 feature map (GAP scaling folded into a5).
            gap_rows.append(jnp.sum(y4, axis=0, keepdims=True))               # (1,192)

        # ---- tail batched across the step's images ----------------------------
        rowsum = jnp.concatenate(gap_rows, axis=0)                            # (bt,192)
        h5 = relu_affine(jnp.dot(rowsum, a5_ref[...],
                                 preferred_element_type=f32), sb5_ref)        # (bt,32)
        h6 = relu_affine(jnp.dot(h5, w6_ref[...],
                                 preferred_element_type=f32), sb6_ref)        # (bt,16)
        logits = jnp.dot(h6, w7_ref[...], preferred_element_type=f32)         # (bt,10)

        m = jnp.max(logits, axis=-1, keepdims=True)
        z = logits - m
        lse = jnp.log(jnp.sum(jnp.exp(z), axis=-1, keepdims=True))
        out_ref[...] = jnp.zeros((bt, 128), f32)
        out_ref[:, 0:10] = z - lse

    return _net_kernel


# ---------------------------------------------------------------------------
# Parameter preparation (done once, outside the kernel)
# ---------------------------------------------------------------------------
def banded_conv_matrices(w_hwio, w_in):
    """Banded (Toeplitz-along-W) matrices for a valid kxk conv in (H, W*C) layout.

    Returns M with shape (k, w_in*cin, wo*cout) such that
        y[i, j*cout+co] = sum_dy (x[i+dy, :] @ M[dy])[j*cout+co]
    equals the NHWC valid convolution.
    """
    k = w_hwio.shape[0]
    cin, cout = w_hwio.shape[2], w_hwio.shape[3]
    wo = w_in - k + 1
    p_idx = jnp.arange(w_in)[:, None]
    j_idx = jnp.arange(wo)[None, :]
    d = p_idx - j_idx                              # (w_in, wo) ; tap index dx
    valid = (d >= 0) & (d < k)
    dcl = jnp.clip(d, 0, k - 1)
    gathered = w_hwio[:, dcl, :, :]                # (k, w_in, wo, cin, cout)
    gathered = jnp.where(valid[None, :, :, None, None], gathered, 0.0)
    return jnp.transpose(gathered, (0, 1, 3, 2, 4)).reshape(k, w_in * cin, wo * cout)


def prepare_operands(p):
    def bn_affine(bn):
        gamma, beta, mean, var = bn
        scale = gamma / jnp.sqrt(var + EPS)
        bias = beta - mean * scale
        return scale, bias

    def sb_tiled(bn, wo):
        s, b = bn_affine(bn)
        return jnp.stack([jnp.tile(s, wo), jnp.tile(b, wo)]).astype(jnp.float32)

    # conv1: (3, 28, 208)
    m1 = banded_conv_matrices(p["w1"], 28).astype(jnp.bfloat16)
    sb1 = sb_tiled(p["bn1"], 26)

    # conv2: permute output columns to [even-W | pad64 | odd-W | pad64] -> 512 lanes
    m2 = banded_conv_matrices(p["w2"], 26).reshape(3, 208, 24, 16)
    even = m2[:, :, 0::2, :].reshape(3, 208, 192)
    odd = m2[:, :, 1::2, :].reshape(3, 208, 192)
    zpad = jnp.zeros((3, 208, 64), jnp.float32)
    m2p = jnp.concatenate([even, zpad, odd, zpad], axis=-1).astype(jnp.bfloat16)
    s2, b2 = bn_affine(p["bn2"])
    z64 = jnp.zeros((64,), jnp.float32)
    sb2 = jnp.stack([
        jnp.concatenate([jnp.tile(s2, 12), z64, jnp.tile(s2, 12), z64]),
        jnp.concatenate([jnp.tile(b2, 12), z64, jnp.tile(b2, 12), z64]),
    ]).astype(jnp.float32)

    # max-pool H-direction row selectors (even / odd rows of the 24-row tile)
    sel = jnp.stack([
        jax.nn.one_hot(2 * jnp.arange(12), 24, dtype=jnp.float32),
        jax.nn.one_hot(2 * jnp.arange(12) + 1, 24, dtype=jnp.float32),
    ])

    # transition 1x1 conv (16->8), block-diagonal, pads 192->256 rows with zeros
    mt = jnp.concatenate([
        jnp.kron(jnp.eye(12, dtype=jnp.float32), p["wt"][0, 0]),
        jnp.zeros((64, 96), jnp.float32),
    ], axis=0).astype(jnp.bfloat16)

    m3 = banded_conv_matrices(p["w3"], 12).astype(jnp.bfloat16)
    sb3 = sb_tiled(p["bn3"], 10)
    m4 = banded_conv_matrices(p["w4"], 10).astype(jnp.bfloat16)
    sb4 = sb_tiled(p["bn4"], 8)

    # GAP (avg over 8x8) folded into the conv5 1x1 weights
    a5 = (jnp.tile(p["w5"][0, 0], (8, 1)) / 64.0).astype(jnp.float32)   # (192,32)
    sb5 = sb_tiled(p["bn5"], 1)
    w6 = p["w6"][0, 0].astype(jnp.float32)                               # (32,16)
    sb6 = sb_tiled(p["bn6"], 1)
    w7 = p["w7"][0, 0].astype(jnp.float32)                               # (16,10)

    return (m1, sb1, m2p, sb2, sel, mt, m3, sb3, m4, sb4, a5, sb5, w6, sb6, w7)


# ---------------------------------------------------------------------------
# Forward pass: one fused pallas_call, gridded (parallel) over the batch.
# ---------------------------------------------------------------------------
def net_forward(x_nchw, ops, imgs_per_step=8):
    n = x_nchw.shape[0]
    # Cin == 1, so NCHW -> NHWC is a pure relabel (reshape, no transpose).
    x = x_nchw.reshape(n, 28, 28).astype(jnp.float32)

    bt = max(1, min(imgs_per_step, n))
    n_pad = -(-n // bt) * bt
    if n_pad != n:
        x = jnp.concatenate(
            [x, jnp.zeros((n_pad - n, 28, 28), jnp.float32)], axis=0)

    in_specs = [pl.BlockSpec((bt, 28, 28), lambda b: (b, 0, 0))]
    for a in ops:
        zeros = (0,) * a.ndim
        in_specs.append(pl.BlockSpec(a.shape, lambda b, _z=zeros: _z))

    grid_spec = pltpu.PrefetchScalarGridSpec(
        num_scalar_prefetch=0,
        grid=(n_pad // bt,),
        in_specs=in_specs,
        out_specs=pl.BlockSpec((bt, 128), lambda b: (b, 0)),
        scratch_shapes=[
            pltpu.VMEM((26, 208), jnp.float32),   # conv1 output
            pltpu.VMEM((24, 512), jnp.float32),   # conv2 output (permuted/padded)
            pltpu.VMEM((12, 96), jnp.float32),    # pooled + transition output
            pltpu.VMEM((10, 160), jnp.float32),   # conv3 output
        ],
    )
    out = pl.pallas_call(
        make_net_kernel(bt),
        out_shape=jax.ShapeDtypeStruct((n_pad, 128), jnp.float32),
        grid_spec=grid_spec,
        compiler_params=pltpu.CompilerParams(dimension_semantics=("parallel",)),
    )(x, *ops)
    return out[:n, :10]


# ---------------------------------------------------------------------------
# Pure-JAX reference (same math as the PyTorch module, eval mode)
# ---------------------------------------------------------------------------
def reference_forward(x_nchw, p):
    x = jnp.transpose(x_nchw, (0, 2, 3, 1)).astype(jnp.float32)     # NHWC
    dn = ('NHWC', 'HWIO', 'NHWC')

    def conv(x, w):
        return lax.conv_general_dilated(x, w, (1, 1), 'VALID', dimension_numbers=dn)

    def block(x, w, bn):
        y = jnp.maximum(conv(x, w), 0.0)
        gamma, beta, mean, var = bn
        return (y - mean) / jnp.sqrt(var + EPS) * gamma + beta

    x = block(x, p["w1"], p["bn1"])
    x = block(x, p["w2"], p["bn2"])
    x = lax.reduce_window(x, -jnp.inf, lax.max, (1, 2, 2, 1), (1, 2, 2, 1), 'VALID')
    x = conv(x, p["wt"])
    x = block(x, p["w3"], p["bn3"])
    x = block(x, p["w4"], p["bn4"])
    x = jnp.mean(x, axis=(1, 2), keepdims=True)
    x = block(x, p["w5"], p["bn5"])
    x = block(x, p["w6"], p["bn6"])
    x = conv(x, p["w7"])
    logits = x.reshape(-1, 10)
    return jax.nn.log_softmax(logits, axis=-1)


# ---------------------------------------------------------------------------
# Parameters (deterministic synthetic init, HWIO conv weight layout)
# ---------------------------------------------------------------------------
def init_params(key):
    def conv_w(k, kh, cin, cout):
        return 0.1 * jax.random.normal(k, (kh, kh, cin, cout), jnp.float32)

    def bn(k, c):
        k1, k2, k3, k4 = jax.random.split(k, 4)
        gamma = 1.0 + 0.1 * jax.random.normal(k1, (c,), jnp.float32)
        beta = 0.1 * jax.random.normal(k2, (c,), jnp.float32)
        mean = 0.1 * jax.random.normal(k3, (c,), jnp.float32)
        var = 1.0 + 0.1 * jax.random.uniform(k4, (c,), jnp.float32)
        return gamma, beta, mean, var

    ks = jax.random.split(key, 14)
    return {
        "w1": conv_w(ks[0], 3, 1, 8),    "bn1": bn(ks[1], 8),
        "w2": conv_w(ks[2], 3, 8, 16),   "bn2": bn(ks[3], 16),
        "wt": conv_w(ks[4], 1, 16, 8),
        "w3": conv_w(ks[5], 3, 8, 16),   "bn3": bn(ks[6], 16),
        "w4": conv_w(ks[7], 3, 16, 24),  "bn4": bn(ks[8], 24),
        "w5": conv_w(ks[9], 1, 24, 32),  "bn5": bn(ks[10], 32),
        "w6": conv_w(ks[11], 1, 32, 16), "bn6": bn(ks[12], 16),
        "w7": conv_w(ks[13], 1, 16, 10),
    }


if __name__ == "__main__":
    key = jax.random.PRNGKey(0)
    k_x, k_p = jax.random.split(key)
    # MNIST-like input: the GAP(kernel=8) stage requires 28x28 spatial input.
    x = jax.random.normal(k_x, (2, 1, 28, 28), jnp.float32)       # NCHW like PyTorch
    params = init_params(k_p)
    ops = prepare_operands(params)                                # done once

    fwd = jax.jit(net_forward)
    out = jax.block_until_ready(fwd(x, ops))

    assert out.shape == (2, 10)
    assert bool(jnp.all(jnp.isfinite(out)))
    # log_softmax rows must exponentiate to probability distributions
    assert bool(jnp.allclose(jnp.sum(jnp.exp(out), axis=-1), 1.0, atol=1e-3))

    # Numerical check against a pure-JAX reference (bf16 matmul tolerance).
    ref = reference_forward(x, params)
    assert bool(jnp.max(jnp.abs(out - ref)) < 1e-1)

    print("KERNEL_OK")
</pallas_src>

<mosaic_0001>
module attributes {stable_mosaic.version = 11 : i64} {
  func.func @_net_kernel(%arg0: i32, %arg1: memref<2x28x28xf32, #tpu.memory_space<vmem>>, %arg2: memref<3x28x208xbf16, #tpu.memory_space<vmem>>, %arg3: memref<2x208xf32, #tpu.memory_space<vmem>>, %arg4: memref<3x208x512xbf16, #tpu.memory_space<vmem>>, %arg5: memref<2x512xf32, #tpu.memory_space<vmem>>, %arg6: memref<2x12x24xf32, #tpu.memory_space<vmem>>, %arg7: memref<256x96xbf16, #tpu.memory_space<vmem>>, %arg8: memref<3x96x160xbf16, #tpu.memory_space<vmem>>, %arg9: memref<2x160xf32, #tpu.memory_space<vmem>>, %arg10: memref<3x160x192xbf16, #tpu.memory_space<vmem>>, %arg11: memref<2x192xf32, #tpu.memory_space<vmem>>, %arg12: memref<192x32xf32, #tpu.memory_space<vmem>>, %arg13: memref<2x32xf32, #tpu.memory_space<vmem>>, %arg14: memref<32x16xf32, #tpu.memory_space<vmem>>, %arg15: memref<2x16xf32, #tpu.memory_space<vmem>>, %arg16: memref<16x10xf32, #tpu.memory_space<vmem>>, %arg17: memref<2x128xf32, #tpu.memory_space<vmem>>, %arg18: memref<26x208xf32, #tpu.memory_space<vmem>>, %arg19: memref<24x512xf32, #tpu.memory_space<vmem>>, %arg20: memref<12x96xf32, #tpu.memory_space<vmem>>, %arg21: memref<10x160xf32, #tpu.memory_space<vmem>>) attributes {dimension_semantics = [#tpu.dimension_semantics<parallel>], iteration_bounds = array<i64: 1>, scalar_prefetch = 0 : i64, scratch_operands = 4 : i64, tpu.core_type = #tpu.core_type<tc>, window_params = [{transform_indices = @transform_0, window_bounds = array<i64: 2, 28, 28>}, {pipeline_mode = #tpu.pipeline_mode<synchronous>, transform_indices = @transform_1, window_bounds = array<i64: 3, 28, 208>}, {pipeline_mode = #tpu.pipeline_mode<synchronous>, transform_indices = @transform_2, window_bounds = array<i64: 2, 208>}, {pipeline_mode = #tpu.pipeline_mode<synchronous>, transform_indices = @transform_3, window_bounds = array<i64: 3, 208, 512>}, {pipeline_mode = #tpu.pipeline_mode<synchronous>, transform_indices = @transform_4, window_bounds = array<i64: 2, 512>}, {pipeline_mode = #tpu.pipeline_mode<synchronous>, transform_indices = @transform_5, window_bounds = array<i64: 2, 12, 24>}, {pipeline_mode = #tpu.pipeline_mode<synchronous>, transform_indices = @transform_6, window_bounds = array<i64: 256, 96>}, {pipeline_mode = #tpu.pipeline_mode<synchronous>, transform_indices = @transform_7, window_bounds = array<i64: 3, 96, 160>}, {pipeline_mode = #tpu.pipeline_mode<synchronous>, transform_indices = @transform_8, window_bounds = array<i64: 2, 160>}, {pipeline_mode = #tpu.pipeline_mode<synchronous>, transform_indices = @transform_9, window_bounds = array<i64: 3, 160, 192>}, {pipeline_mode = #tpu.pipeline_mode<synchronous>, transform_indices = @transform_10, window_bounds = array<i64: 2, 192>}, {pipeline_mode = #tpu.pipeline_mode<synchronous>, transform_indices = @transform_11, window_bounds = array<i64: 192, 32>}, {pipeline_mode = #tpu.pipeline_mode<synchronous>, transform_indices = @transform_12, window_bounds = array<i64: 2, 32>}, {pipeline_mode = #tpu.pipeline_mode<synchronous>, transform_indices = @transform_13, window_bounds = array<i64: 32, 16>}, {pipeline_mode = #tpu.pipeline_mode<synchronous>, transform_indices = @transform_14, window_bounds = array<i64: 2, 16>}, {pipeline_mode = #tpu.pipeline_mode<synchronous>, transform_indices = @transform_15, window_bounds = array<i64: 16, 10>}, {transform_indices = @transform_16, window_bounds = array<i64: 2, 128>}]} {
    %c0 = arith.constant 0 : index
    %c0_0 = arith.constant 0 : index
    %c0_1 = arith.constant 0 : index
    %0 = vector.load %arg1[%c0, %c0_0, %c0_1] : memref<2x28x28xf32, #tpu.memory_space<vmem>>, vector<1x26x28xf32>
    %1 = vector.shape_cast %0 : vector<1x26x28xf32> to vector<26x28xf32>
    %2 = arith.truncf %1 : vector<26x28xf32> to vector<26x28xbf16>
    %c0_2 = arith.constant 0 : index
    %c0_3 = arith.constant 0 : index
    %c0_4 = arith.constant 0 : index
    %3 = vector.load %arg2[%c0_2, %c0_3, %c0_4] : memref<3x28x208xbf16, #tpu.memory_space<vmem>>, vector<1x28x208xbf16>
    %4 = vector.shape_cast %3 : vector<1x28x208xbf16> to vector<28x208xbf16>
    %cst = arith.constant dense<0.000000e+00> : vector<26x208xf32>
    %5 = tpu.matmul %2, %4, %cst {dimension_numbers = #tpu.dot_dimension_numbers<[1], [0], [0], [1], [0, 0, 1, 1], [], []>} : vector<26x28xbf16>, vector<28x208xbf16>, vector<26x208xf32> -> vector<26x208xf32>
    %c0_5 = arith.constant 0 : index
    %c1 = arith.constant 1 : index
    %c0_6 = arith.constant 0 : index
    %6 = vector.load %arg1[%c0_5, %c1, %c0_6] : memref<2x28x28xf32, #tpu.memory_space<vmem>>, vector<1x26x28xf32>
    %7 = vector.shape_cast %6 : vector<1x26x28xf32> to vector<26x28xf32>
    %8 = arith.truncf %7 : vector<26x28xf32> to vector<26x28xbf16>
    %c1_7 = arith.constant 1 : index
    %c0_8 = arith.constant 0 : index
    %c0_9 = arith.constant 0 : index
    %9 = vector.load %arg2[%c1_7, %c0_8, %c0_9] : memref<3x28x208xbf16, #tpu.memory_space<vmem>>, vector<1x28x208xbf16>
    %10 = vector.shape_cast %9 : vector<1x28x208xbf16> to vector<28x208xbf16>
    %cst_10 = arith.constant dense<0.000000e+00> : vector<26x208xf32>
    %11 = tpu.matmul %8, %10, %cst_10 {dimension_numbers = #tpu.dot_dimension_numbers<[1], [0], [0], [1], [0, 0, 1, 1], [], []>} : vector<26x28xbf16>, vector<28x208xbf16>, vector<26x208xf32> -> vector<26x208xf32>
    %12 = arith.addf %5, %11 : vector<26x208xf32>
    %c0_11 = arith.constant 0 : index
    %c2 = arith.constant 2 : index
    %c0_12 = arith.constant 0 : index
    %13 = vector.load %arg1[%c0_11, %c2, %c0_12] : memref<2x28x28xf32, #tpu.memory_space<vmem>>, vector<1x26x28xf32>
    %14 = vector.shape_cast %13 : vector<1x26x28xf32> to vector<26x28xf32>
    %15 = arith.truncf %14 : vector<26x28xf32> to vector<26x28xbf16>
    %c2_13 = arith.constant 2 : index
    %c0_14 = arith.constant 0 : index
    %c0_15 = arith.constant 0 : index
    %16 = vector.load %arg2[%c2_13, %c0_14, %c0_15] : memref<3x28x208xbf16, #tpu.memory_space<vmem>>, vector<1x28x208xbf16>
    %17 = vector.shape_cast %16 : vector<1x28x208xbf16> to vector<28x208xbf16>
    %cst_16 = arith.constant dense<0.000000e+00> : vector<26x208xf32>
    %18 = tpu.matmul %15, %17, %cst_16 {dimension_numbers = #tpu.dot_dimension_numbers<[1], [0], [0], [1], [0, 0, 1, 1], [], []>} : vector<26x28xbf16>, vector<28x208xbf16>, vector<26x208xf32> -> vector<26x208xf32>
    %19 = arith.addf %12, %18 : vector<26x208xf32>
    %cst_17 = arith.constant 0.000000e+00 : f32
    %20 = vector.broadcast %cst_17 : f32 to vector<26x208xf32>
    %21 = arith.maximumf %19, %20 : vector<26x208xf32>
    %c0_18 = arith.constant 0 : index
    %c0_19 = arith.constant 0 : index
    %22 = vector.load %arg3[%c0_18, %c0_19] : memref<2x208xf32, #tpu.memory_space<vmem>>, vector<1x208xf32>
    %23 = vector.broadcast %22 : vector<1x208xf32> to vector<26x208xf32>
    %24 = arith.mulf %21, %23 : vector<26x208xf32>
    %c1_20 = arith.constant 1 : index
    %c0_21 = arith.constant 0 : index
    %25 = vector.load %arg3[%c1_20, %c0_21] : memref<2x208xf32, #tpu.memory_space<vmem>>, vector<1x208xf32>
    %26 = vector.broadcast %25 : vector<1x208xf32> to vector<26x208xf32>
    %27 = arith.addf %24, %26 : vector<26x208xf32>
    %c0_22 = arith.constant 0 : index
    %c0_23 = arith.constant 0 : index
    %28 = vector.load %arg18[%c0_22, %c0_23] : memref<26x208xf32, #tpu.memory_space<vmem>>, vector<26x208xf32>
    tpu.vector_store %arg18[%c0_22, %c0_23], %27 {strides = array<i32>} : memref<26x208xf32, #tpu.memory_space<vmem>>, vector<26x208xf32>,
    %c0_24 = arith.constant 0 : index
    %c0_25 = arith.constant 0 : index
    %29 = vector.load %arg18[%c0_24, %c0_25] : memref<26x208xf32, #tpu.memory_space<vmem>>, vector<24x208xf32>
    %30 = arith.truncf %29 : vector<24x208xf32> to vector<24x208xbf16>
    %c0_26 = arith.constant 0 : index
    %c0_27 = arith.constant 0 : index
    %c0_28 = arith.constant 0 : index
    %31 = vector.load %arg4[%c0_26, %c0_27, %c0_28] : memref<3x208x512xbf16, #tpu.memory_space<vmem>>, vector<1x208x512xbf16>
    %32 = vector.shape_cast %31 : vector<1x208x512xbf16> to vector<208x512xbf16>
    %cst_29 = arith.constant dense<0.000000e+00> : vector<24x512xf32>
    %33 = tpu.matmul %30, %32, %cst_29 {dimension_numbers = #tpu.dot_dimension_numbers<[1], [0], [0], [1], [0, 0, 1, 1], [], []>} : vector<24x208xbf16>, vector<208x512xbf16>, vector<24x512xf32> -> vector<24x512xf32>
    %c1_30 = arith.constant 1 : index
    %c0_31 = arith.constant 0 : index
    %34 = vector.load %arg18[%c1_30, %c0_31] : memref<26x208xf32, #tpu.memory_space<vmem>>, vector<24x208xf32>
    %35 = arith.truncf %34 : vector<24x208xf32> to vector<24x208xbf16>
    %c1_32 = arith.constant 1 : index
    %c0_33 = arith.constant 0 : index
    %c0_34 = arith.constant 0 : index
    %36 = vector.load %arg4[%c1_32, %c0_33, %c0_34] : memref<3x208x512xbf16, #tpu.memory_space<vmem>>, vector<1x208x512xbf16>
    %37 = vector.shape_cast %36 : vector<1x208x512xbf16> to vector<208x512xbf16>
    %cst_35 = arith.constant dense<0.000000e+00> : vector<24x512xf32>
    %38 = tpu.matmul %35, %37, %cst_35 {dimension_numbers = #tpu.dot_dimension_numbers<[1], [0], [0], [1], [0, 0, 1, 1], [], []>} : vector<24x208xbf16>, vector<208x512xbf16>, vector<24x512xf32> -> vector<24x512xf32>
    %39 = arith.addf %33, %38 : vector<24x512xf32>
    %c2_36 = arith.constant 2 : index
    %c0_37 = arith.constant 0 : index
    %40 = vector.load %arg18[%c2_36, %c0_37] : memref<26x208xf32, #tpu.memory_space<vmem>>, vector<24x208xf32>
    %41 = arith.truncf %40 : vector<24x208xf32> to vector<24x208xbf16>
    %c2_38 = arith.constant 2 : index
    %c0_39 = arith.constant 0 : index
    %c0_40 = arith.constant 0 : index
    %42 = vector.load %arg4[%c2_38, %c0_39, %c0_40] : memref<3x208x512xbf16, #tpu.memory_space<vmem>>, vector<1x208x512xbf16>
    %43 = vector.shape_cast %42 : vector<1x208x512xbf16> to vector<208x512xbf16>
    %cst_41 = arith.constant dense<0.000000e+00> : vector<24x512xf32>
    %44 = tpu.matmul %41, %43, %cst_41 {dimension_numbers = #tpu.dot_dimension_numbers<[1], [0], [0], [1], [0, 0, 1, 1], [], []>} : vector<24x208xbf16>, vector<208x512xbf16>, vector<24x512xf32> -> vector<24x512xf32>
    %45 = arith.addf %39, %44 : vector<24x512xf32>
    %cst_42 = arith.constant 0.000000e+00 : f32
    %46 = vector.broadcast %cst_42 : f32 to vector<24x512xf32>
    %47 = arith.maximumf %45, %46 : vector<24x512xf32>
    %c0_43 = arith.constant 0 : index
    %c0_44 = arith.constant 0 : index
    %48 = vector.load %arg5[%c0_43, %c0_44] : memref<2x512xf32, #tpu.memory_space<vmem>>, vector<1x512xf32>
    %49 = vector.broadcast %48 : vector<1x512xf32> to vector<24x512xf32>
    %50 = arith.mulf %47, %49 : vector<24x512xf32>
    %c1_45 = arith.constant 1 : index
    %c0_46 = arith.constant 0 : index
    %51 = vector.load %arg5[%c1_45, %c0_46] : memref<2x512xf32, #tpu.memory_space<vmem>>, vector<1x512xf32>
    %52 = vector.broadcast %51 : vector<1x512xf32> to vector<24x512xf32>
    %53 = arith.addf %50, %52 : vector<24x512xf32>
    %c0_47 = arith.constant 0 : index
    %c0_48 = arith.constant 0 : index
    %54 = vector.load %arg19[%c0_47, %c0_48] : memref<24x512xf32, #tpu.memory_space<vmem>>, vector<24x512xf32>
    tpu.vector_store %arg19[%c0_47, %c0_48], %53 {strides = array<i32>} : memref<24x512xf32, #tpu.memory_space<vmem>>, vector<24x512xf32>,
    %c0_49 = arith.constant 0 : index
    %c0_50 = arith.constant 0 : index
    %55 = vector.load %arg19[%c0_49, %c0_50] : memref<24x512xf32, #tpu.memory_space<vmem>>, vector<24x256xf32>
    %c0_51 = arith.constant 0 : index
    %c256 = arith.constant 256 : index
    %56 = vector.load %arg19[%c0_51, %c256] : memref<24x512xf32, #tpu.memory_space<vmem>>, vector<24x256xf32>
    %57 = arith.maximumf %55, %56 : vector<24x256xf32>
    %c0_52 = arith.constant 0 : index
    %c0_53 = arith.constant 0 : index
    %c0_54 = arith.constant 0 : index
    %58 = vector.load %arg6[%c0_52, %c0_53, %c0_54] : memref<2x12x24xf32, #tpu.memory_space<vmem>>, vector<1x12x24xf32>
    %59 = vector.shape_cast %58 : vector<1x12x24xf32> to vector<12x24xf32>
    %cst_55 = arith.constant dense<0.000000e+00> : vector<12x256xf32>
    %60 = tpu.matmul %59, %57, %cst_55 {dimension_numbers = #tpu.dot_dimension_numbers<[1], [0], [0], [1], [0, 0, 1, 1], [], []>} : vector<12x24xf32>, vector<24x256xf32>, vector<12x256xf32> -> vector<12x256xf32>
    %c1_56 = arith.constant 1 : index
    %c0_57 = arith.constant 0 : index
    %c0_58 = arith.constant 0 : index
    %61 = vector.load %arg6[%c1_56, %c0_57, %c0_58] : memref<2x12x24xf32, #tpu.memory_space<vmem>>, vector<1x12x24xf32>
    %62 = vector.shape_cast %61 : vector<1x12x24xf32> to vector<12x24xf32>
    %cst_59 = arith.constant dense<0.000000e+00> : vector<12x256xf32>
    %63 = tpu.matmul %62, %57, %cst_59 {dimension_numbers = #tpu.dot_dimension_numbers<[1], [0], [0], [1], [0, 0, 1, 1], [], []>} : vector<12x24xf32>, vector<24x256xf32>, vector<12x256xf32> -> vector<12x256xf32>
    %64 = arith.maximumf %60, %63 : vector<12x256xf32>
    %65 = arith.truncf %64 : vector<12x256xf32> to vector<12x256xbf16>
    %c0_60 = arith.constant 0 : index
    %c0_61 = arith.constant 0 : index
    %66 = vector.load %arg7[%c0_60, %c0_61] : memref<256x96xbf16, #tpu.memory_space<vmem>>, vector<256x96xbf16>
    %cst_62 = arith.constant dense<0.000000e+00> : vector<12x96xf32>
    %67 = tpu.matmul %65, %66, %cst_62 {dimension_numbers = #tpu.dot_dimension_numbers<[1], [0], [0], [1], [0, 0, 1, 1], [], []>} : vector<12x256xbf16>, vector<256x96xbf16>, vector<12x96xf32> -> vector<12x96xf32>
    %c0_63 = arith.constant 0 : index
    %c0_64 = arith.constant 0 : index
    %68 = vector.load %arg20[%c0_63, %c0_64] : memref<12x96xf32, #tpu.memory_space<vmem>>, vector<12x96xf32>
    tpu.vector_store %arg20[%c0_63, %c0_64], %67 {strides = array<i32>} : memref<12x96xf32, #tpu.memory_space<vmem>>, vector<12x96xf32>,
    %c0_65 = arith.constant 0 : index
    %c0_66 = arith.constant 0 : index
    %69 = vector.load %arg20[%c0_65, %c0_66] : memref<12x96xf32, #tpu.memory_space<vmem>>, vector<10x96xf32>
    %70 = arith.truncf %69 : vector<10x96xf32> to vector<10x96xbf16>
    %c0_67 = arith.constant 0 : index
    %c0_68 = arith.constant 0 : index
    %c0_69 = arith.constant 0 : index
    %71 = vector.load %arg8[%c0_67, %c0_68, %c0_69] : memref<3x96x160xbf16, #tpu.memory_space<vmem>>, vector<1x96x160xbf16>
    %72 = vector.shape_cast %71 : vector<1x96x160xbf16> to vector<96x160xbf16>
    %cst_70 = arith.constant dense<0.000000e+00> : vector<10x160xf32>
    %73 = tpu.matmul %70, %72, %cst_70 {dimension_numbers = #tpu.dot_dimension_numbers<[1], [0], [0], [1], [0, 0, 1, 1], [], []>} : vector<10x96xbf16>, vector<96x160xbf16>, vector<10x160xf32> -> vector<10x160xf32>
    %c1_71 = arith.constant 1 : index
    %c0_72 = arith.constant 0 : index
    %74 = vector.load %arg20[%c1_71, %c0_72] : memref<12x96xf32, #tpu.memory_space<vmem>>, vector<10x96xf32>
    %75 = arith.truncf %74 : vector<10x96xf32> to vector<10x96xbf16>
    %c1_73 = arith.constant 1 : index
    %c0_74 = arith.constant 0 : index
    %c0_75 = arith.constant 0 : index
    %76 = vector.load %arg8[%c1_73, %c0_74, %c0_75] : memref<3x96x160xbf16, #tpu.memory_space<vmem>>, vector<1x96x160xbf16>
    %77 = vector.shape_cast %76 : vector<1x96x160xbf16> to vector<96x160xbf16>
    %cst_76 = arith.constant dense<0.000000e+00> : vector<10x160xf32>
    %78 = tpu.matmul %75, %77, %cst_76 {dimension_numbers = #tpu.dot_dimension_numbers<[1], [0], [0], [1], [0, 0, 1, 1], [], []>} : vector<10x96xbf16>, vector<96x160xbf16>, vector<10x160xf32> -> vector<10x160xf32>
    %79 = arith.addf %73, %78 : vector<10x160xf32>
    %c2_77 = arith.constant 2 : index
    %c0_78 = arith.constant 0 : index
    %80 = vector.load %arg20[%c2_77, %c0_78] : memref<12x96xf32, #tpu.memory_space<vmem>>, vector<10x96xf32>
    %81 = arith.truncf %80 : vector<10x96xf32> to vector<10x96xbf16>
    %c2_79 = arith.constant 2 : index
    %c0_80 = arith.constant 0 : index
    %c0_81 = arith.constant 0 : index
    %82 = vector.load %arg8[%c2_79, %c0_80, %c0_81] : memref<3x96x160xbf16, #tpu.memory_space<vmem>>, vector<1x96x160xbf16>
    %83 = vector.shape_cast %82 : vector<1x96x160xbf16> to vector<96x160xbf16>
    %cst_82 = arith.constant dense<0.000000e+00> : vector<10x160xf32>
    %84 = tpu.matmul %81, %83, %cst_82 {dimension_numbers = #tpu.dot_dimension_numbers<[1], [0], [0], [1], [0, 0, 1, 1], [], []>} : vector<10x96xbf16>, vector<96x160xbf16>, vector<10x160xf32> -> vector<10x160xf32>
    %85 = arith.addf %79, %84 : vector<10x160xf32>
    %cst_83 = arith.constant 0.000000e+00 : f32
    %86 = vector.broadcast %cst_83 : f32 to vector<10x160xf32>
    %87 = arith.maximumf %85, %86 : vector<10x160xf32>
    %c0_84 = arith.constant 0 : index
    %c0_85 = arith.constant 0 : index
    %88 = vector.load %arg9[%c0_84, %c0_85] : memref<2x160xf32, #tpu.memory_space<vmem>>, vector<1x160xf32>
    %89 = vector.broadcast %88 : vector<1x160xf32> to vector<10x160xf32>
    %90 = arith.mulf %87, %89 : vector<10x160xf32>
    %c1_86 = arith.constant 1 : index
    %c0_87 = arith.constant 0 : index
    %91 = vector.load %arg9[%c1_86, %c0_87] : memref<2x160xf32, #tpu.memory_space<vmem>>, vector<1x160xf32>
    %92 = vector.broadcast %91 : vector<1x160xf32> to vector<10x160xf32>
    %93 = arith.addf %90, %92 : vector<10x160xf32>
    %c0_88 = arith.constant 0 : index
    %c0_89 = arith.constant 0 : index
    %94 = vector.load %arg21[%c0_88, %c0_89] : memref<10x160xf32, #tpu.memory_space<vmem>>, vector<10x160xf32>
    tpu.vector_store %arg21[%c0_88, %c0_89], %93 {strides = array<i32>} : memref<10x160xf32, #tpu.memory_space<vmem>>, vector<10x160xf32>,
    %c0_90 = arith.constant 0 : index
    %c0_91 = arith.constant 0 : index
    %95 = vector.load %arg21[%c0_90, %c0_91] : memref<10x160xf32, #tpu.memory_space<vmem>>, vector<8x160xf32>
    %96 = arith.truncf %95 : vector<8x160xf32> to vector<8x160xbf16>
    %c0_92 = arith.constant 0 : index
    %c0_93 = arith.constant 0 : index
    %c0_94 = arith.constant 0 : index
    %97 = vector.load %arg10[%c0_92, %c0_93, %c0_94] : memref<3x160x192xbf16, #tpu.memory_space<vmem>>, vector<1x160x192xbf16>
    %98 = vector.shape_cast %97 : vector<1x160x192xbf16> to vector<160x192xbf16>
    %cst_95 = arith.constant dense<0.000000e+00> : vector<8x192xf32>
    %99 = tpu.matmul %96, %98, %cst_95 {dimension_numbers = #tpu.dot_dimension_numbers<[1], [0], [0], [1], [0, 0, 1, 1], [], []>} : vector<8x160xbf16>, vector<160x192xbf16>, vector<8x192xf32> -> vector<8x192xf32>
    %c1_96 = arith.constant 1 : index
    %c0_97 = arith.constant 0 : index
    %100 = vector.load %arg21[%c1_96, %c0_97] : memref<10x160xf32, #tpu.memory_space<vmem>>, vector<8x160xf32>
    %101 = arith.truncf %100 : vector<8x160xf32> to vector<8x160xbf16>
    %c1_98 = arith.constant 1 : index
    %c0_99 = arith.constant 0 : index
    %c0_100 = arith.constant 0 : index
    %102 = vector.load %arg10[%c1_98, %c0_99, %c0_100] : memref<3x160x192xbf16, #tpu.memory_space<vmem>>, vector<1x160x192xbf16>
    %103 = vector.shape_cast %102 : vector<1x160x192xbf16> to vector<160x192xbf16>
    %cst_101 = arith.constant dense<0.000000e+00> : vector<8x192xf32>
    %104 = tpu.matmul %101, %103, %cst_101 {dimension_numbers = #tpu.dot_dimension_numbers<[1], [0], [0], [1], [0, 0, 1, 1], [], []>} : vector<8x160xbf16>, vector<160x192xbf16>, vector<8x192xf32> -> vector<8x192xf32>
    %105 = arith.addf %99, %104 : vector<8x192xf32>
    %c2_102 = arith.constant 2 : index
    %c0_103 = arith.constant 0 : index
    %106 = vector.load %arg21[%c2_102, %c0_103] : memref<10x160xf32, #tpu.memory_space<vmem>>, vector<8x160xf32>
    %107 = arith.truncf %106 : vector<8x160xf32> to vector<8x160xbf16>
    %c2_104 = arith.constant 2 : index
    %c0_105 = arith.constant 0 : index
    %c0_106 = arith.constant 0 : index
    %108 = vector.load %arg10[%c2_104, %c0_105, %c0_106] : memref<3x160x192xbf16, #tpu.memory_space<vmem>>, vector<1x160x192xbf16>
    %109 = vector.shape_cast %108 : vector<1x160x192xbf16> to vector<160x192xbf16>
    %cst_107 = arith.constant dense<0.000000e+00> : vector<8x192xf32>
    %110 = tpu.matmul %107, %109, %cst_107 {dimension_numbers = #tpu.dot_dimension_numbers<[1], [0], [0], [1], [0, 0, 1, 1], [], []>} : vector<8x160xbf16>, vector<160x192xbf16>, vector<8x192xf32> -> vector<8x192xf32>
    %111 = arith.addf %105, %110 : vector<8x192xf32>
    %cst_108 = arith.constant 0.000000e+00 : f32
    %112 = vector.broadcast %cst_108 : f32 to vector<8x192xf32>
    %113 = arith.maximumf %111, %112 : vector<8x192xf32>
    %c0_109 = arith.constant 0 : index
    %c0_110 = arith.constant 0 : index
    %114 = vector.load %arg11[%c0_109, %c0_110] : memref<2x192xf32, #tpu.memory_space<vmem>>, vector<1x192xf32>
    %115 = vector.broadcast %114 : vector<1x192xf32> to vector<8x192xf32>
    %116 = arith.mulf %113, %115 : vector<8x192xf32>
    %c1_111 = arith.constant 1 : index
    %c0_112 = arith.constant 0 : index
    %117 = vector.load %arg11[%c1_111, %c0_112] : memref<2x192xf32, #tpu.memory_space<vmem>>, vector<1x192xf32>
    %118 = vector.broadcast %117 : vector<1x192xf32> to vector<8x192xf32>
    %119 = arith.addf %116, %118 : vector<8x192xf32>
    %cst_113 = arith.constant dense<0.000000e+00> : vector<192xf32>
    %120 = vector.multi_reduction <add>, %119, %cst_113 [0] : vector<8x192xf32> to vector<192xf32>
    %121 = vector.shape_cast %120 : vector<192xf32> to vector<1x192xf32>
    %c1_114 = arith.constant 1 : index
    %c0_115 = arith.constant 0 : index
    %c0_116 = arith.constant 0 : index
    %122 = vector.load %arg1[%c1_114, %c0_115, %c0_116] : memref<2x28x28xf32, #tpu.memory_space<vmem>>, vector<1x26x28xf32>
    %123 = vector.shape_cast %122 : vector<1x26x28xf32> to vector<26x28xf32>
    %124 = arith.truncf %123 : vector<26x28xf32> to vector<26x28xbf16>
    %c0_117 = arith.constant 0 : index
    %c0_118 = arith.constant 0 : index
    %c0_119 = arith.constant 0 : index
    %125 = vector.load %arg2[%c0_117, %c0_118, %c0_119] : memref<3x28x208xbf16, #tpu.memory_space<vmem>>, vector<1x28x208xbf16>
    %126 = vector.shape_cast %125 : vector<1x28x208xbf16> to vector<28x208xbf16>
    %cst_120 = arith.constant dense<0.000000e+00> : vector<26x208xf32>
    %127 = tpu.matmul %124, %126, %cst_120 {dimension_numbers = #tpu.dot_dimension_numbers<[1], [0], [0], [1], [0, 0, 1, 1], [], []>} : vector<26x28xbf16>, vector<28x208xbf16>, vector<26x208xf32> -> vector<26x208xf32>
    %c1_121 = arith.constant 1 : index
    %c1_122 = arith.constant 1 : index
    %c0_123 = arith.constant 0 : index
    %128 = vector.load %arg1[%c1_121, %c1_122, %c0_123] : memref<2x28x28xf32, #tpu.memory_space<vmem>>, vector<1x26x28xf32>
    %129 = vector.shape_cast %128 : vector<1x26x28xf32> to vector<26x28xf32>
    %130 = arith.truncf %129 : vector<26x28xf32> to vector<26x28xbf16>
    %c1_124 = arith.constant 1 : index
    %c0_125 = arith.constant 0 : index
    %c0_126 = arith.constant 0 : index
    %131 = vector.load %arg2[%c1_124, %c0_125, %c0_126] : memref<3x28x208xbf16, #tpu.memory_space<vmem>>, vector<1x28x208xbf16>
    %132 = vector.shape_cast %131 : vector<1x28x208xbf16> to vector<28x208xbf16>
    %cst_127 = arith.constant dense<0.000000e+00> : vector<26x208xf32>
    %133 = tpu.matmul %130, %132, %cst_127 {dimension_numbers = #tpu.dot_dimension_numbers<[1], [0], [0], [1], [0, 0, 1, 1], [], []>} : vector<26x28xbf16>, vector<28x208xbf16>, vector<26x208xf32> -> vector<26x208xf32>
    %134 = arith.addf %127, %133 : vector<26x208xf32>
    %c1_128 = arith.constant 1 : index
    %c2_129 = arith.constant 2 : index
    %c0_130 = arith.constant 0 : index
    %135 = vector.load %arg1[%c1_128, %c2_129, %c0_130] : memref<2x28x28xf32, #tpu.memory_space<vmem>>, vector<1x26x28xf32>
    %136 = vector.shape_cast %135 : vector<1x26x28xf32> to vector<26x28xf32>
    %137 = arith.truncf %136 : vector<26x28xf32> to vector<26x28xbf16>
    %c2_131 = arith.constant 2 : index
    %c0_132 = arith.constant 0 : index
    %c0_133 = arith.constant 0 : index
    %138 = vector.load %arg2[%c2_131, %c0_132, %c0_133] : memref<3x28x208xbf16, #tpu.memory_space<vmem>>, vector<1x28x208xbf16>
    %139 = vector.shape_cast %138 : vector<1x28x208xbf16> to vector<28x208xbf16>
    %cst_134 = arith.constant dense<0.000000e+00> : vector<26x208xf32>
    %140 = tpu.matmul %137, %139, %cst_134 {dimension_numbers = #tpu.dot_dimension_numbers<[1], [0], [0], [1], [0, 0, 1, 1], [], []>} : vector<26x28xbf16>, vector<28x208xbf16>, vector<26x208xf32> -> vector<26x208xf32>
    %141 = arith.addf %134, %140 : vector<26x208xf32>
    %cst_135 = arith.constant 0.000000e+00 : f32
    %142 = vector.broadcast %cst_135 : f32 to vector<26x208xf32>
    %143 = arith.maximumf %141, %142 : vector<26x208xf32>
    %c0_136 = arith.constant 0 : index
    %c0_137 = arith.constant 0 : index
    %144 = vector.load %arg3[%c0_136, %c0_137] : memref<2x208xf32, #tpu.memory_space<vmem>>, vector<1x208xf32>
    %145 = vector.broadcast %144 : vector<1x208xf32> to vector<26x208xf32>
    %146 = arith.mulf %143, %145 : vector<26x208xf32>
    %c1_138 = arith.constant 1 : index
    %c0_139 = arith.constant 0 : index
    %147 = vector.load %arg3[%c1_138, %c0_139] : memref<2x208xf32, #tpu.memory_space<vmem>>, vector<1x208xf32>
    %148 = vector.broadcast %147 : vector<1x208xf32> to vector<26x208xf32>
    %149 = arith.addf %146, %148 : vector<26x208xf32>
    %c0_140 = arith.constant 0 : index
    %c0_141 = arith.constant 0 : index
    %150 = vector.load %arg18[%c0_140, %c0_141] : memref<26x208xf32, #tpu.memory_space<vmem>>, vector<26x208xf32>
    tpu.vector_store %arg18[%c0_140, %c0_141], %149 {strides = array<i32>} : memref<26x208xf32, #tpu.memory_space<vmem>>, vector<26x208xf32>,
    %c0_142 = arith.constant 0 : index
    %c0_143 = arith.constant 0 : index
    %151 = vector.load %arg18[%c0_142, %c0_143] : memref<26x208xf32, #tpu.memory_space<vmem>>, vector<24x208xf32>
    %152 = arith.truncf %151 : vector<24x208xf32> to vector<24x208xbf16>
    %c0_144 = arith.constant 0 : index
    %c0_145 = arith.constant 0 : index
    %c0_146 = arith.constant 0 : index
    %153 = vector.load %arg4[%c0_144, %c0_145, %c0_146] : memref<3x208x512xbf16, #tpu.memory_space<vmem>>, vector<1x208x512xbf16>
    %154 = vector.shape_cast %153 : vector<1x208x512xbf16> to vector<208x512xbf16>
    %cst_147 = arith.constant dense<0.000000e+00> : vector<24x512xf32>
    %155 = tpu.matmul %152, %154, %cst_147 {dimension_numbers = #tpu.dot_dimension_numbers<[1], [0], [0], [1], [0, 0, 1, 1], [], []>} : vector<24x208xbf16>, vector<208x512xbf16>, vector<24x512xf32> -> vector<24x512xf32>
    %c1_148 = arith.constant 1 : index
    %c0_149 = arith.constant 0 : index
    %156 = vector.load %arg18[%c1_148, %c0_149] : memref<26x208xf32, #tpu.memory_space<vmem>>, vector<24x208xf32>
    %157 = arith.truncf %156 : vector<24x208xf32> to vector<24x208xbf16>
    %c1_150 = arith.constant 1 : index
    %c0_151 = arith.constant 0 : index
    %c0_152 = arith.constant 0 : index
    %158 = vector.load %arg4[%c1_150, %c0_151, %c0_152] : memref<3x208x512xbf16, #tpu.memory_space<vmem>>, vector<1x208x512xbf16>
    %159 = vector.shape_cast %158 : vector<1x208x512xbf16> to vector<208x512xbf16>
    %cst_153 = arith.constant dense<0.000000e+00> : vector<24x512xf32>
    %160 = tpu.matmul %157, %159, %cst_153 {dimension_numbers = #tpu.dot_dimension_numbers<[1], [0], [0], [1], [0, 0, 1, 1], [], []>} : vector<24x208xbf16>, vector<208x512xbf16>, vector<24x512xf32> -> vector<24x512xf32>
    %161 = arith.addf %155, %160 : vector<24x512xf32>
    %c2_154 = arith.constant 2 : index
    %c0_155 = arith.constant 0 : index
    %162 = vector.load %arg18[%c2_154, %c0_155] : memref<26x208xf32, #tpu.memory_space<vmem>>, vector<24x208xf32>
    %163 = arith.truncf %162 : vector<24x208xf32> to vector<24x208xbf16>
    %c2_156 = arith.constant 2 : index
    %c0_157 = arith.constant 0 : index
    %c0_158 = arith.constant 0 : index
    %164 = vector.load %arg4[%c2_156, %c0_157, %c0_158] : memref<3x208x512xbf16, #tpu.memory_space<vmem>>, vector<1x208x512xbf16>
    %165 = vector.shape_cast %164 : vector<1x208x512xbf16> to vector<208x512xbf16>
    %cst_159 = arith.constant dense<0.000000e+00> : vector<24x512xf32>
    %166 = tpu.matmul %163, %165, %cst_159 {dimension_numbers = #tpu.dot_dimension_numbers<[1], [0], [0], [1], [0, 0, 1, 1], [], []>} : vector<24x208xbf16>, vector<208x512xbf16>, vector<24x512xf32> -> vector<24x512xf32>
    %167 = arith.addf %161, %166 : vector<24x512xf32>
    %cst_160 = arith.constant 0.000000e+00 : f32
    %168 = vector.broadcast %cst_160 : f32 to vector<24x512xf32>
    %169 = arith.maximumf %167, %168 : vector<24x512xf32>
    %c0_161 = arith.constant 0 : index
    %c0_162 = arith.constant 0 : index
    %170 = vector.load %arg5[%c0_161, %c0_162] : memref<2x512xf32, #tpu.memory_space<vmem>>, vector<1x512xf32>
    %171 = vector.broadcast %170 : vector<1x512xf32> to vector<24x512xf32>
    %172 = arith.mulf %169, %171 : vector<24x512xf32>
    %c1_163 = arith.constant 1 : index
    %c0_164 = arith.constant 0 : index
    %173 = vector.load %arg5[%c1_163, %c0_164] : memref<2x512xf32, #tpu.memory_space<vmem>>, vector<1x512xf32>
    %174 = vector.broadcast %173 : vector<1x512xf32> to vector<24x512xf32>
    %175 = arith.addf %172, %174 : vector<24x512xf32>
    %c0_165 = arith.constant 0 : index
    %c0_166 = arith.constant 0 : index
    %176 = vector.load %arg19[%c0_165, %c0_166] : memref<24x512xf32, #tpu.memory_space<vmem>>, vector<24x512xf32>
    tpu.vector_store %arg19[%c0_165, %c0_166], %175 {strides = array<i32>} : memref<24x512xf32, #tpu.memory_space<vmem>>, vector<24x512xf32>,
    %c0_167 = arith.constant 0 : index
    %c0_168 = arith.constant 0 : index
    %177 = vector.load %arg19[%c0_167, %c0_168] : memref<24x512xf32, #tpu.memory_space<vmem>>, vector<24x256xf32>
    %c0_169 = arith.constant 0 : index
    %c256_170 = arith.constant 256 : index
    %178 = vector.load %arg19[%c0_169, %c256_170] : memref<24x512xf32, #tpu.memory_space<vmem>>, vector<24x256xf32>
    %179 = arith.maximumf %177, %178 : vector<24x256xf32>
    %c0_171 = arith.constant 0 : index
    %c0_172 = arith.constant 0 : index
    %c0_173 = arith.constant 0 : index
    %180 = vector.load %arg6[%c0_171, %c0_172, %c0_173] : memref<2x12x24xf32, #tpu.memory_space<vmem>>, vector<1x12x24xf32>
    %181 = vector.shape_cast %180 : vector<1x12x24xf32> to vector<12x24xf32>
    %cst_174 = arith.constant dense<0.000000e+00> : vector<12x256xf32>
    %182 = tpu.matmul %181, %179, %cst_174 {dimension_numbers = #tpu.dot_dimension_numbers<[1], [0], [0], [1], [0, 0, 1, 1], [], []>} : vector<12x24xf32>, vector<24x256xf32>, vector<12x256xf32> -> vector<12x256xf32>
    %c1_175 = arith.constant 1 : index
    %c0_176 = arith.constant 0 : index
    %c0_177 = arith.constant 0 : index
    %183 = vector.load %arg6[%c1_175, %c0_176, %c0_177] : memref<2x12x24xf32, #tpu.memory_space<vmem>>, vector<1x12x24xf32>
    %184 = vector.shape_cast %183 : vector<1x12x24xf32> to vector<12x24xf32>
    %cst_178 = arith.constant dense<0.000000e+00> : vector<12x256xf32>
    %185 = tpu.matmul %184, %179, %cst_178 {dimension_numbers = #tpu.dot_dimension_numbers<[1], [0], [0], [1], [0, 0, 1, 1], [], []>} : vector<12x24xf32>, vector<24x256xf32>, vector<12x256xf32> -> vector<12x256xf32>
    %186 = arith.maximumf %182, %185 : vector<12x256xf32>
    %187 = arith.truncf %186 : vector<12x256xf32> to vector<12x256xbf16>
    %c0_179 = arith.constant 0 : index
    %c0_180 = arith.constant 0 : index
    %188 = vector.load %arg7[%c0_179, %c0_180] : memref<256x96xbf16, #tpu.memory_space<vmem>>, vector<256x96xbf16>
    %cst_181 = arith.constant dense<0.000000e+00> : vector<12x96xf32>
    %189 = tpu.matmul %187, %188, %cst_181 {dimension_numbers = #tpu.dot_dimension_numbers<[1], [0], [0], [1], [0, 0, 1, 1], [], []>} : vector<12x256xbf16>, vector<256x96xbf16>, vector<12x96xf32> -> vector<12x96xf32>
    %c0_182 = arith.constant 0 : index
    %c0_183 = arith.constant 0 : index
    %190 = vector.load %arg20[%c0_182, %c0_183] : memref<12x96xf32, #tpu.memory_space<vmem>>, vector<12x96xf32>
    tpu.vector_store %arg20[%c0_182, %c0_183], %189 {strides = array<i32>} : memref<12x96xf32, #tpu.memory_space<vmem>>, vector<12x96xf32>,
    %c0_184 = arith.constant 0 : index
    %c0_185 = arith.constant 0 : index
    %191 = vector.load %arg20[%c0_184, %c0_185] : memref<12x96xf32, #tpu.memory_space<vmem>>, vector<10x96xf32>
    %192 = arith.truncf %191 : vector<10x96xf32> to vector<10x96xbf16>
    %c0_186 = arith.constant 0 : index
    %c0_187 = arith.constant 0 : index
    %c0_188 = arith.constant 0 : index
    %193 = vector.load %arg8[%c0_186, %c0_187, %c0_188] : memref<3x96x160xbf16, #tpu.memory_space<vmem>>, vector<1x96x160xbf16>
    %194 = vector.shape_cast %193 : vector<1x96x160xbf16> to vector<96x160xbf16>
    %cst_189 = arith.constant dense<0.000000e+00> : vector<10x160xf32>
    %195 = tpu.matmul %192, %194, %cst_189 {dimension_numbers = #tpu.dot_dimension_numbers<[1], [0], [0], [1], [0, 0, 1, 1], [], []>} : vector<10x96xbf16>, vector<96x160xbf16>, vector<10x160xf32> -> vector<10x160xf32>
    %c1_190 = arith.constant 1 : index
    %c0_191 = arith.constant 0 : index
    %196 = vector.load %arg20[%c1_190, %c0_191] : memref<12x96xf32, #tpu.memory_space<vmem>>, vector<10x96xf32>
    %197 = arith.truncf %196 : vector<10x96xf32> to vector<10x96xbf16>
    %c1_192 = arith.constant 1 : index
    %c0_193 = arith.constant 0 : index
    %c0_194 = arith.constant 0 : index
    %198 = vector.load %arg8[%c1_192, %c0_193, %c0_194] : memref<3x96x160xbf16, #tpu.memory_space<vmem>>, vector<1x96x160xbf16>
    %199 = vector.shape_cast %198 : vector<1x96x160xbf16> to vector<96x160xbf16>
    %cst_195 = arith.constant dense<0.000000e+00> : vector<10x160xf32>
    %200 = tpu.matmul %197, %199, %cst_195 {dimension_numbers = #tpu.dot_dimension_numbers<[1], [0], [0], [1], [0, 0, 1, 1], [], []>} : vector<10x96xbf16>, vector<96x160xbf16>, vector<10x160xf32> -> vector<10x160xf32>
    %201 = arith.addf %195, %200 : vector<10x160xf32>
    %c2_196 = arith.constant 2 : index
    %c0_197 = arith.constant 0 : index
    %202 = vector.load %arg20[%c2_196, %c0_197] : memref<12x96xf32, #tpu.memory_space<vmem>>, vector<10x96xf32>
    %203 = arith.truncf %202 : vector<10x96xf32> to vector<10x96xbf16>
    %c2_198 = arith.constant 2 : index
    %c0_199 = arith.constant 0 : index
    %c0_200 = arith.constant 0 : index
    %204 = vector.load %arg8[%c2_198, %c0_199, %c0_200] : memref<3x96x160xbf16, #tpu.memory_space<vmem>>, vector<1x96x160xbf16>
    %205 = vector.shape_cast %204 : vector<1x96x160xbf16> to vector<96x160xbf16>
    %cst_201 = arith.constant dense<0.000000e+00> : vector<10x160xf32>
    %206 = tpu.matmul %203, %205, %cst_201 {dimension_numbers = #tpu.dot_dimension_numbers<[1], [0], [0], [1], [0, 0, 1, 1], [], []>} : vector<10x96xbf16>, vector<96x160xbf16>, vector<10x160xf32> -> vector<10x160xf32>
    %207 = arith.addf %201, %206 : vector<10x160xf32>
    %cst_202 = arith.constant 0.000000e+00 : f32
    %208 = vector.broadcast %cst_202 : f32 to vector<10x160xf32>
    %209 = arith.maximumf %207, %208 : vector<10x160xf32>
    %c0_203 = arith.constant 0 : index
    %c0_204 = arith.constant 0 : index
    %210 = vector.load %arg9[%c0_203, %c0_204] : memref<2x160xf32, #tpu.memory_space<vmem>>, vector<1x160xf32>
    %211 = vector.broadcast %210 : vector<1x160xf32> to vector<10x160xf32>
    %212 = arith.mulf %209, %211 : vector<10x160xf32>
    %c1_205 = arith.constant 1 : index
    %c0_206 = arith.constant 0 : index
    %213 = vector.load %arg9[%c1_205, %c0_206] : memref<2x160xf32, #tpu.memory_space<vmem>>, vector<1x160xf32>
    %214 = vector.broadcast %213 : vector<1x160xf32> to vector<10x160xf32>
    %215 = arith.addf %212, %214 : vector<10x160xf32>
    %c0_207 = arith.constant 0 : index
    %c0_208 = arith.constant 0 : index
    %216 = vector.load %arg21[%c0_207, %c0_208] : memref<10x160xf32, #tpu.memory_space<vmem>>, vector<10x160xf32>
    tpu.vector_store %arg21[%c0_207, %c0_208], %215 {strides = array<i32>} : memref<10x160xf32, #tpu.memory_space<vmem>>, vector<10x160xf32>,
    %c0_209 = arith.constant 0 : index
    %c0_210 = arith.constant 0 : index
    %217 = vector.load %arg21[%c0_209, %c0_210] : memref<10x160xf32, #tpu.memory_space<vmem>>, vector<8x160xf32>
    %218 = arith.truncf %217 : vector<8x160xf32> to vector<8x160xbf16>
    %c0_211 = arith.constant 0 : index
    %c0_212 = arith.constant 0 : index
    %c0_213 = arith.constant 0 : index
    %219 = vector.load %arg10[%c0_211, %c0_212, %c0_213] : memref<3x160x192xbf16, #tpu.memory_space<vmem>>, vector<1x160x192xbf16>
    %220 = vector.shape_cast %219 : vector<1x160x192xbf16> to vector<160x192xbf16>
    %cst_214 = arith.constant dense<0.000000e+00> : vector<8x192xf32>
    %221 = tpu.matmul %218, %220, %cst_214 {dimension_numbers = #tpu.dot_dimension_numbers<[1], [0], [0], [1], [0, 0, 1, 1], [], []>} : vector<8x160xbf16>, vector<160x192xbf16>, vector<8x192xf32> -> vector<8x192xf32>
    %c1_215 = arith.constant 1 : index
    %c0_216 = arith.constant 0 : index
    %222 = vector.load %arg21[%c1_215, %c0_216] : memref<10x160xf32, #tpu.memory_space<vmem>>, vector<8x160xf32>
    %223 = arith.truncf %222 : vector<8x160xf32> to vector<8x160xbf16>
    %c1_217 = arith.constant 1 : index
    %c0_218 = arith.constant 0 : index
    %c0_219 = arith.constant 0 : index
    %224 = vector.load %arg10[%c1_217, %c0_218, %c0_219] : memref<3x160x192xbf16, #tpu.memory_space<vmem>>, vector<1x160x192xbf16>
    %225 = vector.shape_cast %224 : vector<1x160x192xbf16> to vector<160x192xbf16>
    %cst_220 = arith.constant dense<0.000000e+00> : vector<8x192xf32>
    %226 = tpu.matmul %223, %225, %cst_220 {dimension_numbers = #tpu.dot_dimension_numbers<[1], [0], [0], [1], [0, 0, 1, 1], [], []>} : vector<8x160xbf16>, vector<160x192xbf16>, vector<8x192xf32> -> vector<8x192xf32>
    %227 = arith.addf %221, %226 : vector<8x192xf32>
    %c2_221 = arith.constant 2 : index
    %c0_222 = arith.constant 0 : index
    %228 = vector.load %arg21[%c2_221, %c0_222] : memref<10x160xf32, #tpu.memory_space<vmem>>, vector<8x160xf32>
    %229 = arith.truncf %228 : vector<8x160xf32> to vector<8x160xbf16>
    %c2_223 = arith.constant 2 : index
    %c0_224 = arith.constant 0 : index
    %c0_225 = arith.constant 0 : index
    %230 = vector.load %arg10[%c2_223, %c0_224, %c0_225] : memref<3x160x192xbf16, #tpu.memory_space<vmem>>, vector<1x160x192xbf16>
    %231 = vector.shape_cast %230 : vector<1x160x192xbf16> to vector<160x192xbf16>
    %cst_226 = arith.constant dense<0.000000e+00> : vector<8x192xf32>
    %232 = tpu.matmul %229, %231, %cst_226 {dimension_numbers = #tpu.dot_dimension_numbers<[1], [0], [0], [1], [0, 0, 1, 1], [], []>} : vector<8x160xbf16>, vector<160x192xbf16>, vector<8x192xf32> -> vector<8x192xf32>
    %233 = arith.addf %227, %232 : vector<8x192xf32>
    %cst_227 = arith.constant 0.000000e+00 : f32
    %234 = vector.broadcast %cst_227 : f32 to vector<8x192xf32>
    %235 = arith.maximumf %233, %234 : vector<8x192xf32>
    %c0_228 = arith.constant 0 : index
    %c0_229 = arith.constant 0 : index
    %236 = vector.load %arg11[%c0_228, %c0_229] : memref<2x192xf32, #tpu.memory_space<vmem>>, vector<1x192xf32>
    %237 = vector.broadcast %236 : vector<1x192xf32> to vector<8x192xf32>
    %238 = arith.mulf %235, %237 : vector<8x192xf32>
    %c1_230 = arith.constant 1 : index
    %c0_231 = arith.constant 0 : index
    %239 = vector.load %arg11[%c1_230, %c0_231] : memref<2x192xf32, #tpu.memory_space<vmem>>, vector<1x192xf32>
    %240 = vector.broadcast %239 : vector<1x192xf32> to vector<8x192xf32>
    %241 = arith.addf %238, %240 : vector<8x192xf32>
    %cst_232 = arith.constant dense<0.000000e+00> : vector<192xf32>
    %242 = vector.multi_reduction <add>, %241, %cst_232 [0] : vector<8x192xf32> to vector<192xf32>
    %243 = vector.shape_cast %242 : vector<192xf32> to vector<1x192xf32>
    %244 = tpu.concatenate %121, %243 in 0 : vector<1x192xf32>, vector<1x192xf32> -> vector<2x192xf32>
    %c0_233 = arith.constant 0 : index
    %c0_234 = arith.constant 0 : index
    %245 = vector.load %arg12[%c0_233, %c0_234] : memref<192x32xf32, #tpu.memory_space<vmem>>, vector<192x32xf32>
    %cst_235 = arith.constant dense<0.000000e+00> : vector<2x32xf32>
    %246 = tpu.matmul %244, %245, %cst_235 {dimension_numbers = #tpu.dot_dimension_numbers<[1], [0], [0], [1], [0, 0, 1, 1], [], []>} : vector<2x192xf32>, vector<192x32xf32>, vector<2x32xf32> -> vector<2x32xf32>
    %cst_236 = arith.constant 0.000000e+00 : f32
    %247 = vector.broadcast %cst_236 : f32 to vector<2x32xf32>
    %248 = arith.maximumf %246, %247 : vector<2x32xf32>
    %c0_237 = arith.constant 0 : index
    %c0_238 = arith.constant 0 : index
    %249 = vector.load %arg13[%c0_237, %c0_238] : memref<2x32xf32, #tpu.memory_space<vmem>>, vector<1x32xf32>
    %250 = vector.broadcast %249 : vector<1x32xf32> to vector<2x32xf32>
    %251 = arith.mulf %248, %250 : vector<2x32xf32>
    %c1_239 = arith.constant 1 : index
    %c0_240 = arith.constant 0 : index
    %252 = vector.load %arg13[%c1_239, %c0_240] : memref<2x32xf32, #tpu.memory_space<vmem>>, vector<1x32xf32>
    %253 = vector.broadcast %252 : vector<1x32xf32> to vector<2x32xf32>
    %254 = arith.addf %251, %253 : vector<2x32xf32>
    %c0_241 = arith.constant 0 : index
    %c0_242 = arith.constant 0 : index
    %255 = vector.load %arg14[%c0_241, %c0_242] : memref<32x16xf32, #tpu.memory_space<vmem>>, vector<32x16xf32>
    %cst_243 = arith.constant dense<0.000000e+00> : vector<2x16xf32>
    %256 = tpu.matmul %254, %255, %cst_243 {dimension_numbers = #tpu.dot_dimension_numbers<[1], [0], [0], [1], [0, 0, 1, 1], [], []>} : vector<2x32xf32>, vector<32x16xf32>, vector<2x16xf32> -> vector<2x16xf32>
    %cst_244 = arith.constant 0.000000e+00 : f32
    %257 = vector.broadcast %cst_244 : f32 to vector<2x16xf32>
    %258 = arith.maximumf %256, %257 : vector<2x16xf32>
    %c0_245 = arith.constant 0 : index
    %c0_246 = arith.constant 0 : index
    %259 = vector.load %arg15[%c0_245, %c0_246] : memref<2x16xf32, #tpu.memory_space<vmem>>, vector<1x16xf32>
    %260 = vector.broadcast %259 : vector<1x16xf32> to vector<2x16xf32>
    %261 = arith.mulf %258, %260 : vector<2x16xf32>
    %c1_247 = arith.constant 1 : index
    %c0_248 = arith.constant 0 : index
    %262 = vector.load %arg15[%c1_247, %c0_248] : memref<2x16xf32, #tpu.memory_space<vmem>>, vector<1x16xf32>
    %263 = vector.broadcast %262 : vector<1x16xf32> to vector<2x16xf32>
    %264 = arith.addf %261, %263 : vector<2x16xf32>
    %c0_249 = arith.constant 0 : index
    %c0_250 = arith.constant 0 : index
    %265 = vector.load %arg16[%c0_249, %c0_250] : memref<16x10xf32, #tpu.memory_space<vmem>>, vector<16x10xf32>
    %cst_251 = arith.constant dense<0.000000e+00> : vector<2x10xf32>
    %266 = tpu.matmul %264, %265, %cst_251 {dimension_numbers = #tpu.dot_dimension_numbers<[1], [0], [0], [1], [0, 0, 1, 1], [], []>} : vector<2x16xf32>, vector<16x10xf32>, vector<2x10xf32> -> vector<2x10xf32>
    %cst_252 = arith.constant dense<0xFF800000> : vector<2xf32>
    %267 = vector.multi_reduction <maximumf>, %266, %cst_252 [1] : vector<2x10xf32> to vector<2xf32>
    %268 = vector.shape_cast %267 : vector<2xf32> to vector<2x1xf32>
    %269 = vector.broadcast %268 : vector<2x1xf32> to vector<2x10xf32>
    %270 = arith.subf %266, %269 : vector<2x10xf32>
    %271 = math.exp %270 : vector<2x10xf32>
    %cst_253 = arith.constant dense<0.000000e+00> : vector<2xf32>
    %272 = vector.multi_reduction <add>, %271, %cst_253 [1] : vector<2x10xf32> to vector<2xf32>
    %273 = vector.shape_cast %272 : vector<2xf32> to vector<2x1xf32>
    %274 = math.log %273 : vector<2x1xf32>
    %cst_254 = arith.constant 0.000000e+00 : f32
    %275 = vector.broadcast %cst_254 : f32 to vector<2x128xf32>
    %c0_255 = arith.constant 0 : index
    %c0_256 = arith.constant 0 : index
    %276 = vector.load %arg17[%c0_255, %c0_256] : memref<2x128xf32, #tpu.memory_space<vmem>>, vector<2x128xf32>
    tpu.vector_store %arg17[%c0_255, %c0_256], %275 {strides = array<i32>} : memref<2x128xf32, #tpu.memory_space<vmem>>, vector<2x128xf32>,
    %277 = vector.broadcast %274 : vector<2x1xf32> to vector<2x10xf32>
    %278 = arith.subf %270, %277 : vector<2x10xf32>
    %c0_257 = arith.constant 0 : index
    %c0_258 = arith.constant 0 : index
    %279 = vector.load %arg17[%c0_257, %c0_258] : memref<2x128xf32, #tpu.memory_space<vmem>>, vector<2x10xf32>
    tpu.vector_store %arg17[%c0_257, %c0_258], %278 {strides = array<i32>} : memref<2x128xf32, #tpu.memory_space<vmem>>, vector<2x10xf32>,
    return
  }
  func.func @transform_0(%arg0: i32) -> (i32, i32, i32) {
    %c0_i32 = arith.constant 0 : i32
    %c0_i32_0 = arith.constant 0 : i32
    %c0_i32_1 = arith.constant 0 : i32
    return %arg0, %c0_i32, %c0_i32_0 : i32, i32, i32
  }
  func.func @transform_1(%arg0: i32) -> (i32, i32, i32) {
    %c0_i32 = arith.constant 0 : i32
    %c0_i32_0 = arith.constant 0 : i32
    %c0_i32_1 = arith.constant 0 : i32
    %c0_i32_2 = arith.constant 0 : i32
    return %c0_i32, %c0_i32_0, %c0_i32_1 : i32, i32, i32
  }
  func.func @transform_2(%arg0: i32) -> (i32, i32) {
    %c0_i32 = arith.constant 0 : i32
    %c0_i32_0 = arith.constant 0 : i32
    %c0_i32_1 = arith.constant 0 : i32
    return %c0_i32, %c0_i32_0 : i32, i32
  }
  func.func @transform_3(%arg0: i32) -> (i32, i32, i32) {
    %c0_i32 = arith.constant 0 : i32
    %c0_i32_0 = arith.constant 0 : i32
    %c0_i32_1 = arith.constant 0 : i32
    %c0_i32_2 = arith.constant 0 : i32
    return %c0_i32, %c0_i32_0, %c0_i32_1 : i32, i32, i32
  }
  func.func @transform_4(%arg0: i32) -> (i32, i32) {
    %c0_i32 = arith.constant 0 : i32
    %c0_i32_0 = arith.constant 0 : i32
    %c0_i32_1 = arith.constant 0 : i32
    return %c0_i32, %c0_i32_0 : i32, i32
  }
  func.func @transform_5(%arg0: i32) -> (i32, i32, i32) {
    %c0_i32 = arith.constant 0 : i32
    %c0_i32_0 = arith.constant 0 : i32
    %c0_i32_1 = arith.constant 0 : i32
    %c0_i32_2 = arith.constant 0 : i32
    return %c0_i32, %c0_i32_0, %c0_i32_1 : i32, i32, i32
  }
  func.func @transform_6(%arg0: i32) -> (i32, i32) {
    %c0_i32 = arith.constant 0 : i32
    %c0_i32_0 = arith.constant 0 : i32
    %c0_i32_1 = arith.constant 0 : i32
    return %c0_i32, %c0_i32_0 : i32, i32
  }
  func.func @transform_7(%arg0: i32) -> (i32, i32, i32) {
    %c0_i32 = arith.constant 0 : i32
    %c0_i32_0 = arith.constant 0 : i32
    %c0_i32_1 = arith.constant 0 : i32
    %c0_i32_2 = arith.constant 0 : i32
    return %c0_i32, %c0_i32_0, %c0_i32_1 : i32, i32, i32
  }
  func.func @transform_8(%arg0: i32) -> (i32, i32) {
    %c0_i32 = arith.constant 0 : i32
    %c0_i32_0 = arith.constant 0 : i32
    %c0_i32_1 = arith.constant 0 : i32
    return %c0_i32, %c0_i32_0 : i32, i32
  }
  func.func @transform_9(%arg0: i32) -> (i32, i32, i32) {
    %c0_i32 = arith.constant 0 : i32
    %c0_i32_0 = arith.constant 0 : i32
    %c0_i32_1 = arith.constant 0 : i32
    %c0_i32_2 = arith.constant 0 : i32
    return %c0_i32, %c0_i32_0, %c0_i32_1 : i32, i32, i32
  }
  func.func @transform_10(%arg0: i32) -> (i32, i32) {
    %c0_i32 = arith.constant 0 : i32
    %c0_i32_0 = arith.constant 0 : i32
    %c0_i32_1 = arith.constant 0 : i32
    return %c0_i32, %c0_i32_0 : i32, i32
  }
  func.func @transform_11(%arg0: i32) -> (i32, i32) {
    %c0_i32 = arith.constant 0 : i32
    %c0_i32_0 = arith.constant 0 : i32
    %c0_i32_1 = arith.constant 0 : i32
    return %c0_i32, %c0_i32_0 : i32, i32
  }
  func.func @transform_12(%arg0: i32) -> (i32, i32) {
    %c0_i32 = arith.constant 0 : i32
    %c0_i32_0 = arith.constant 0 : i32
    %c0_i32_1 = arith.constant 0 : i32
    return %c0_i32, %c0_i32_0 : i32, i32
  }
  func.func @transform_13(%arg0: i32) -> (i32, i32) {
    %c0_i32 = arith.constant 0 : i32
    %c0_i32_0 = arith.constant 0 : i32
    %c0_i32_1 = arith.constant 0 : i32
    return %c0_i32, %c0_i32_0 : i32, i32
  }
  func.func @transform_14(%arg0: i32) -> (i32, i32) {
    %c0_i32 = arith.constant 0 : i32
    %c0_i32_0 = arith.constant 0 : i32
    %c0_i32_1 = arith.constant 0 : i32
    return %c0_i32, %c0_i32_0 : i32, i32
  }
  func.func @transform_15(%arg0: i32) -> (i32, i32) {
    %c0_i32 = arith.constant 0 : i32
    %c0_i32_0 = arith.constant 0 : i32
    %c0_i32_1 = arith.constant 0 : i32
    return %c0_i32, %c0_i32_0 : i32, i32
  }
  func.func @transform_16(%arg0: i32) -> (i32, i32) {
    %c0_i32 = arith.constant 0 : i32
    %c0_i32_0 = arith.constant 0 : i32
    return %arg0, %c0_i32 : i32, i32
  }
}

</mosaic_0001>

<bundles_post_ra>
// kernel: net_forward.1
= control target key start
LH: loop header
LB: loop body
LE: loop exit
PB: predicated region body
PF: predicated region fallthrough
CT: control target
= control target key end

     0   :  { %s10866_s0 = inlined_call_operand.vmem [shape: f32[2,28,28], index: 0, kind: input, shape index: {}]   ;;  %s10867_s1 = inlined_call_operand.vmem [shape: bf16[3,28,208], index: 1, kind: input, shape index: {}]   ;;  %s10868_s2 = inlined_call_operand.hbm [shape: f32[2,208], index: 2, kind: input, shape index: {}]   ;;  %s10869_s3 = inlined_call_operand.vmem [shape: bf16[3,208,512], index: 3, kind: input, shape index: {}]   ;;  %s10870_s4 = inlined_call_operand.hbm [shape: f32[2,512], index: 4, kind: input, shape index: {}]   ;;  %s10871_s5 = inlined_call_operand.vmem [shape: f32[2,12,24], index: 5, kind: input, shape index: {}]   ;;  %s10872_s6 = inlined_call_operand.vmem [shape: bf16[256,96], index: 6, kind: input, shape index: {}]   ;;  %s10873_s7 = inlined_call_operand.vmem [shape: bf16[3,96,160], index: 7, kind: input, shape index: {}]   ;;  %s10874_s8 = inlined_call_operand.hbm [shape: f32[2,160], index: 8, kind: input, shape index: {}]   ;;  %s10875_s9 = inlined_call_operand.hbm [shape: bf16[3,160,192], index: 9, kind: input, shape index: {}]   ;;  %s10876_s10 = inlined_call_operand.hbm [shape: f32[2,192], index: 10, kind: input, shape index: {}]   ;;  %s10877_s11 = inlined_call_operand.vmem [shape: f32[192,32], index: 11, kind: input, shape index: {}]   ;;  %s10878_s12 = inlined_call_operand.vmem [shape: f32[2,32], index: 12, kind: input, shape index: {}]   ;;  %s10879_s13 = inlined_call_operand.vmem [shape: f32[32,16], index: 13, kind: input, shape index: {}]   ;;  %s10880_s14 = inlined_call_operand.vmem [shape: f32[2,16], index: 14, kind: input, shape index: {}]   ;;  %s10881_s15 = inlined_call_operand.vmem [shape: f32[16,10], index: 15, kind: input, shape index: {}]   ;;  %s10882_s16 = inlined_call_operand.hbm [shape: f32[2,128], index: 16, kind: output, shape index: {}]  }
   0x1   :  { %10884 = sst [smem:[#allocation20_spill]] %s10866_s0 }
   0x2   :  { %21 = vsyncpa [#allocation7], 0 }
   0x3   :  { %22 = vsyncpa [#allocation10], 0 }
   0x4   :  { %23 = vsyncpa [#allocation13], 0 }
   0x5   :  { %24 = vsyncpa [#allocation8], 0  ;;  %s8852_s21 = smov [#allocation9]   ;;  %s8853_s23 = smov [#allocation12]  }
   0x6   :  { %s47_s22 = sshll.u32 %s8852_s21, 4  ;;  %s72_s24 = sshll.u32 %s8853_s23, 4  ;;  %s48_s22 = int_to_ptr.vmem [resolvable:$true] %s47_s22  ;;  %s8949_s24 = int_to_ptr.vmem [resolvable:$true] %s72_s24 }
   0x7   :  { %s8712_s27 = scalar_lea.hbm %s10870_s4, 128 }
   0x8   :  { %p8713_p0 = scmp.ne.s32.totalorder %s10870_s4, %s8712_s27  ;;  %p8716_p1 = scmp.lt.u32.totalorder %s8712_s27, %s10870_s4 }
   0xa   :  { %p8718_p2 = pnand %p8716_p1, %p8713_p0 }
   0xc   :  { %8721 = shalt.err (!%p8718_p2)
}
   0xd   :  { %s8722_s17 = scalar_lea.vmem %s48_s22, 128  ;;  %p8727_p4 = scmp.lt.s32.totalorder %s48_s22, %s48_s22 }
   0xe   :  { %p8723_p3 = scmp.ne.s32.totalorder %s48_s22, %s8722_s17  ;;  %p8728_p5 = scmp.lt.s32.totalorder %s8722_s17, %s8722_s17 }
  0x10   :  { %p8729_p6 = por %p8728_p5, %p8727_p4 }
  0x12   :  { %p8730_p7 = pnand %p8729_p6, %p8723_p3 }
  0x14   :  { %8733 = shalt.err (!%p8730_p7)
}
  0x15   :  { %50 = dma.hbm_to_vmem [thread:$0]  %s10870_s4, 128, %s48_s22, [#allocation10]  }
  0x16   :  { %s8734_s23 = scalar_lea.hbm %s10875_s9, 7680 }
  0x17   :  { %p8735_p8 = scmp.ne.s32.totalorder %s10875_s9, %s8734_s23  ;;  %p8738_p9 = scmp.lt.u32.totalorder %s8734_s23, %s10875_s9 }
  0x19   :  { %p8740_p10 = pnand %p8738_p9, %p8735_p8 }
  0x1b   :  { %8743 = shalt.err (!%p8740_p10)
}
  0x1c   :  { %s8744_s29 = scalar_lea.vmem %s8949_s24, 7680  ;;  %p8749_p12 = scmp.lt.s32.totalorder %s8949_s24, %s8949_s24 }
  0x1d   :  { %p8745_p11 = scmp.ne.s32.totalorder %s8949_s24, %s8744_s29  ;;  %p8750_p13 = scmp.lt.s32.totalorder %s8744_s29, %s8744_s29 }
  0x1f   :  { %p8751_p0 = por %p8750_p13, %p8749_p12 }
  0x21   :  { %p8752_p1 = pnand %p8751_p0, %p8745_p11 }
  0x23   :  { %8755 = shalt.err (!%p8752_p1)
}
  0x24   :  { %s8854_s4 = smov 128   ;;  %s8855_s22 = smov 8  }
  0x25   :  { %78 = dma.hbm_to_vmem [thread:$0]  %s10875_s9, 7680, %s8949_s24, [#allocation13], %s8854_s4, %s8854_s4, %s8855_s22  }
  0x26   :  { %s8856_s17 = smov [#allocation6]   ;;  %s8857_s19 = smov [#allocation11]  }
  0x27   :  { %s35_s18 = sshll.u32 %s8856_s17, 4  ;;  %s63_s20 = sshll.u32 %s8857_s19, 4  ;;  %s36_s18 = int_to_ptr.vmem [resolvable:$true] %s35_s18  ;;  %s64_s20 = int_to_ptr.vmem [resolvable:$true] %s63_s20 }
  0x28   :  { %s8756_s25 = scalar_lea.hbm %s10868_s2, 64 }
  0x29   :  { %p8757_p2 = scmp.ne.s32.totalorder %s10868_s2, %s8756_s25  ;;  %p8760_p3 = scmp.lt.u32.totalorder %s8756_s25, %s10868_s2 }
  0x2b   :  { %p8762_p4 = pnand %p8760_p3, %p8757_p2 }
  0x2d   :  { %8765 = shalt.err (!%p8762_p4)
}
  0x2e   :  { %s8766_s9 = scalar_lea.vmem %s36_s18, 64  ;;  %p8771_p6 = scmp.lt.s32.totalorder %s36_s18, %s36_s18 }
  0x2f   :  { %p8767_p5 = scmp.ne.s32.totalorder %s36_s18, %s8766_s9  ;;  %p8772_p7 = scmp.lt.s32.totalorder %s8766_s9, %s8766_s9 }
  0x31   :  { %p8773_p8 = por %p8772_p7, %p8771_p6 }
  0x33   :  { %p8774_p9 = pnand %p8773_p8, %p8767_p5 }
  0x35   :  { %8777 = shalt.err (!%p8774_p9)
}
  0x36   :  { %38 = dma.hbm_to_vmem [thread:$0]  %s10868_s2, 64, %s36_s18, [#allocation7]  }
  0x37   :  { %s8778_s0 = scalar_lea.hbm %s10874_s8, 64 }
  0x38   :  { %p8779_p10 = scmp.ne.s32.totalorder %s10874_s8, %s8778_s0  ;;  %p8782_p11 = scmp.lt.u32.totalorder %s8778_s0, %s10874_s8 }
  0x3a   :  { %p8784_p12 = pnand %p8782_p11, %p8779_p10 }
  0x3c   :  { %8787 = shalt.err (!%p8784_p12)
}
  0x3d   :  { %s8788_s25 = scalar_lea.vmem %s64_s20, 64  ;;  %p8793_p0 = scmp.lt.s32.totalorder %s64_s20, %s64_s20 }
  0x3e   :  { %p8789_p13 = scmp.ne.s32.totalorder %s64_s20, %s8788_s25  ;;  %p8794_p1 = scmp.lt.s32.totalorder %s8788_s25, %s8788_s25 }
  0x40   :  { %p8795_p2 = por %p8794_p1, %p8793_p0 }
  0x42   :  { %p8796_p3 = pnand %p8795_p2, %p8789_p13 }
  0x44   :  { %8799 = shalt.err (!%p8796_p3)
}
  0x45   :  { %66 = dma.hbm_to_vmem [thread:$0]  %s10874_s8, 64, %s64_s20, [#allocation10]  }
  0x46   :  { %s8858_s26 = smov [#allocation14]   ;;  %s8800_s9 = scalar_lea.hbm %s10876_s10, 64 }
  0x47   :  { %s85_s27 = sshll.u32 %s8858_s26, 4  ;;  %p8801_p4 = scmp.ne.s32.totalorder %s10876_s10, %s8800_s9  ;;  %s86_s27 = int_to_ptr.vmem [resolvable:$true] %s85_s27 }
  0x48   :  { %p8804_p5 = scmp.lt.u32.totalorder %s8800_s9, %s10876_s10 }
  0x4a   :  { %p8806_p6 = pnand %p8804_p5, %p8801_p4 }
  0x4c   :  { %8809 = shalt.err (!%p8806_p6)
}
  0x4d   :  { %s8810_s0 = scalar_lea.vmem %s86_s27, 64  ;;  %p8815_p8 = scmp.lt.s32.totalorder %s86_s27, %s86_s27 }
  0x4e   :  { %p8811_p7 = scmp.ne.s32.totalorder %s86_s27, %s8810_s0  ;;  %p8816_p9 = scmp.lt.s32.totalorder %s8810_s0, %s8810_s0 }
  0x50   :  { %p8817_p10 = por %p8816_p9, %p8815_p8 }
  0x52   :  { %p8818_p11 = pnand %p8817_p10, %p8811_p7 }
  0x54   :  { %8821 = shalt.err (!%p8818_p11)
}
  0x55   :  { %88 = dma.hbm_to_vmem [thread:$0]  %s10876_s10, 64, %s86_s27, [#allocation13]  }
  0x56   :  { %8844 = dma.done.wait [#allocation7], 64  }
  0x57   :  { %8845 = vsyncadd [#allocation7], 4294967232 }
  0x58   :  { %8846 = dma.done.wait [#allocation10], 192  }
  0x59   :  { %8847 = vsyncadd [#allocation10], 4294967104 }
  0x5a   :  { %8848 = dma.done.wait [#allocation13], 7744  }
  0x5b   :  { %8849 = vsyncadd [#allocation13], 4294959552  ;;  %v8859_v0 = vmov 0   ;;  %v7884_v1 = vld [vmem:[%s10867_s1 + $0x4] ss:$8 sps:$4 sm:$0xff]   ;;  %vm161_vm0 = vcmask 1045504  }
  0x5c   :  { %283 = vmatprep.mubr.bf16.mxu0 %v8859_v0  ;;  %200 = vmatprep.mubr.bf16.mxu1 %v8859_v0  ;;  %v7886_v2 = vld [vmem:[%s10867_s1] ss:$8 sps:$4 sm:$0xff]   ;;  %v7887_v3 = vld [vmem:[%s10867_s1 + $0x14] ss:$8 sps:$4 sm:$0x3f]   ;;  %s10885_s28 = sld [smem:[#allocation20_spill]] }
  0x5d   :  { %251 = vmatprep.subr.bf16.mxu0 %v7884_v1  ;;  %v7889_v4 = vld [vmem:[%s10867_s1 + $0x10] ss:$8 sps:$4 sm:$0x3f]   ;;  %v7890_v8 = vld [vmem:[%s10867_s1 + $0x24] ss:$8 sps:$4 sm:$0xff]   ;;  %vm154_vm1 = vcmask 228352  }
  0x5e   :  { %252 = vmatpush1.bf16.msra.mxu0 %v7886_v2  ;;  %v246_v7 = vsel %vm161_vm0, %v7889_v4, 0  ;;  %v7892_v9 = vld [vmem:[%s10867_s1 + $0x20] ss:$8 sps:$4 sm:$0xff]   ;;  %168 = vmatprep.subr.bf16.mxu1 %v7890_v8  ;;  %v7895_v12 = vld [vmem:[%s10867_s1 + $0x44] ss:$8 sps:$4 sm:$0xff]   ;;  %vm456_vm2 = vcmask 654336  }
  0x5f   :  { %6711 = vmatprep.subr.msk.bf16.mxu0 %vm161_vm0, %v7887_v3  ;;  %v7893_v11 = vld [vmem:[%s10867_s1 + $0x40] ss:$8 sps:$4 sm:$0xff]   ;;  %169 = vmatpush1.bf16.msra.mxu1 %v7892_v9  ;;  %v7896_v13 = vld [vmem:[%s10867_s1 + $0x34] ss:$8 sps:$4 sm:$0x3f]   ;;  %vm463_vm3 = vcmask 648192  }
  0x60   :  { %v7898_v14 = vld [vmem:[%s10867_s1 + $0x30] ss:$8 sps:$4 sm:$0x3f]   ;;  %6704 = vmatprep.subr.msk.bf16.mxu1 %vm161_vm0, %v7896_v13  ;;  %v7899_v15 = vld [vmem:[%s10867_s1 + $0x54] ss:$8 sps:$4 sm:$0x3f]  }
  0x61   :  { %v163_v18 = vsel %vm161_vm0, %v7898_v14, 0  ;;  %v7901_v19 = vld [vmem:[%s10867_s1 + $0x50] ss:$8 sps:$4 sm:$0x3f]   ;;  %v7904_v25 = vld [vmem:[%s10869_s3 + $0x1a4] ss:$16 sps:$4 sm:$0xff]  }
  0x62   :  { %v115_v5 = vld [vmem:[%s10885_s28] sm:$0xff]  ;;  %v116_v6 = vld [vmem:[%s10885_s28 + $0x8] sm:$0xff]  ;;  %254 = vmatpush1.bf16.msra.mxu0 %v246_v7  ;;  %v117_v20 = vld [vmem:[%s10885_s28 + $0x10] sm:$0xff]  ;;  %v340_v23 = vsel %vm161_vm0, %v7901_v19, 0  ;;  %vm1422_vm4 = vcmask 1046528   ;;  %vm1924_vm6 = vcmask 195584  }
  0x63   :  { %v119_v10 = vpack.c.bf16 %v116_v6, %v115_v5  ;;  %345 = vmatprep.subr.bf16.mxu0 %v7895_v12  ;;  %v125_v16 = vld [vmem:[%s10885_s28 + $0x1] sm:$0xff]  ;;  %v126_v17 = vld [vmem:[%s10885_s28 + $0x9] sm:$0xff]  ;;  %v118_v21 = vld [vmem:[%s10885_s28 + $0x18] sm:$0x3]  ;;  %171 = vmatpush1.bf16.msra.mxu1 %v163_v18  ;;  %vm588_vm5 = vsmask.f32 7424 }
  0x64   :  { %v129_v22 = vpack.c.bf16 %v126_v17, %v125_v16  ;;  %v7902_v24 = vld [vmem:[%s10869_s3 + $0x1a0] ss:$16 sps:$4 sm:$0xff]   ;;  %v120_v26 = vpack.c.bf16 %v118_v21, %v117_v20  ;;  %v7907_v28 = vld [vmem:[%s10869_s3 + $0x1ac] ss:$16 sps:$4 sm:$0xff]   ;;  %v128_v29 = vld [vmem:[%s10885_s28 + $0x19] sm:$0x3]  ;;  %887 = vmatprep.subr.bf16.mxu1 %v7904_v25 }
  0x65   :  { %6712 = vmatmul.mubr.msk.bf16.vlgmr.msra.gmra.mrb[0].mxu0 %vm154_vm1, %v119_v10  ;;  %v127_v27 = vld [vmem:[%s10885_s28 + $0x11] sm:$0xff]  ;;  %v304_v32 = vld [vmem:[%s10885_s28 + $0x2] sm:$0xff]  ;;  %v7913_v39 = vld [vmem:[%s10869_s3 + $0x1cc] ss:$16 sps:$4 sm:$0xff]   ;;  %vm2269_vm7 = vcmask 785408   ;;  %vm2271_vm8 = vcmask 781312  }
  0x66   :  { %293 = vmatprep.mubr.bf16.mxu0 %v8859_v0  ;;  %346 = vmatpush1.bf16.msra.mxu0 %v7893_v11  ;;  %v7910_v30 = vld [vmem:[%s10869_s3 + $0x1c4] ss:$16 sps:$4 sm:$0xff]   ;;  %v7908_v31 = vld [vmem:[%s10869_s3 + $0x1c0] ss:$16 sps:$4 sm:$0xff]   ;;  %v130_v35 = vpack.c.bf16 %v128_v29, %v127_v27  ;;  %v7905_v36 = vld [vmem:[%s10869_s3 + $0x1a8] ss:$16 sps:$4 sm:$0xff]  }
  0x67   :  { %6722 = vmatprep.subr.msk.bf16.mxu0 %vm161_vm0, %v7899_v15  ;;  %6705 = vmatmul.mubr.msk.bf16.vlgmr.msra.gmra.mrb[0].mxu1 %vm154_vm1, %v129_v22  ;;  %v7916_v33 = vld [vmem:[%s10869_s3 + $0x1e4] ss:$16 sps:$4 sm:$0xff]   ;;  %v305_v34 = vld [vmem:[%s10885_s28 + $0xa] sm:$0xff]  ;;  %v307_v43 = vld [vmem:[%s10885_s28 + $0x1a] sm:$0x3]  ;;  %vm2680_vm9 = vcmask 261120  }
  0x68   :  { %210 = vmatprep.mubr.bf16.mxu1 %v8859_v0  ;;  %888 = vmatpush1.bf16.msra.mxu1 %v7902_v24  ;;  %v7914_v37 = vld [vmem:[%s10869_s3 + $0x1e0] ss:$16 sps:$4 sm:$0xff]   ;;  %v308_v38 = vpack.c.bf16 %v305_v34, %v304_v32  ;;  %v7922_v40 = vld [vmem:[%s10869_s3 + $0x204] ss:$16 sps:$4 sm:$0xff]   ;;  %v7911_v44 = vld [vmem:[%s10869_s3 + $0x1c8] ss:$16 sps:$4 sm:$0xff]  }
  0x69   :  { %889 = vmatprep.subr.bf16.mxu1 %v7910_v30  ;;  %v7920_v41 = vld [vmem:[%s10869_s3 + $0x200] ss:$16 sps:$4 sm:$0xff]   ;;  %v7919_v45 = vld [vmem:[%s10869_s3 + $0x1ec] ss:$16 sps:$4 sm:$0xff]   ;;  %v7917_v46 = vld [vmem:[%s10869_s3 + $0x1e8] ss:$16 sps:$4 sm:$0xff]  }
  0x6a   :  { %348 = vmatpush1.bf16.msra.mxu0 %v340_v23  ;;  %v306_v42 = vld [vmem:[%s10885_s28 + $0x12] sm:$0xff]  ;;  %v7925_v48 = vld [vmem:[%s10869_s3 + $0x20c] ss:$16 sps:$4 sm:$0xff]   ;;  %vm2683_vm10 = vcmask 254976   ;;  %vm3254_vm11 = vcmask 523264   ;;  %vm6385_vm12 = vcmask 1040384  }
  0x6b   :  { %938 = vmatprep.subr.bf16.mxu0 %v7907_v28  ;;  %v309_v47 = vpack.c.bf16 %v307_v43, %v306_v42  ;;  %v7923_v49 = vld [vmem:[%s10869_s3 + $0x208] ss:$16 sps:$4 sm:$0xff]   ;;  %v7926_v50 = vld [vmem:[%s10869_s3 + $0x220] ss:$16 sps:$4 sm:$0xff]   ;;  %v7928_v51 = vld [vmem:[%s10869_s3 + $0x224] ss:$16 sps:$4 sm:$0xff]  }
  0x6c   :  { %890 = vmatpush1.bf16.msra.mxu1 %v7908_v31  ;;  %v7929_v52 = vld [vmem:[%s10869_s3 + $0x228] ss:$16 sps:$4 sm:$0xff]   ;;  %v7931_v53 = vld [vmem:[%s10869_s3 + $0x22c] ss:$16 sps:$4 sm:$0xff]   ;;  %v7934_v54 = vld [vmem:[%s10869_s3 + $0x244] ss:$16 sps:$4 sm:$0xff]  }
  0x6d   :  { %6713 = vmatmul.mubr.msk.bf16.gmra.mrb[4].mxu0 %vm154_vm1, %v120_v26  ;;  %891 = vmatprep.subr.bf16.mxu1 %v7916_v33  ;;  %v7937_v55 = vld [vmem:[%s10869_s3 + $0x24c] ss:$16 sps:$4 sm:$0xff]   ;;  %v7932_v56 = vld [vmem:[%s10869_s3 + $0x240] ss:$16 sps:$4 sm:$0xff]   ;;  %v7935_v57 = vld [vmem:[%s10869_s3 + $0x248] ss:$16 sps:$4 sm:$0xff]   ;;  %v416_v26 = vlaneseq }
  0x6e   :  { %377 = vmatprep.mubr.bf16.mxu0 %v8859_v0  ;;  %v7940_v58 = vld [vmem:[%s10869_s3 + $0x264] ss:$16 sps:$4 sm:$0xff]   ;;  %v7943_v59 = vld [vmem:[%s10869_s3 + $0x26c] ss:$16 sps:$4 sm:$0xff]   ;;  %v7938_v60 = vld [vmem:[%s10869_s3 + $0x260] ss:$16 sps:$4 sm:$0xff]  }
  0x6f   :  { %6706 = vmatmul.mubr.msk.bf16.gmra.mrb[4].mxu1 %vm154_vm1, %v130_v35  ;;  %v7941_v61 = vld [vmem:[%s10869_s3 + $0x268] ss:$16 sps:$4 sm:$0xff]   ;;  %v7946_v62 = vld [vmem:[%s10869_s3 + $0x284] ss:$16 sps:$4 sm:$0xff]   ;;  %v7949_v63 = vld [vmem:[%s10869_s3 + $0x28c] ss:$16 sps:$4 sm:$0xff]  }
  0x70   :  { %892 = vmatpush1.bf16.msra.mxu1 %v7914_v37  ;;  %v7944_v1 = vld [vmem:[%s10869_s3 + $0x280] ss:$16 sps:$4 sm:$0xff]   ;;  %v7947_v2 = vld [vmem:[%s10869_s3 + $0x288] ss:$16 sps:$4 sm:$0xff]   ;;  %v7952_v3 = vld [vmem:[%s10869_s3 + $0x2a4] ss:$16 sps:$4 sm:$0xff]  }
  0x71   :  { %893 = vmatprep.subr.bf16.mxu1 %v7922_v40  ;;  %v7955_v4 = vld [vmem:[%s10869_s3 + $0x2ac] ss:$16 sps:$4 sm:$0xff]   ;;  %v7950_v5 = vld [vmem:[%s10869_s3 + $0x2a0] ss:$16 sps:$4 sm:$0xff]   ;;  %v7953_v6 = vld [vmem:[%s10869_s3 + $0x2a8] ss:$16 sps:$4 sm:$0xff]  }
  0x72   :  { %v7958_v7 = vld [vmem:[%s10869_s3 + $0x2c4] ss:$16 sps:$4 sm:$0xff]   ;;  %v7961_v8 = vld [vmem:[%s10869_s3 + $0x2cc] ss:$16 sps:$4 sm:$0xff]   ;;  %v7956_v9 = vld [vmem:[%s10869_s3 + $0x2c0] ss:$16 sps:$4 sm:$0xff]  }
  0x73   :  { %v7959_v10 = vld [vmem:[%s10869_s3 + $0x2c8] ss:$16 sps:$4 sm:$0xff]   ;;  %v7962_v11 = vld [vmem:[%s10869_s3 + $0x2e0] ss:$16 sps:$4 sm:$0xff]   ;;  %v7964_v12 = vld [vmem:[%s10869_s3 + $0x2e4] ss:$16 sps:$4 sm:$0xff]  }
  0x74   :  { %894 = vmatpush1.bf16.msra.mxu1 %v7920_v41  ;;  %v7965_v13 = vld [vmem:[%s10869_s3 + $0x2e8] ss:$16 sps:$4 sm:$0xff]   ;;  %v7967_v14 = vld [vmem:[%s10869_s3 + $0x2ec] ss:$16 sps:$4 sm:$0xff]   ;;  %v7970_v15 = vld [vmem:[%s10869_s3 + $0x304] ss:$16 sps:$4 sm:$0xff]  }
  0x75   :  { %6723 = vmatmul.mubr.msk.bf16.vlgmr.msra.gmra.mrb[0].mxu0 %vm154_vm1, %v308_v38  ;;  %895 = vmatprep.subr.bf16.mxu1 %v7928_v51  ;;  %v7973_v16 = vld [vmem:[%s10869_s3 + $0x30c] ss:$16 sps:$4 sm:$0xff]   ;;  %v7968_v17 = vld [vmem:[%s10869_s3 + $0x300] ss:$16 sps:$4 sm:$0xff]   ;;  %v7971_v18 = vld [vmem:[%s10869_s3 + $0x308] ss:$16 sps:$4 sm:$0xff]  }
  0x76   :  { %387 = vmatprep.mubr.bf16.mxu0 %v8859_v0  ;;  %939 = vmatpush1.bf16.msra.mxu0 %v7905_v36  ;;  %v7976_v19 = vld [vmem:[%s10869_s3 + $0x324] ss:$16 sps:$4 sm:$0xff]   ;;  %v7979_v20 = vld [vmem:[%s10869_s3 + $0x32c] ss:$16 sps:$4 sm:$0xff]   ;;  %v7974_v21 = vld [vmem:[%s10869_s3 + $0x320] ss:$16 sps:$4 sm:$0xff]  }
  0x77   :  { %940 = vmatprep.subr.bf16.mxu0 %v7913_v39  ;;  %v7977_v22 = vld [vmem:[%s10869_s3 + $0x328] ss:$16 sps:$4 sm:$0xff]   ;;  %v7982_v23 = vld [vmem:[%s10869_s3 + $0x4] ss:$16 sps:$4 sm:$0xff]   ;;  %v7985_v24 = vld [vmem:[%s10869_s3 + $0xc] ss:$16 sps:$4 sm:$0xff]  }
  0x78   :  { %896 = vmatpush1.bf16.msra.mxu1 %v7926_v50  ;;  %v9268_v30 = vshrl.u32 %v416_v26, 7  ;;  %v414_v33 = vld [vmem:[#allocation6] ss:$2 sm:$0x3]  ;;  %vm8862_vm13 = vmmov 0   ;;  %vm6590_vm14 = vcmask 130048  }
  0x79   :  { %897 = vmatprep.subr.bf16.mxu1 %v7934_v54  ;;  %v435_v36 = vld [vmem:[#allocation6 + $0x1] ss:$2 sm:$0x3]  ;;  %vm6664_vm15 = vcmask 74752  }
  0x7a   :  { %941 = vmatpush1.bf16.msra.mxu0 %v7911_v44  ;;  %v9271_v31 = vsub.s32 0, %v9268_v30  ;;  %v9274_v34 = vsub.s32 1, %v9268_v30 }
  0x7b   :  { %942 = vmatprep.subr.bf16.mxu0 %v7919_v45 }
  0x7c   :  { %898 = vmatpush1.bf16.msra.mxu1 %v7932_v56  ;;  %v419_v41 = vrot.slane %v414_v33, %v9271_v31  ;;  %v423_v44 = vrot.slane %v414_v33, %v9274_v34  ;;  %v444_v51 = vrot.slane %v435_v36, %v9274_v34 }
  0x7d   :  { %6724 = vmatmul.mubr.msk.bf16.gmra.mrb[4].mxu0 %vm154_vm1, %v309_v47  ;;  %899 = vmatprep.subr.bf16.mxu1 %v7940_v58  ;;  %v440_v47 = vrot.slane %v435_v36, %v9271_v31 }
  0x7e   :  { %943 = vmatpush1.bf16.msra.mxu0 %v7917_v46 }
  0x7f   :  { %944 = vmatprep.subr.bf16.mxu0 %v7925_v48 }
  0x80   :  { %900 = vmatpush1.bf16.msra.mxu1 %v7938_v60 }
  0x81   :  { %901 = vmatprep.subr.bf16.mxu1 %v7946_v62 }
  0x82   :  { %945 = vmatpush1.bf16.msra.mxu0 %v7923_v49 }
  0x83   :  { %946 = vmatprep.subr.bf16.mxu0 %v7931_v53 }
  0x84   :  { %902 = vmatpush1.bf16.msra.mxu1 %v7944_v1 }
  0x85   :  { %903 = vmatprep.subr.bf16.mxu1 %v7952_v3 }
  0x86   :  { %947 = vmatpush1.bf16.msra.mxu0 %v7929_v52 }
  0x87   :  { %948 = vmatprep.subr.bf16.mxu0 %v7937_v55 }
  0x88   :  { %904 = vmatpush1.bf16.msra.mxu1 %v7950_v5 }
  0x89   :  { %905 = vmatprep.subr.bf16.mxu1 %v7958_v7 }
  0x8a   :  { %949 = vmatpush1.bf16.msra.mxu0 %v7935_v57 }
  0x8b   :  { %950 = vmatprep.subr.bf16.mxu0 %v7943_v59 }
  0x8c   :  { %906 = vmatpush1.bf16.msra.mxu1 %v7956_v9 }
  0x8d   :  { %907 = vmatprep.subr.bf16.mxu1 %v7964_v12 }
  0x8e   :  { %951 = vmatpush1.bf16.msra.mxu0 %v7941_v61 }
  0x8f   :  { %952 = vmatprep.subr.bf16.mxu0 %v7949_v63 }
  0x90   :  { %908 = vmatpush1.bf16.msra.mxu1 %v7962_v11 }
  0x91   :  { %909 = vmatprep.subr.bf16.mxu1 %v7970_v15 }
  0x92   :  { %953 = vmatpush1.bf16.msra.mxu0 %v7947_v2 }
  0x93   :  { %954 = vmatprep.subr.bf16.mxu0 %v7955_v4 }
  0x94   :  { %910 = vmatpush1.bf16.msra.mxu1 %v7968_v17 }
  0x95   :  { %911 = vmatprep.subr.bf16.mxu1 %v7976_v19 }
  0x96   :  { %955 = vmatpush1.bf16.msra.mxu0 %v7953_v6 }
  0x97   :  { %956 = vmatprep.subr.bf16.mxu0 %v7961_v8 }
  0x98   :  { %912 = vmatpush1.bf16.msra.mxu1 %v7974_v21 }
  0x99   :  { %1255 = vmatprep.subr.bf16.mxu1 %v7982_v23 }
  0x9a   :  { %957 = vmatpush1.bf16.msra.mxu0 %v7959_v10 }
  0x9b   :  { %958 = vmatprep.subr.bf16.mxu0 %v7967_v14 }
  0x9e   :  { %959 = vmatpush1.bf16.msra.mxu0 %v7965_v13 }
  0x9f   :  { %960 = vmatprep.subr.bf16.mxu0 %v7973_v16 }
  0xa2   :  { %961 = vmatpush1.bf16.msra.mxu0 %v7971_v18 }
  0xa3   :  { %962 = vmatprep.subr.bf16.mxu0 %v7979_v20 }
  0xa6   :  { %963 = vmatpush1.bf16.msra.mxu0 %v7977_v22 }
  0xa7   :  { %1306 = vmatprep.subr.bf16.mxu0 %v7985_v24 }
 0x13a   :  { %v202_v25 = vpop.f32.mrb[0].mxu1 }
 0x13b   :  { %v204_v27 = vpop.f32.mrb[1].mxu1 }
 0x13c   :  { %v206_v28 = vpop.f32.mrb[2].mxu1 }
 0x13d   :  { %v208_v29 = vpop.f32.mrb[3].mxu1 }
 0x142   :  { %v212_v32 = vpop.f32.mrb[4].mxu1 }
 0x143   :  { %v214_v35 = vpop.f32.mrb[5].mxu1 }
 0x144   :  { %v216_v37 = vpop.f32.mrb[6].mxu1 }
 0x145   :  { %v218_v39 = vpop.f32.mrb[7].mxu1 }
 0x148   :  { %v379_v38 = vpop.f32.mrb[0].mxu0 }
 0x149   :  { %v7744_v40 = vadd.f32 %v379_v38, %v202_v25  ;;  %v381_v42 = vpop.f32.mrb[1].mxu0 }
 0x14a   :  { %v7745_v43 = vadd.f32 %v381_v42, %v204_v27  ;;  %v383_v45 = vpop.f32.mrb[2].mxu0 }
 0x14b   :  { %v406_v46 = vmax.f32 %v7744_v40, 0.0  ;;  %v7746_v48 = vadd.f32 %v383_v45, %v206_v28  ;;  %v385_v49 = vpop.f32.mrb[3].mxu0 }
 0x14c   :  { %v407_v50 = vmax.f32 %v7745_v43, 0.0  ;;  %v7747_v52 = vadd.f32 %v385_v49, %v208_v29 }
 0x14d   :  { %v426_v53 = vmul.f32 %v419_v41, %v406_v46  ;;  %v408_v54 = vmax.f32 %v7746_v48, 0.0 }
 0x14e   :  { %v427_v55 = vmul.f32 %v423_v44, %v407_v50  ;;  %v409_v56 = vmax.f32 %v7747_v52, 0.0 }
 0x14f   :  { %v447_v57 = vadd.f32 %v440_v47, %v426_v53  ;;  %v428_v58 = vmul.f32 %v419_v41, %v408_v54  ;;  %v7980_v54 = vld [vmem:[%s10869_s3] ss:$16 sps:$4 sm:$0xff]  }
 0x150   :  { %v448_v59 = vadd.f32 %v444_v51, %v427_v55  ;;  %v429_v60 = vmul.f32 %v423_v44, %v409_v56  ;;  %v389_v61 = vpop.f32.mrb[4].mxu0  ;;  %v7983_v55 = vld [vmem:[%s10869_s3 + $0x8] ss:$16 sps:$4 sm:$0xff]  }
 0x151   :  { %455 = vst [vmem:[#allocation2] sm:$0xff] %v447_v57  ;;  %v449_v62 = vadd.f32 %v440_v47, %v428_v58  ;;  %v7748_v63 = vadd.f32 %v389_v61, %v212_v32  ;;  %v391_v1 = vpop.f32.mrb[5].mxu0  ;;  %v7986_v61 = vld [vmem:[%s10869_s3 + $0x20] ss:$16 sps:$4 sm:$0xff]  }
 0x152   :  { %457 = vst.msk [vmem:[#allocation2 + $0x8] sm:$0xff] %vm456_vm2, %v448_v59  ;;  %v450_v2 = vadd.f32 %v444_v51, %v429_v60  ;;  %v7749_v3 = vadd.f32 %v391_v1, %v214_v35  ;;  %v393_v4 = vpop.f32.mrb[6].mxu0  ;;  %v7988_v59 = vld [vmem:[%s10869_s3 + $0x24] ss:$16 sps:$4 sm:$0xff]   ;;  %v7991_v60 = vld [vmem:[%s10869_s3 + $0x2c] ss:$16 sps:$4 sm:$0xff]  }
 0x153   :  { %v7750_v5 = vadd.f32 %v393_v4, %v216_v37  ;;  %v395_v6 = vpop.f32.mrb[7].mxu0  ;;  %v9281_v7 = vpack.c.bf16 %v449_v62, %v447_v57  ;;  %v410_v17 = vmax.f32 %v7748_v63, 0.0  ;;  %v7994_v63 = vld [vmem:[%s10869_s3 + $0x44] ss:$16 sps:$4 sm:$0xff]   ;;  %v7997_v1 = vld [vmem:[%s10869_s3 + $0x4c] ss:$16 sps:$4 sm:$0xff]  }
 0x154   :  { %459 = vst.msk [vmem:[#allocation2 + $0x18] sm:$0xff] %vm456_vm2, %v450_v2  ;;  %v411_v8 = vmax.f32 %v7749_v3, 0.0  ;;  %v7751_v9 = vadd.f32 %v395_v6, %v218_v39  ;;  %v7992_v3 = vld [vmem:[%s10869_s3 + $0x40] ss:$16 sps:$4 sm:$0xff]   ;;  %v7995_v4 = vld [vmem:[%s10869_s3 + $0x48] ss:$16 sps:$4 sm:$0xff]  }
 0x155   :  { %v412_v10 = vmax.f32 %v7750_v5, 0.0  ;;  %v430_v25 = vmul.f32 %v419_v41, %v410_v17  ;;  %v8012_v17 = vld [vmem:[%s10869_s3 + $0xa4] ss:$16 sps:$4 sm:$0xff]  }
 0x156   :  { %v431_v11 = vmul.f32 %v423_v44, %v411_v8  ;;  %v413_v12 = vmax.f32 %v7751_v9, 0.0  ;;  %v8000_v8 = vld [vmem:[%s10869_s3 + $0x64] ss:$16 sps:$4 sm:$0xff]   ;;  %v8003_v9 = vld [vmem:[%s10869_s3 + $0x6c] ss:$16 sps:$4 sm:$0xff]  }
 0x157   :  { %v432_v13 = vmul.f32 %v419_v41, %v412_v10  ;;  %v9289_v28 = vadd.f32 %v440_v47, %v430_v25  ;;  %v8019_v25 = vld [vmem:[%s10869_s3 + $0xc8] ss:$16 sps:$4 sm:$0xff]  }
 0x158   :  { %v452_v14 = vadd.f32 %v444_v51, %v431_v11  ;;  %v433_v15 = vmul.f32 %v423_v44, %v413_v12  ;;  %v527_v16 = vld [vmem:[#allocation2] sm:$0xfe]  ;;  %v8001_v12 = vld [vmem:[%s10869_s3 + $0x68] ss:$16 sps:$4 sm:$0xff]  }
 0x159   :  { %v453_v18 = vadd.f32 %v440_v47, %v432_v13  ;;  %v528_v19 = vld [vmem:[#allocation2 + $0x8] sm:$0xfe]  ;;  %v531_v22 = vpack.c.bf16 %v449_v62, %v527_v16  ;;  %v1357_v24 = vld [vmem:[#allocation2] sm:$0xfc] }
 0x15a   :  { %461 = vst.msk [vmem:[#allocation2 + $0x28] sm:$0xff] %vm456_vm2, %v452_v14  ;;  %v454_v20 = vadd.f32 %v444_v51, %v433_v15  ;;  %v1361_v29 = vpack.c.bf16 %v449_v62, %v1357_v24  ;;  %v7989_v62 = vld [vmem:[%s10869_s3 + $0x28] ss:$16 sps:$4 sm:$0xff]   ;;  %v7998_v11 = vld [vmem:[%s10869_s3 + $0x60] ss:$16 sps:$4 sm:$0xff]  }
 0x15b   :  { %462 = vst [vmem:[#allocation2 + $0x30] sm:$0x3] %v453_v18  ;;  %v9285_v21 = vld [vmem:[#allocation2 + $0x18] sm:$0xff]  ;;  %v592_v26 = vshll.u32 %v531_v22, 16  ;;  %v590_v41 = vshrl.u32 %v531_v22, 16  ;;  %v466_v6 = vld [vmem:[#allocation2 + $0x8] sm:$0xff] }
 0x15c   :  { %464 = vst.msk [vmem:[#allocation2 + $0x38] sm:$0x3] %vm463_vm3, %v454_v20  ;;  %v532_v23 = vpack.c.bf16 %v9285_v21, %v528_v19  ;;  %v1423_v44 = vrot.slane %v1361_v29, 1  ;;  %v472_v10 = vpack.c.bf16 %v9285_v21, %v466_v6  ;;  %v8006_v13 = vld [vmem:[%s10869_s3 + $0x84] ss:$16 sps:$4 sm:$0xff]  }
 0x15d   :  { %v594_v38 = vrot.slane %v592_v26, 1  ;;  %v8009_v14 = vld [vmem:[%s10869_s3 + $0x8c] ss:$16 sps:$4 sm:$0xff]   ;;  %v8004_v15 = vld [vmem:[%s10869_s3 + $0x80] ss:$16 sps:$4 sm:$0xff]  }
 0x15e   :  { %v604_v27 = vshll.u32 %v532_v23, 16  ;;  %v602_v46 = vshrl.u32 %v532_v23, 16  ;;  %v8007_v16 = vld [vmem:[%s10869_s3 + $0x88] ss:$16 sps:$4 sm:$0xff]   ;;  %v8015_v18 = vld [vmem:[%s10869_s3 + $0xac] ss:$16 sps:$4 sm:$0xff]  }
 0x15f   :  { %v595_v48 = vor.u32 %v594_v38, %v590_v41  ;;  %v8010_v19 = vld [vmem:[%s10869_s3 + $0xa0] ss:$16 sps:$4 sm:$0xff]   ;;  %v8013_v20 = vld [vmem:[%s10869_s3 + $0xa8] ss:$16 sps:$4 sm:$0xff]   ;;  %v8018_v22 = vld [vmem:[%s10869_s3 + $0xc4] ss:$16 sps:$4 sm:$0xff]  }
 0x160   :  { %v606_v42 = vrot.slane %v604_v27, 1  ;;  %v8021_v23 = vld [vmem:[%s10869_s3 + $0xcc] ss:$16 sps:$4 sm:$0xff]   ;;  %v8016_v24 = vld [vmem:[%s10869_s3 + $0xc0] ss:$16 sps:$4 sm:$0xff]  }
 0x161   :  { %v9291_v35 = vld [vmem:[#allocation2 + $0x28] sm:$0xff]  ;;  %v8024_v26 = vld [vmem:[%s10869_s3 + $0xe4] ss:$16 sps:$4 sm:$0xff]   ;;  %v8022_v29 = vld [vmem:[%s10869_s3 + $0xe0] ss:$16 sps:$4 sm:$0xff]  }
 0x162   :  { %v529_v32 = vld [vmem:[#allocation2 + $0x30] sm:$0x1]  ;;  %v607_v51 = vor.u32 %v606_v42, %v602_v46  ;;  %v8027_v27 = vld [vmem:[%s10869_s3 + $0xec] ss:$16 sps:$4 sm:$0xff]   ;;  %v8031_v38 = vld [vmem:[%s10869_s3 + $0x108] ss:$16 sps:$4 sm:$0xff]  }
 0x163   :  { %v1359_v33 = vld [vmem:[#allocation2 + $0x30] sm:$0x3]  ;;  %v530_v36 = vld [vmem:[#allocation2 + $0x38] sm:$0x1]  ;;  %v533_v37 = vpack.c.bf16 %v529_v32, %v9289_v28 }
 0x164   :  { %v1363_v39 = vpack.c.bf16 %v1359_v33, %v9289_v28  ;;  %v534_v40 = vpack.c.bf16 %v530_v36, %v9291_v35  ;;  %v8025_v32 = vld [vmem:[%s10869_s3 + $0xe8] ss:$16 sps:$4 sm:$0xff]   ;;  %v8030_v33 = vld [vmem:[%s10869_s3 + $0x104] ss:$16 sps:$4 sm:$0xff]   ;;  %v8033_v36 = vld [vmem:[%s10869_s3 + $0x10c] ss:$16 sps:$4 sm:$0xff]  }
 0x165   :  { %v597_v43 = vshll.u32 %v533_v37, 16  ;;  %v613_v2 = vshrl.u32 %v533_v37, 16  ;;  %v8028_v37 = vld [vmem:[%s10869_s3 + $0x100] ss:$16 sps:$4 sm:$0xff]   ;;  %v8037_v41 = vld [vmem:[%s10869_s3 + $0x128] ss:$16 sps:$4 sm:$0xff]  }
 0x166   :  { %v9296_v45 = vrot.slane %v1363_v39, 1  ;;  %v609_v47 = vshll.u32 %v534_v40, 16  ;;  %v616_v53 = vshrl.u32 %v534_v40, 16  ;;  %v8036_v39 = vld [vmem:[%s10869_s3 + $0x124] ss:$16 sps:$4 sm:$0xff]  }
 0x167   :  { %v599_v49 = vrot.slane %v597_v43, 1  ;;  %v8039_v40 = vld [vmem:[%s10869_s3 + $0x12c] ss:$16 sps:$4 sm:$0xff]   ;;  %v8034_v42 = vld [vmem:[%s10869_s3 + $0x120] ss:$16 sps:$4 sm:$0xff]  }
 0x168   :  { %v9300_v50 = vsel %vm1422_vm4, %v1423_v44, %v9296_v45  ;;  %v611_v52 = vrot.slane %v609_v47, 1  ;;  %v8042_v43 = vld [vmem:[%s10869_s3 + $0x144] ss:$16 sps:$4 sm:$0xff]   ;;  %v8045_v44 = vld [vmem:[%s10869_s3 + $0x14c] ss:$16 sps:$4 sm:$0xff]  }
 0x169   :  { %v600_v56 = vsel %vm588_vm5, %v595_v48, %v599_v49  ;;  %v615_v5 = vor.u32 %v613_v2, %v599_v49  ;;  %v8040_v46 = vld [vmem:[%s10869_s3 + $0x140] ss:$16 sps:$4 sm:$0xff]   ;;  %v8043_v47 = vld [vmem:[%s10869_s3 + $0x148] ss:$16 sps:$4 sm:$0xff]   ;;  %v8048_v48 = vld [vmem:[%s10869_s3 + $0x164] ss:$16 sps:$4 sm:$0xff]  }
 0x16a   :  { %v612_v57 = vsel %vm588_vm5, %v607_v51, %v611_v52  ;;  %v618_v58 = vor.u32 %v616_v53, %v611_v52  ;;  %v8051_v49 = vld [vmem:[%s10869_s3 + $0x16c] ss:$16 sps:$4 sm:$0xff]   ;;  %v8046_v51 = vld [vmem:[%s10869_s3 + $0x160] ss:$16 sps:$4 sm:$0xff]   ;;  %v8049_v52 = vld [vmem:[%s10869_s3 + $0x168] ss:$16 sps:$4 sm:$0xff]  }
 0x16b   :  { %6829 = vmatprep.mubr.msk.bf16.mxu1 %vm456_vm2, %v612_v57  ;;  %6831 = vmatprep.mubr.msk.bf16.mxu0 %vm456_vm2, %v612_v57  ;;  %v8054_v53 = vld [vmem:[%s10869_s3 + $0x184] ss:$16 sps:$4 sm:$0xff]  }
 0x16c   :  { %920 = vmatmul.mubr.bf16.vlgmr.msra.gmra.mrb[8].mxu1 %v600_v56  ;;  %971 = vmatmul.mubr.bf16.vlgmr.msra.gmra.mrb[8].mxu0 %v600_v56  ;;  %v8055_v56 = vld [vmem:[%s10869_s3 + $0x188] ss:$16 sps:$4 sm:$0xff]   ;;  %v8060_v57 = vld [vmem:[%s10869_s3 + $0x344] ss:$16 sps:$4 sm:$0xff]  }
 0x16d   :  { %1256 = vmatpush1.bf16.msra.mxu1 %v7980_v54  ;;  %1307 = vmatpush1.bf16.msra.mxu0 %v7983_v55  ;;  %v8057_v54 = vld [vmem:[%s10869_s3 + $0x18c] ss:$16 sps:$4 sm:$0xff]   ;;  %v8052_v55 = vld [vmem:[%s10869_s3 + $0x180] ss:$16 sps:$4 sm:$0xff]  }
 0x16e   :  { %6830 = vmatprep.mubr.msk.bf16.mxu1 %vm456_vm2, %v618_v58  ;;  %6832 = vmatprep.mubr.msk.bf16.mxu0 %vm456_vm2, %v618_v58  ;;  %v8063_v58 = vld [vmem:[%s10869_s3 + $0x34c] ss:$16 sps:$4 sm:$0xff]  }
 0x16f   :  { %1257 = vmatprep.subr.bf16.mxu1 %v7988_v59  ;;  %1308 = vmatprep.subr.bf16.mxu0 %v7991_v60  ;;  %v1360_v59 = vld [vmem:[#allocation2 + $0x38] sm:$0x3]  ;;  %v8058_v60 = vld [vmem:[%s10869_s3 + $0x340] ss:$16 sps:$4 sm:$0xff]  }
 0x170   :  { %v1364_v2 = vpack.c.bf16 %v1360_v59, %v9291_v35  ;;  %v8133_v59 = vld [vmem:[%s10869_s3 + $0x4c8] ss:$16 sps:$4 sm:$0xff]  }
 0x171   :  { %1258 = vmatpush1.bf16.msra.mxu1 %v7986_v61  ;;  %1309 = vmatpush1.bf16.msra.mxu0 %v7989_v62  ;;  %v8061_v61 = vld [vmem:[%s10869_s3 + $0x348] ss:$16 sps:$4 sm:$0xff]   ;;  %v474_v62 = vpack.c.bf16 %v9291_v35, %v9291_v35  ;;  %v8075_v35 = vld [vmem:[%s10869_s3 + $0x38c] ss:$16 sps:$4 sm:$0xff]  }
 0x172   :  { %1259 = vmatprep.subr.bf16.mxu1 %v7994_v63  ;;  %1310 = vmatprep.subr.bf16.mxu0 %v7997_v1  ;;  %v8066_v63 = vld [vmem:[%s10869_s3 + $0x364] ss:$16 sps:$4 sm:$0xff]   ;;  %v8069_v1 = vld [vmem:[%s10869_s3 + $0x36c] ss:$16 sps:$4 sm:$0xff]  }
 0x174   :  { %930 = vmatmul.mubr.bf16.gmra.mrb[12].mxu1 %v615_v5  ;;  %981 = vmatmul.mubr.bf16.gmra.mrb[12].mxu0 %v615_v5  ;;  %v8067_v5 = vld [vmem:[%s10869_s3 + $0x368] ss:$16 sps:$4 sm:$0xff]  }
 0x175   :  { %1260 = vmatpush1.bf16.msra.mxu1 %v7992_v3  ;;  %1311 = vmatpush1.bf16.msra.mxu0 %v7995_v4  ;;  %v1358_v3 = vld [vmem:[#allocation2 + $0x8] sm:$0xfc]  ;;  %v8064_v4 = vld [vmem:[%s10869_s3 + $0x360] ss:$16 sps:$4 sm:$0xff]  }
 0x176   :  { %6885 = vmatprep.mubr.msk.bf16.mxu1 %vm456_vm2, %v472_v10  ;;  %6887 = vmatprep.mubr.msk.bf16.mxu0 %vm456_vm2, %v472_v10  ;;  %v1362_v6 = vpack.c.bf16 %v9285_v21, %v1358_v3  ;;  %v8070_v21 = vld [vmem:[%s10869_s3 + $0x380] ss:$16 sps:$4 sm:$0xff]   ;;  %v8073_v10 = vld [vmem:[%s10869_s3 + $0x388] ss:$16 sps:$4 sm:$0xff]  }
 0x177   :  { %1261 = vmatprep.subr.bf16.mxu1 %v8000_v8  ;;  %1312 = vmatprep.subr.bf16.mxu0 %v8003_v9  ;;  %v9499_v8 = vrot.slane %v1364_v2, 1  ;;  %v473_v9 = vpack.c.bf16 %v9289_v28, %v9289_v28 }
 0x179   :  { %1262 = vmatpush1.bf16.msra.mxu1 %v7998_v11  ;;  %1313 = vmatpush1.bf16.msra.mxu0 %v8001_v12  ;;  %v1426_v11 = vrot.slane %v1362_v6, 1  ;;  %v8078_v12 = vld [vmem:[%s10869_s3 + $0x3a4] ss:$16 sps:$4 sm:$0xff]  }
 0x17a   :  { %1263 = vmatprep.subr.bf16.mxu1 %v8006_v13  ;;  %1314 = vmatprep.subr.bf16.mxu0 %v8009_v14  ;;  %v8081_v13 = vld [vmem:[%s10869_s3 + $0x3ac] ss:$16 sps:$4 sm:$0xff]   ;;  %v8076_v14 = vld [vmem:[%s10869_s3 + $0x3a0] ss:$16 sps:$4 sm:$0xff]  }
 0x17b   :  { %v1428_v28 = vsel %vm1422_vm4, %v1426_v11, %v9499_v8 }
 0x17d   :  { %1264 = vmatpush1.bf16.msra.mxu1 %v8004_v15  ;;  %1315 = vmatpush1.bf16.msra.mxu0 %v8007_v16  ;;  %v8079_v15 = vld [vmem:[%s10869_s3 + $0x3a8] ss:$16 sps:$4 sm:$0xff]   ;;  %v8084_v16 = vld [vmem:[%s10869_s3 + $0x3c4] ss:$16 sps:$4 sm:$0xff]  }
 0x17e   :  { %1265 = vmatprep.subr.bf16.mxu1 %v8012_v17  ;;  %1316 = vmatprep.subr.bf16.mxu0 %v8015_v18  ;;  %v8087_v17 = vld [vmem:[%s10869_s3 + $0x3cc] ss:$16 sps:$4 sm:$0xff]   ;;  %v8082_v18 = vld [vmem:[%s10869_s3 + $0x3c0] ss:$16 sps:$4 sm:$0xff]  }
 0x181   :  { %1266 = vmatpush1.bf16.msra.mxu1 %v8010_v19  ;;  %1317 = vmatpush1.bf16.msra.mxu0 %v8013_v20  ;;  %v8085_v19 = vld [vmem:[%s10869_s3 + $0x3c8] ss:$16 sps:$4 sm:$0xff]   ;;  %v8090_v20 = vld [vmem:[%s10869_s3 + $0x3e4] ss:$16 sps:$4 sm:$0xff]  }
 0x182   :  { %1267 = vmatprep.subr.bf16.mxu1 %v8018_v22  ;;  %1318 = vmatprep.subr.bf16.mxu0 %v8021_v23  ;;  %v8093_v22 = vld [vmem:[%s10869_s3 + $0x3ec] ss:$16 sps:$4 sm:$0xff]   ;;  %v8088_v23 = vld [vmem:[%s10869_s3 + $0x3e0] ss:$16 sps:$4 sm:$0xff]  }
 0x185   :  { %1268 = vmatpush1.bf16.msra.mxu1 %v8016_v24  ;;  %1319 = vmatpush1.bf16.msra.mxu0 %v8019_v25  ;;  %v8091_v24 = vld [vmem:[%s10869_s3 + $0x3e8] ss:$16 sps:$4 sm:$0xff]   ;;  %v8096_v25 = vld [vmem:[%s10869_s3 + $0x404] ss:$16 sps:$4 sm:$0xff]  }
 0x186   :  { %1269 = vmatprep.subr.bf16.mxu1 %v8024_v26  ;;  %1320 = vmatprep.subr.bf16.mxu0 %v8027_v27  ;;  %v8099_v26 = vld [vmem:[%s10869_s3 + $0x40c] ss:$16 sps:$4 sm:$0xff]   ;;  %v8094_v27 = vld [vmem:[%s10869_s3 + $0x400] ss:$16 sps:$4 sm:$0xff]  }
 0x189   :  { %1270 = vmatpush1.bf16.msra.mxu1 %v8022_v29  ;;  %1321 = vmatpush1.bf16.msra.mxu0 %v8025_v32  ;;  %v8097_v29 = vld [vmem:[%s10869_s3 + $0x408] ss:$16 sps:$4 sm:$0xff]   ;;  %v8102_v32 = vld [vmem:[%s10869_s3 + $0x424] ss:$16 sps:$4 sm:$0xff]  }
 0x18a   :  { %1271 = vmatprep.subr.bf16.mxu1 %v8030_v33  ;;  %1322 = vmatprep.subr.bf16.mxu0 %v8033_v36  ;;  %v8105_v33 = vld [vmem:[%s10869_s3 + $0x42c] ss:$16 sps:$4 sm:$0xff]   ;;  %v8100_v36 = vld [vmem:[%s10869_s3 + $0x420] ss:$16 sps:$4 sm:$0xff]  }
 0x18d   :  { %1272 = vmatpush1.bf16.msra.mxu1 %v8028_v37  ;;  %1323 = vmatpush1.bf16.msra.mxu0 %v8031_v38  ;;  %v8103_v37 = vld [vmem:[%s10869_s3 + $0x428] ss:$16 sps:$4 sm:$0xff]   ;;  %v8108_v38 = vld [vmem:[%s10869_s3 + $0x444] ss:$16 sps:$4 sm:$0xff]  }
 0x18e   :  { %1273 = vmatprep.subr.bf16.mxu1 %v8036_v39  ;;  %1324 = vmatprep.subr.bf16.mxu0 %v8039_v40  ;;  %v8111_v39 = vld [vmem:[%s10869_s3 + $0x44c] ss:$16 sps:$4 sm:$0xff]   ;;  %v8106_v40 = vld [vmem:[%s10869_s3 + $0x440] ss:$16 sps:$4 sm:$0xff]  }
 0x191   :  { %1274 = vmatpush1.bf16.msra.mxu1 %v8034_v42  ;;  %1325 = vmatpush1.bf16.msra.mxu0 %v8037_v41  ;;  %v8109_v42 = vld [vmem:[%s10869_s3 + $0x448] ss:$16 sps:$4 sm:$0xff]   ;;  %v8114_v41 = vld [vmem:[%s10869_s3 + $0x464] ss:$16 sps:$4 sm:$0xff]  }
 0x192   :  { %1275 = vmatprep.subr.bf16.mxu1 %v8042_v43  ;;  %1326 = vmatprep.subr.bf16.mxu0 %v8045_v44  ;;  %v8117_v43 = vld [vmem:[%s10869_s3 + $0x46c] ss:$16 sps:$4 sm:$0xff]   ;;  %v8112_v44 = vld [vmem:[%s10869_s3 + $0x460] ss:$16 sps:$4 sm:$0xff]  }
 0x195   :  { %1276 = vmatpush1.bf16.msra.mxu1 %v8040_v46  ;;  %1327 = vmatpush1.bf16.msra.mxu0 %v8043_v47  ;;  %v8115_v46 = vld [vmem:[%s10869_s3 + $0x468] ss:$16 sps:$4 sm:$0xff]   ;;  %v8120_v47 = vld [vmem:[%s10869_s3 + $0x484] ss:$16 sps:$4 sm:$0xff]  }
 0x196   :  { %1277 = vmatprep.subr.bf16.mxu1 %v8048_v48  ;;  %1328 = vmatprep.subr.bf16.mxu0 %v8051_v49  ;;  %v8123_v48 = vld [vmem:[%s10869_s3 + $0x48c] ss:$16 sps:$4 sm:$0xff]   ;;  %v8118_v49 = vld [vmem:[%s10869_s3 + $0x480] ss:$16 sps:$4 sm:$0xff]  }
 0x199   :  { %1278 = vmatpush1.bf16.msra.mxu1 %v8046_v51  ;;  %1329 = vmatpush1.bf16.msra.mxu0 %v8049_v52  ;;  %v8121_v51 = vld [vmem:[%s10869_s3 + $0x488] ss:$16 sps:$4 sm:$0xff]   ;;  %v8126_v52 = vld [vmem:[%s10869_s3 + $0x4a4] ss:$16 sps:$4 sm:$0xff]  }
 0x19a   :  { %1279 = vmatprep.subr.bf16.mxu1 %v8054_v53  ;;  %1330 = vmatprep.subr.bf16.mxu0 %v8057_v54  ;;  %v8129_v53 = vld [vmem:[%s10869_s3 + $0x4ac] ss:$16 sps:$4 sm:$0xff]   ;;  %v8124_v54 = vld [vmem:[%s10869_s3 + $0x4a0] ss:$16 sps:$4 sm:$0xff]  }
 0x19d   :  { %1280 = vmatpush1.bf16.msra.mxu1 %v8052_v55  ;;  %1331 = vmatpush1.bf16.msra.mxu0 %v8055_v56  ;;  %v8127_v55 = vld [vmem:[%s10869_s3 + $0x4a8] ss:$16 sps:$4 sm:$0xff]   ;;  %v8132_v56 = vld [vmem:[%s10869_s3 + $0x4c4] ss:$16 sps:$4 sm:$0xff]  }
 0x19e   :  { %1697 = vmatprep.subr.bf16.mxu1 %v8060_v57  ;;  %1748 = vmatprep.subr.bf16.mxu0 %v8063_v58  ;;  %v8135_v57 = vld [vmem:[%s10869_s3 + $0x4cc] ss:$16 sps:$4 sm:$0xff]   ;;  %v8130_v58 = vld [vmem:[%s10869_s3 + $0x4c0] ss:$16 sps:$4 sm:$0xff]  }
 0x1a0   :  { %1288 = vmatmul.mubr.bf16.vlgmr.msra.gmra.mrb[8].mxu1 %v9281_v7  ;;  %1339 = vmatmul.mubr.bf16.vlgmr.msra.gmra.mrb[8].mxu0 %v9281_v7  ;;  %v8072_v7 = vld [vmem:[%s10869_s3 + $0x384] ss:$16 sps:$4 sm:$0xff]  }
 0x1a1   :  { %6886 = vmatprep.mubr.msk.bf16.mxu1 %vm456_vm2, %v474_v62  ;;  %6888 = vmatprep.mubr.msk.bf16.mxu0 %vm456_vm2, %v474_v62  ;;  %v9648_v62 = vsub.s32 3, %v9268_v30 }
 0x1a2   :  { %1698 = vmatpush1.bf16.msra.mxu1 %v8058_v60  ;;  %1749 = vmatpush1.bf16.msra.mxu0 %v8061_v61  ;;  %v8860_v60 = vmov 0.0   ;;  %v9645_v61 = vsub.s32 2, %v9268_v30 }
 0x1a3   :  { %1699 = vmatprep.subr.bf16.mxu1 %v8066_v63  ;;  %1750 = vmatprep.subr.bf16.mxu0 %v8069_v1  ;;  %6676 = vst [vmem:[#allocation15] sm:$0x3] %v8860_v60  ;;  %v1858_v63 = vld [vmem:[#allocation9 + $0x1] ss:$2 sm:$0xf] }
 0x1a6   :  { %1700 = vmatpush1.bf16.msra.mxu1 %v8064_v4  ;;  %1751 = vmatpush1.bf16.msra.mxu0 %v8067_v5 }
 0x1a7   :  { %1701 = vmatprep.subr.bf16.mxu1 %v8072_v7  ;;  %1752 = vmatprep.subr.bf16.mxu0 %v8075_v35  ;;  %v1863_v7 = vrot.slane %v1858_v63, %v9271_v31 }
 0x1a8   :  { %1298 = vmatmul.mubr.bf16.gmra.mrb[12].mxu1 %v473_v9  ;;  %1349 = vmatmul.mubr.bf16.gmra.mrb[12].mxu0 %v473_v9 }
 0x1a9   :  { %6993 = vmatprep.mubr.msk.bf16.mxu1 %vm456_vm2, %v1428_v28  ;;  %6995 = vmatprep.mubr.msk.bf16.mxu0 %vm456_vm2, %v1428_v28 }
 0x1aa   :  { %1702 = vmatpush1.bf16.msra.mxu1 %v8070_v21  ;;  %1753 = vmatpush1.bf16.msra.mxu0 %v8073_v10  ;;  %v1867_v10 = vrot.slane %v1858_v63, %v9274_v34 }
 0x1ab   :  { %1703 = vmatprep.subr.bf16.mxu1 %v8078_v12  ;;  %1754 = vmatprep.subr.bf16.mxu0 %v8081_v13  ;;  %v1875_v12 = vrot.slane %v1858_v63, %v9648_v62 }
 0x1ae   :  { %1704 = vmatpush1.bf16.msra.mxu1 %v8076_v14  ;;  %1755 = vmatpush1.bf16.msra.mxu0 %v8079_v15 }
 0x1af   :  { %1705 = vmatprep.subr.bf16.mxu1 %v8084_v16  ;;  %1756 = vmatprep.subr.bf16.mxu0 %v8087_v17 }
 0x1b2   :  { %1706 = vmatpush1.bf16.msra.mxu1 %v8082_v18  ;;  %1757 = vmatpush1.bf16.msra.mxu0 %v8085_v19 }
 0x1b3   :  { %1707 = vmatprep.subr.bf16.mxu1 %v8090_v20  ;;  %1758 = vmatprep.subr.bf16.mxu0 %v8093_v22 }
 0x1b6   :  { %1708 = vmatpush1.bf16.msra.mxu1 %v8088_v23  ;;  %1759 = vmatpush1.bf16.msra.mxu0 %v8091_v24 }
 0x1b7   :  { %1709 = vmatprep.subr.bf16.mxu1 %v8096_v25  ;;  %1760 = vmatprep.subr.bf16.mxu0 %v8099_v26 }
 0x1ba   :  { %1710 = vmatpush1.bf16.msra.mxu1 %v8094_v27  ;;  %1761 = vmatpush1.bf16.msra.mxu0 %v8097_v29 }
 0x1bb   :  { %1711 = vmatprep.subr.bf16.mxu1 %v8102_v32  ;;  %1762 = vmatprep.subr.bf16.mxu0 %v8105_v33 }
 0x1be   :  { %1712 = vmatpush1.bf16.msra.mxu1 %v8100_v36  ;;  %1763 = vmatpush1.bf16.msra.mxu0 %v8103_v37 }
 0x1bf   :  { %1713 = vmatprep.subr.bf16.mxu1 %v8108_v38  ;;  %1764 = vmatprep.subr.bf16.mxu0 %v8111_v39 }
 0x1c2   :  { %1714 = vmatpush1.bf16.msra.mxu1 %v8106_v40  ;;  %1765 = vmatpush1.bf16.msra.mxu0 %v8109_v42 }
 0x1c3   :  { %1715 = vmatprep.subr.bf16.mxu1 %v8114_v41  ;;  %1766 = vmatprep.subr.bf16.mxu0 %v8117_v43 }
 0x1c6   :  { %1716 = vmatpush1.bf16.msra.mxu1 %v8112_v44  ;;  %1767 = vmatpush1.bf16.msra.mxu0 %v8115_v46 }
 0x1c7   :  { %1717 = vmatprep.subr.bf16.mxu1 %v8120_v47  ;;  %1768 = vmatprep.subr.bf16.mxu0 %v8123_v48 }
 0x1ca   :  { %1718 = vmatpush1.bf16.msra.mxu1 %v8118_v49  ;;  %1769 = vmatpush1.bf16.msra.mxu0 %v8121_v51 }
 0x1cb   :  { %1719 = vmatprep.subr.bf16.mxu1 %v8126_v52  ;;  %1770 = vmatprep.subr.bf16.mxu0 %v8129_v53 }
 0x1ce   :  { %1720 = vmatpush1.bf16.msra.mxu1 %v8124_v54  ;;  %1771 = vmatpush1.bf16.msra.mxu0 %v8127_v55 }
 0x1cf   :  { %1721 = vmatprep.subr.bf16.mxu1 %v8132_v56  ;;  %1772 = vmatprep.subr.bf16.mxu0 %v8135_v57 }
 0x1d2   :  { %1722 = vmatpush1.bf16.msra.mxu1 %v8130_v58  ;;  %1773 = vmatpush1.bf16.msra.mxu0 %v8133_v59 }
 0x1d5   :  { %1730 = vmatmul.mubr.bf16.vlgmr.msra.gmra.mrb[8].mxu1 %v9300_v50  ;;  %1781 = vmatmul.mubr.bf16.vlgmr.msra.gmra.mrb[8].mxu0 %v9300_v50  ;;  %v1823_v50 = vld [vmem:[#allocation9] ss:$2 sm:$0xf] }
 0x1d6   :  { %6994 = vmatprep.mubr.msk.bf16.mxu1 %vm456_vm2, %v9499_v8  ;;  %6996 = vmatprep.mubr.msk.bf16.mxu0 %vm456_vm2, %v9499_v8  ;;  %v1828_v1 = vrot.slane %v1823_v50, %v9271_v31  ;;  %v1836_v2 = vrot.slane %v1823_v50, %v9645_v61  ;;  %v1832_v4 = vrot.slane %v1823_v50, %v9274_v34 }
 0x1d7   :  { %v1840_v5 = vrot.slane %v1823_v50, %v9648_v62  ;;  %v1871_v8 = vrot.slane %v1858_v63, %v9645_v61 }
 0x1dd   :  { %1740 = vmatmul.mubr.bf16.gmra.mrb[12].mxu1 %v9296_v45  ;;  %1791 = vmatmul.mubr.bf16.gmra.mrb[12].mxu0 %v9296_v45 }
 0x1de   :  { %2399 = vmatprep.mubr.bf16.mxu0 %v8859_v0  ;;  %1995 = vmatprep.mubr.f32.mxu1 %v8860_v60 }
 0x2a8   :  { %v1731_v45 = vpop.f32.mrb[8].mxu1  ;;  %v1782_v3 = vpop.f32.mrb[8].mxu0 }
 0x2a9   :  { %v1811_v6 = vmax.f32 %v1731_v45, 0.0  ;;  %v1813_v35 = vmax.f32 %v1782_v3, 0.0  ;;  %v1733_v9 = vpop.f32.mrb[9].mxu1  ;;  %v1784_v30 = vpop.f32.mrb[9].mxu0 }
 0x2aa   :  { %v1812_v21 = vmax.f32 %v1733_v9, 0.0  ;;  %v1814_v11 = vmax.f32 %v1784_v30, 0.0  ;;  %v1735_v13 = vpop.f32.mrb[10].mxu1  ;;  %v1786_v28 = vpop.f32.mrb[10].mxu0 }
 0x2ab   :  { %v1845_v14 = vmul.f32 %v1828_v1, %v1811_v6  ;;  %v1847_v15 = vmul.f32 %v1836_v2, %v1813_v35  ;;  %v1815_v16 = vmax.f32 %v1735_v13, 0.0  ;;  %v1817_v17 = vmax.f32 %v1786_v28, 0.0  ;;  %v1737_v18 = vpop.f32.mrb[11].mxu1  ;;  %v1788_v19 = vpop.f32.mrb[11].mxu0 }
 0x2ac   :  { %v1846_v20 = vmul.f32 %v1832_v4, %v1812_v21  ;;  %v1848_v22 = vmul.f32 %v1840_v5, %v1814_v11  ;;  %v1816_v23 = vmax.f32 %v1737_v18, 0.0  ;;  %v1818_v24 = vmax.f32 %v1788_v19, 0.0  ;;  %v8144_v18 = vld [vmem:[%s10872_s6 + $0x60] sm:$0xff]  }
 0x2ad   :  { %v1880_v25 = vadd.f32 %v1863_v7, %v1845_v14  ;;  %v1882_v26 = vadd.f32 %v1871_v8, %v1847_v15  ;;  %v1849_v27 = vmul.f32 %v1828_v1, %v1815_v16  ;;  %v1851_v29 = vmul.f32 %v1836_v2, %v1817_v17  ;;  %v1922_v14 = vld [vmem:[%s10871_s5] sm:$0xff]  ;;  %v8141_v15 = vld [vmem:[%s10872_s6 + $0x10] sm:$0xff]   ;;  %v8142_v16 = vld [vmem:[%s10872_s6 + $0x58] sm:$0xff]  }
 0x2ae   :  { %v1881_v32 = vadd.f32 %v1867_v10, %v1846_v20  ;;  %v1883_v33 = vadd.f32 %v1875_v12, %v1848_v22  ;;  %v1850_v36 = vmul.f32 %v1832_v4, %v1816_v23  ;;  %v1852_v37 = vmul.f32 %v1840_v5, %v1818_v24  ;;  %v8143_v17 = vld [vmem:[%s10872_s6 + $0x18] sm:$0xff]   ;;  %v8145_v19 = vld [vmem:[%s10872_s6 + $0x20] sm:$0xff]   ;;  %v8146_v20 = vld [vmem:[%s10872_s6 + $0x68] sm:$0xff]  }
 0x2af   :  { %v1916_v38 = vmax.f32 %v1880_v25, %v1882_v26  ;;  %v1884_v39 = vadd.f32 %v1863_v7, %v1849_v27  ;;  %v1886_v40 = vadd.f32 %v1871_v8, %v1851_v29  ;;  %v8147_v22 = vld [vmem:[%s10872_s6 + $0x28] sm:$0xff]   ;;  %v8148_v23 = vld [vmem:[%s10872_s6 + $0x70] sm:$0xff]   ;;  %v8150_v25 = vld [vmem:[%s10872_s6 + $0x78] sm:$0xff]  }
 0x2b0   :  { %v1885_v42 = vadd.f32 %v1867_v10, %v1850_v36  ;;  %v1887_v41 = vadd.f32 %v1875_v12, %v1852_v37  ;;  %v1741_v43 = vpop.f32.mrb[12].mxu1  ;;  %v1792_v44 = vpop.f32.mrb[12].mxu0  ;;  %v1917_v46 = vmax.f32 %v1881_v32, %v1883_v33  ;;  %v8149_v24 = vld [vmem:[%s10872_s6 + $0x30] sm:$0xff]   ;;  %v8151_v26 = vld [vmem:[%s10872_s6 + $0x38] sm:$0xff]   ;;  %v8152_v27 = vld [vmem:[%s10873_s7 + $0x60] ss:$8 sps:$4 sm:$0xff]  }
 0x2b1   :  { %v1918_v47 = vmax.f32 %v1884_v39, %v1886_v40  ;;  %v1819_v48 = vmax.f32 %v1741_v43, 0.0  ;;  %v1821_v49 = vmax.f32 %v1792_v44, 0.0  ;;  %v1743_v51 = vpop.f32.mrb[13].mxu1  ;;  %v1794_v52 = vpop.f32.mrb[13].mxu0  ;;  %v8154_v29 = vld [vmem:[%s10873_s7 + $0x64] ss:$8 sps:$4 sm:$0xff]  }
 0x2b2   :  { %v1820_v53 = vmax.f32 %v1743_v51, 0.0  ;;  %v1822_v54 = vmax.f32 %v1794_v52, 0.0  ;;  %v1745_v55 = vpop.f32.mrb[14].mxu1  ;;  %v1796_v56 = vpop.f32.mrb[14].mxu0  ;;  %v1919_v57 = vmax.f32 %v1885_v42, %v1887_v41  ;;  %v8157_v32 = vld [vmem:[%s10873_s7 + $0x74] ss:$8 sps:$4 sm:$0xff]   ;;  %2367 = vmatprep.subr.bf16.mxu0 %v8154_v29 }
 0x2b3   :  { %v1853_v58 = vmul.f32 %v1828_v1, %v1819_v48  ;;  %v1855_v59 = vmul.f32 %v1836_v2, %v1821_v49  ;;  %v1746_v50 = vpop.f32.mrb[15].mxu1  ;;  %v1797_v63 = vpop.f32.mrb[15].mxu0  ;;  %v7685_v45 = vpack.c.bf16 %v1918_v47, %v1916_v38  ;;  %v1923_v1 = vld [vmem:[%s10871_s5 + $0x8] sm:$0xf]  ;;  %v8136_v2 = vld [vmem:[%s10872_s6 + $0x40] sm:$0xff]   ;;  %2368 = vmatpush1.bf16.msra.mxu0 %v8152_v27 }
 0x2b4   :  { %v1854_v3 = vmul.f32 %v1832_v4, %v1820_v53  ;;  %v1856_v6 = vmul.f32 %v1840_v5, %v1822_v54  ;;  %v7683_v35 = vpack.c.bf16 %v1919_v57, %v1917_v46  ;;  %v6999_v4 = vld [vmem:[%s10871_s5 + $0x10] sm:$0xff]  ;;  %v8137_v5 = vld [vmem:[%s10872_s6] sm:$0xff]   ;;  %2369 = vmatprep.subr.bf16.mxu0 %v8157_v32 }
 0x2b5   :  { %v1888_v9 = vadd.f32 %v1863_v7, %v1853_v58  ;;  %v1890_v30 = vadd.f32 %v1871_v8, %v1855_v59  ;;  %v8138_v7 = vld [vmem:[%s10872_s6 + $0x48] sm:$0xff]   ;;  %v7000_v8 = vld [vmem:[%s10871_s5 + $0x18] sm:$0xf]  ;;  %v8163_v54 = vld [vmem:[%s10873_s7 + $0x94] ss:$8 sps:$4 sm:$0xff]  }
 0x2b6   :  { %v1889_v21 = vadd.f32 %v1867_v10, %v1854_v3  ;;  %v1891_v11 = vadd.f32 %v1875_v12, %v1856_v6  ;;  %7684 = vmatprep.subr.bf16.mxu1 %v7683_v35  ;;  %v8139_v10 = vld [vmem:[%s10872_s6 + $0x8] sm:$0xff]   ;;  %v8140_v12 = vld [vmem:[%s10872_s6 + $0x50] sm:$0xff]  }
 0x2b7   :  { %v1920_v13 = vmax.f32 %v1888_v9, %v1890_v30  ;;  %7686 = vmatpush1.bf16.msra.mxu1 %v7685_v45  ;;  %v8155_v33 = vld [vmem:[%s10873_s7 + $0x70] ss:$8 sps:$4 sm:$0xff]   ;;  %v8160_v36 = vld [vmem:[%s10873_s7 + $0x84] ss:$8 sps:$4 sm:$0xff]   ;;  %v8158_v37 = vld [vmem:[%s10873_s7 + $0x80] ss:$8 sps:$4 sm:$0xff]  }
 0x2b8   :  { %v1921_v28 = vmax.f32 %v1889_v21, %v1891_v11  ;;  %2370 = vmatpush1.bf16.msra.mxu0 %v8155_v33  ;;  %v8161_v55 = vld [vmem:[%s10873_s7 + $0x90] ss:$8 sps:$4 sm:$0xff]   ;;  %v8166_v56 = vld [vmem:[%s10873_s7 + $0xa4] ss:$8 sps:$4 sm:$0xff]   ;;  %v8164_v57 = vld [vmem:[%s10873_s7 + $0xa0] ss:$8 sps:$4 sm:$0xff]  }
 0x2b9   :  { %2371 = vmatprep.subr.bf16.mxu0 %v8160_v36  ;;  %v8169_v58 = vld [vmem:[%s10873_s7 + $0xb4] ss:$8 sps:$4 sm:$0xff]   ;;  %v8167_v59 = vld [vmem:[%s10873_s7 + $0xb0] ss:$8 sps:$4 sm:$0xff]   ;;  %v8172_v50 = vld [vmem:[%s10873_s7 + $0x4] ss:$8 sps:$4 sm:$0xff]  }
 0x2ba   :  { %1935 = vmatprep.subr.mxu1 %v1921_v28  ;;  %v8224_v63 = vld [vmem:[#allocation12 + $0xa0] ss:$8 sps:$4 sm:$0xff]   ;;  %v8229_v3 = vld [vmem:[#allocation12 + $0xb4] ss:$8 sps:$4 sm:$0xff]   ;;  %v8227_v6 = vld [vmem:[#allocation12 + $0xb0] ss:$8 sps:$4 sm:$0xff]  }
 0x2bb   :  { %1936 = vmatpush1.msra.mxu1 %v1920_v13  ;;  %v8230_v9 = vld [vmem:[#allocation12 + $0xc0] ss:$8 sps:$4 sm:$0xff]   ;;  %v8235_v30 = vld [vmem:[#allocation12 + $0xd4] ss:$8 sps:$4 sm:$0xff]   ;;  %v8233_v21 = vld [vmem:[#allocation12 + $0xd0] ss:$8 sps:$4 sm:$0xff]  }
 0x2bc   :  { %6997 = vmatmul.mubr.msk.f32.vlgmr.msra.gmra.mrb[16].mxu1 %vm1924_vm6, %v1922_v14  ;;  %7688 = vmatprep.subr.bf16.mxu1 %v7683_v35  ;;  %v8232_v35 = vld [vmem:[#allocation12 + $0xc4] ss:$8 sps:$4 sm:$0xff]   ;;  %v8188_v27 = vld [vmem:[%s10873_s7 + $0xc0] ss:$8 sps:$4 sm:$0xff]   ;;  %v8193_v32 = vld [vmem:[%s10873_s7 + $0xd4] ss:$8 sps:$4 sm:$0xff]  }
 0x2bd   :  { %7690 = vmatpush1.bf16.msra.mxu1 %v7685_v45  ;;  %2001 = vmatprep.mubr.f32.mxu1 %v8860_v60  ;;  %v8226_v45 = vld [vmem:[#allocation12 + $0xa4] ss:$8 sps:$4 sm:$0xff]   ;;  %v8191_v33 = vld [vmem:[%s10873_s7 + $0xd0] ss:$8 sps:$4 sm:$0xff]  }
 0x2be   :  { %2021 = vmatprep.subr.mxu1 %v1921_v28  ;;  %2372 = vmatpush1.bf16.msra.mxu0 %v8158_v37  ;;  %v8196_v36 = vld [vmem:[%s10873_s7 + $0xe4] ss:$8 sps:$4 sm:$0xff]   ;;  %v8194_v37 = vld [vmem:[%s10873_s7 + $0xe0] ss:$8 sps:$4 sm:$0xff]  }
 0x2bf   :  { %2373 = vmatprep.subr.bf16.mxu0 %v8163_v54  ;;  %v7150_v54 = vld [vmem:[%s10885_s28 + $0x29] sm:$0xff] }
 0x2c0   :  { %6998 = vmatmul.mubr.msk.f32.gmra.mrb[18].mxu1 %vm1924_vm6, %v1923_v1 }
 0x2c1   :  { %2022 = vmatpush1.msra.mxu1 %v1920_v13  ;;  %2081 = vmatprep.mubr.f32.mxu1 %v8860_v60 }
 0x2c2   :  { %7613 = vmatprep.subr.bf16.mxu1 %v8136_v2  ;;  %2374 = vmatpush1.bf16.msra.mxu0 %v8161_v55 }
 0x2c3   :  { %2375 = vmatprep.subr.bf16.mxu0 %v8166_v56  ;;  %v8214_v56 = vld [vmem:[%s10867_s1 + $0x4] ss:$8 sps:$4 sm:$0xff]  }
 0x2c4   :  { %7001 = vmatmul.mubr.msk.f32.vlgmr.msra.gmra.mrb[20].mxu1 %vm1924_vm6, %v6999_v4  ;;  %v8170_v4 = vld [vmem:[%s10873_s7] ss:$8 sps:$4 sm:$0xff]  }
 0x2c5   :  { %2087 = vmatprep.mubr.f32.mxu1 %v8860_v60  ;;  %7614 = vmatpush3.bf16.msra.mxu1 %v8137_v5 }
 0x2c6   :  { %7615 = vmatprep.subr.bf16.mxu1 %v8138_v7  ;;  %2376 = vmatpush1.bf16.msra.mxu0 %v8164_v57 }
 0x2c7   :  { %2377 = vmatprep.subr.bf16.mxu0 %v8169_v58  ;;  %v8212_v58 = vld [vmem:[%s10867_s1] ss:$8 sps:$4 sm:$0xff]  }
 0x2c8   :  { %7002 = vmatmul.mubr.msk.f32.gmra.mrb[22].mxu1 %vm1924_vm6, %v7000_v8 }
 0x2c9   :  { %7616 = vmatpush3.bf16.msra.mxu1 %v8139_v10  ;;  %v8175_v10 = vld [vmem:[%s10873_s7 + $0x14] ss:$8 sps:$4 sm:$0xff]  }
 0x2ca   :  { %7617 = vmatprep.subr.bf16.mxu1 %v8140_v12  ;;  %2378 = vmatpush1.bf16.msra.mxu0 %v8167_v59  ;;  %v8173_v12 = vld [vmem:[%s10873_s7 + $0x10] ss:$8 sps:$4 sm:$0xff]   ;;  %v8215_v59 = vld [vmem:[%s10867_s1 + $0x14] ss:$8 sps:$4 sm:$0x3f]  }
 0x2cb   :  { %2473 = vmatprep.subr.bf16.mxu0 %v8172_v50  ;;  %v8217_v50 = vld [vmem:[%s10867_s1 + $0x10] ss:$8 sps:$4 sm:$0x3f]  }
 0x2cd   :  { %7618 = vmatpush3.bf16.msra.mxu1 %v8141_v15  ;;  %v8178_v15 = vld [vmem:[%s10873_s7 + $0x24] ss:$8 sps:$4 sm:$0xff]  }
 0x2ce   :  { %7619 = vmatprep.subr.bf16.mxu1 %v8142_v16  ;;  %v8176_v16 = vld [vmem:[%s10873_s7 + $0x20] ss:$8 sps:$4 sm:$0xff]  }
 0x2d1   :  { %7620 = vmatpush3.bf16.msra.mxu1 %v8143_v17  ;;  %v8181_v17 = vld [vmem:[%s10873_s7 + $0x34] ss:$8 sps:$4 sm:$0xff]  }
 0x2d2   :  { %7621 = vmatprep.subr.bf16.mxu1 %v8144_v18  ;;  %v8179_v18 = vld [vmem:[%s10873_s7 + $0x30] ss:$8 sps:$4 sm:$0xff]  }
 0x2d5   :  { %7622 = vmatpush3.bf16.msra.mxu1 %v8145_v19  ;;  %v8184_v19 = vld [vmem:[%s10873_s7 + $0x44] ss:$8 sps:$4 sm:$0xff]  }
 0x2d6   :  { %7623 = vmatprep.subr.bf16.mxu1 %v8146_v20  ;;  %v8182_v20 = vld [vmem:[%s10873_s7 + $0x40] ss:$8 sps:$4 sm:$0xff]  }
 0x2d9   :  { %7624 = vmatpush3.bf16.msra.mxu1 %v8147_v22  ;;  %v8187_v22 = vld [vmem:[%s10873_s7 + $0x54] ss:$8 sps:$4 sm:$0xff]  }
 0x2da   :  { %7625 = vmatprep.subr.bf16.mxu1 %v8148_v23  ;;  %v8185_v23 = vld [vmem:[%s10873_s7 + $0x50] ss:$8 sps:$4 sm:$0xff]  }
 0x2dd   :  { %7626 = vmatpush3.bf16.msra.mxu1 %v8149_v24  ;;  %v8190_v24 = vld [vmem:[%s10873_s7 + $0xc4] ss:$8 sps:$4 sm:$0xff]  }
 0x2de   :  { %7627 = vmatprep.subr.bf16.mxu1 %v8150_v25 }
 0x2e1   :  { %7628 = vmatpush3.bf16.msra.mxu1 %v8151_v26 }
 0x2e2   :  { %2854 = vmatprep.subr.bf16.mxu1 %v8226_v45  ;;  %v7152_v45 = vld [vmem:[%s10885_s28 + $0x39] sm:$0x3] }
 0x38f   :  { %v1997_v38 = vpop.f32.mrb[16].mxu1 }
 0x390   :  { %v1999_v39 = vpop.f32.mrb[17].mxu1 }
 0x393   :  { %v2003_v40 = vpop.f32.mrb[18].mxu1 }
 0x394   :  { %v2005_v42 = vpop.f32.mrb[19].mxu1 }
 0x397   :  { %v2083_v41 = vpop.f32.mrb[20].mxu1 }
 0x398   :  { %v2094_v43 = vmax.f32 %v1997_v38, %v2083_v41  ;;  %v2085_v44 = vpop.f32.mrb[21].mxu1  ;;  %v8199_v38 = vld [vmem:[%s10873_s7 + $0xf4] ss:$8 sps:$4 sm:$0xff]  }
 0x399   :  { %v2095_v46 = vmax.f32 %v1999_v39, %v2085_v44  ;;  %v8197_v39 = vld [vmem:[%s10873_s7 + $0xf0] ss:$8 sps:$4 sm:$0xff]   ;;  %v8205_v41 = vld [vmem:[%s10873_s7 + $0x114] ss:$8 sps:$4 sm:$0xff]   ;;  %v8208_v44 = vld [vmem:[%s10867_s1 + $0x24] ss:$8 sps:$4 sm:$0xff]  }
 0x39b   :  { %v2089_v47 = vpop.f32.mrb[22].mxu1 }
 0x39c   :  { %v2096_v48 = vmax.f32 %v2003_v40, %v2089_v47  ;;  %v2091_v49 = vpop.f32.mrb[23].mxu1  ;;  %v8202_v40 = vld [vmem:[%s10873_s7 + $0x104] ss:$8 sps:$4 sm:$0xff]  }
 0x39d   :  { %v2097_v51 = vmax.f32 %v2005_v42, %v2091_v49  ;;  %v8200_v42 = vld [vmem:[%s10873_s7 + $0x100] ss:$8 sps:$4 sm:$0xff]  }
 0x39e   :  { %v2098_v52 = vpack.c.bf16 %v2096_v48, %v2094_v43  ;;  %v8203_v43 = vld [vmem:[%s10873_s7 + $0x110] ss:$8 sps:$4 sm:$0xff]   ;;  %v8206_v48 = vld [vmem:[%s10867_s1 + $0x20] ss:$8 sps:$4 sm:$0xff]  }
 0x39f   :  { %v2099_v53 = vpack.c.bf16 %v2097_v51, %v2095_v46  ;;  %v8209_v51 = vld [vmem:[%s10867_s1 + $0x34] ss:$8 sps:$4 sm:$0x3f]  }
 0x3a1   :  { %2260 = vmatprep.mubr.bf16.mxu1 %v2099_v53  ;;  %v7149_v53 = vld [vmem:[%s10885_s28 + $0x21] sm:$0xff] }
 0x3a2   :  { %2261 = vmatmul.mubr.bf16.vlgmr.msra.gmra.mrb[24].mxu1 %v2098_v52  ;;  %v8211_v52 = vld [vmem:[%s10867_s1 + $0x30] ss:$8 sps:$4 sm:$0x3f]   ;;  %v3277_v57 = vpack.c.bf16 %v7150_v54, %v7149_v53  ;;  %v8301_v53 = vld [vmem:[%s10869_s3 + $0x2a4] ss:$16 sps:$4 sm:$0xff]  }
 0x3a3   :  { %2855 = vmatpush1.bf16.msra.mxu1 %v8224_v63  ;;  %v3308_v55 = vsel %vm161_vm0, %v8211_v52, 0  ;;  %v7151_v63 = vld [vmem:[%s10885_s28 + $0x31] sm:$0xff] }
 0x3a4   :  { %2856 = vmatprep.subr.bf16.mxu1 %v8229_v3  ;;  %v3391_v3 = vsel %vm161_vm0, %v8217_v50, 0  ;;  %v8293_v52 = vld [vmem:[%s10869_s3 + $0x280] ss:$16 sps:$4 sm:$0xff]   ;;  %v8319_v50 = vld [vmem:[%s10869_s3 + $0x304] ss:$16 sps:$4 sm:$0xff]  }
 0x3a5   :  { %v8299_v54 = vld [vmem:[%s10869_s3 + $0x2a0] ss:$16 sps:$4 sm:$0xff]  }
 0x3a7   :  { %2857 = vmatpush1.bf16.msra.mxu1 %v8227_v6  ;;  %v8220_v6 = vld [vmem:[%s10867_s1 + $0x44] ss:$8 sps:$4 sm:$0xff]  }
 0x3a8   :  { %2858 = vmatprep.subr.bf16.mxu1 %v8232_v35  ;;  %v3278_v35 = vpack.c.bf16 %v7152_v45, %v7151_v63  ;;  %v8323_v63 = vld [vmem:[%s10869_s3 + $0x320] ss:$16 sps:$4 sm:$0xff]   ;;  %v8325_v45 = vld [vmem:[%s10869_s3 + $0x324] ss:$16 sps:$4 sm:$0xff]  }
 0x3ab   :  { %2859 = vmatpush1.bf16.msra.mxu1 %v8230_v9  ;;  %v7145_v9 = vld [vmem:[%s10885_s28 + $0x20] sm:$0xff] }
 0x3ac   :  { %2860 = vmatprep.subr.bf16.mxu1 %v8235_v30  ;;  %v7146_v30 = vld [vmem:[%s10885_s28 + $0x28] sm:$0xff] }
 0x3af   :  { %2861 = vmatpush1.bf16.msra.mxu1 %v8233_v21  ;;  %v3267_v21 = vpack.c.bf16 %v7146_v30, %v7145_v9 }
 0x475   :  { %v7629_v11 = vpop.f32.mrb[24].mxu1 }
 0x476   :  { %v7630_v13 = vpop.f32.mrb[25].mxu1 }
 0x477   :  { %v7631_v28 = vadd.f32 %v7630_v13, %v7629_v11  ;;  %v7632_v14 = vpop.f32.mrb[26].mxu1  ;;  %v8218_v11 = vld [vmem:[%s10867_s1 + $0x40] ss:$8 sps:$4 sm:$0xff]   ;;  %v8221_v13 = vld [vmem:[%s10867_s1 + $0x54] ss:$8 sps:$4 sm:$0x3f]  }
 0x478   :  { %v7633_v1 = vpop.f32.mrb[27].mxu1 }
 0x479   :  { %2270 = vst.msk [vmem:[#allocation4] sm:$0xff] %vm2269_vm7, %v7631_v28  ;;  %v7634_v2 = vadd.f32 %v7633_v1, %v7632_v14  ;;  %v8223_v28 = vld [vmem:[%s10867_s1 + $0x50] ss:$8 sps:$4 sm:$0x3f]  }
 0x47a   :  { %v7147_v14 = vld [vmem:[%s10885_s28 + $0x30] sm:$0xff]  ;;  %v7148_v1 = vld [vmem:[%s10885_s28 + $0x38] sm:$0x3] }
 0x47b   :  { %2272 = vst.msk [vmem:[#allocation4 + $0x8] sm:$0xf] %vm2271_vm8, %v7634_v2  ;;  %v3484_v2 = vsel %vm161_vm0, %v8223_v28, 0 }
 0x480   :  { %v2273_v26 = vld [vmem:[#allocation4] sm:$0xff] }
 0x482   :  { %v2288_v5 = vld [vmem:[#allocation4 + $0x1] sm:$0xff]  ;;  %v2289_v7 = vld [vmem:[#allocation4 + $0x9] sm:$0x3] }
 0x483   :  { %v2290_v8 = vpack.c.bf16 %v2289_v7, %v2288_v5  ;;  %v2274_v25 = vld [vmem:[#allocation4 + $0x8] sm:$0x3]  ;;  %v2517_v47 = vld [vmem:[#allocation4 + $0xa] sm:$0x3] }
 0x484   :  { %v2275_v29 = vpack.c.bf16 %v2274_v25, %v2273_v26  ;;  %v2516_v46 = vld [vmem:[#allocation4 + $0x2] sm:$0xff]  ;;  %v7172_v7 = vld [vmem:[%s10885_s28 + $0x2a] sm:$0xff] }
 0x485   :  { %7043 = vmatmul.mubr.msk.bf16.vlgmr.msra.gmra.mrb[16].mxu0 %vm2269_vm7, %v2290_v8  ;;  %v2518_v49 = vpack.c.bf16 %v2517_v47, %v2516_v46  ;;  %v7171_v5 = vld [vmem:[%s10885_s28 + $0x22] sm:$0xff] }
 0x486   :  { %2474 = vmatpush1.bf16.msra.mxu0 %v8170_v4  ;;  %2505 = vmatprep.mubr.bf16.mxu0 %v8859_v0  ;;  %v3268_v4 = vpack.c.bf16 %v7148_v1, %v7147_v14  ;;  %v3453_v8 = vpack.c.bf16 %v7172_v7, %v7171_v5  ;;  %v8251_v25 = vld [vmem:[%s10869_s3 + $0x1a0] ss:$16 sps:$4 sm:$0xff]   ;;  %v8253_v26 = vld [vmem:[%s10869_s3 + $0x1a4] ss:$16 sps:$4 sm:$0xff]  }
 0x487   :  { %2475 = vmatprep.subr.bf16.mxu0 %v8175_v10  ;;  %v7173_v10 = vld [vmem:[%s10885_s28 + $0x32] sm:$0xff] }
 0x488   :  { %v8281_v46 = vld [vmem:[%s10869_s3 + $0x240] ss:$16 sps:$4 sm:$0xff]   ;;  %v8283_v47 = vld [vmem:[%s10869_s3 + $0x244] ss:$16 sps:$4 sm:$0xff]  }
 0x48a   :  { %2476 = vmatpush1.bf16.msra.mxu0 %v8173_v12  ;;  %v7174_v12 = vld [vmem:[%s10885_s28 + $0x3a] sm:$0x3] }
 0x48b   :  { %2477 = vmatprep.subr.bf16.mxu0 %v8178_v15  ;;  %v3454_v15 = vpack.c.bf16 %v7174_v12, %v7173_v10 }
 0x48e   :  { %2478 = vmatpush1.bf16.msra.mxu0 %v8176_v16  ;;  %v8238_v16 = vld [vmem:[#allocation12 + $0xe4] ss:$8 sps:$4 sm:$0xff]  }
 0x48f   :  { %2479 = vmatprep.subr.bf16.mxu0 %v8181_v17  ;;  %v8236_v17 = vld [vmem:[#allocation12 + $0xe0] ss:$8 sps:$4 sm:$0xff]   ;;  %2862 = vmatprep.subr.bf16.mxu1 %v8238_v16 }
 0x490   :  { %2863 = vmatpush1.bf16.msra.mxu1 %v8236_v17 }
 0x492   :  { %2480 = vmatpush1.bf16.msra.mxu0 %v8179_v18  ;;  %v8241_v18 = vld [vmem:[#allocation12 + $0xf4] ss:$8 sps:$4 sm:$0xff]  }
 0x493   :  { %2481 = vmatprep.subr.bf16.mxu0 %v8184_v19  ;;  %v8239_v19 = vld [vmem:[#allocation12 + $0xf0] ss:$8 sps:$4 sm:$0xff]   ;;  %2864 = vmatprep.subr.bf16.mxu1 %v8241_v18 }
 0x494   :  { %2865 = vmatpush1.bf16.msra.mxu1 %v8239_v19 }
 0x496   :  { %2482 = vmatpush1.bf16.msra.mxu0 %v8182_v20  ;;  %v8244_v20 = vld [vmem:[#allocation12 + $0x104] ss:$8 sps:$4 sm:$0xff]  }
 0x497   :  { %2483 = vmatprep.subr.bf16.mxu0 %v8187_v22  ;;  %v8242_v22 = vld [vmem:[#allocation12 + $0x100] ss:$8 sps:$4 sm:$0xff]   ;;  %2866 = vmatprep.subr.bf16.mxu1 %v8244_v20 }
 0x498   :  { %2867 = vmatpush1.bf16.msra.mxu1 %v8242_v22 }
 0x49a   :  { %2484 = vmatpush1.bf16.msra.mxu0 %v8185_v23  ;;  %v8247_v23 = vld [vmem:[#allocation12 + $0x114] ss:$8 sps:$4 sm:$0xff]  }
 0x49b   :  { %2595 = vmatprep.subr.bf16.mxu0 %v8190_v24  ;;  %v8245_v24 = vld [vmem:[#allocation12 + $0x110] ss:$8 sps:$4 sm:$0xff]   ;;  %2868 = vmatprep.subr.bf16.mxu1 %v8247_v23 }
 0x49c   :  { %2869 = vmatpush1.bf16.msra.mxu1 %v8245_v24 }
 0x49d   :  { %7056 = vmatmul.mubr.msk.bf16.vlgmr.msra.gmra.mrb[16].mxu0 %vm2269_vm7, %v2275_v29  ;;  %v8259_v29 = vld [vmem:[%s10869_s3 + $0x1c4] ss:$16 sps:$4 sm:$0xff]  }
 0x49e   :  { %2596 = vmatpush1.bf16.msra.mxu0 %v8188_v27  ;;  %2627 = vmatprep.mubr.bf16.mxu0 %v8859_v0  ;;  %v8250_v27 = vld [vmem:[#allocation12 + $0x124] ss:$8 sps:$4 sm:$0xff]  }
 0x49f   :  { %2597 = vmatprep.subr.bf16.mxu0 %v8193_v32  ;;  %v8257_v32 = vld [vmem:[%s10869_s3 + $0x1c0] ss:$16 sps:$4 sm:$0xff]   ;;  %2870 = vmatprep.subr.bf16.mxu1 %v8250_v27 }
 0x4a2   :  { %2598 = vmatpush1.bf16.msra.mxu0 %v8191_v33  ;;  %v8248_v33 = vld [vmem:[#allocation12 + $0x120] ss:$8 sps:$4 sm:$0xff]  }
 0x4a3   :  { %2599 = vmatprep.subr.bf16.mxu0 %v8196_v36  ;;  %v8256_v36 = vld [vmem:[#allocation12 + $0x134] ss:$8 sps:$4 sm:$0xff]   ;;  %2871 = vmatpush1.bf16.msra.mxu1 %v8248_v33 }
 0x4a4   :  { %2872 = vmatprep.subr.bf16.mxu1 %v8256_v36 }
 0x4a6   :  { %2600 = vmatpush1.bf16.msra.mxu0 %v8194_v37  ;;  %v8254_v37 = vld [vmem:[#allocation12 + $0x130] ss:$8 sps:$4 sm:$0xff]  }
 0x4a7   :  { %2601 = vmatprep.subr.bf16.mxu0 %v8199_v38  ;;  %2873 = vmatpush1.bf16.msra.mxu1 %v8254_v37  ;;  %v8262_v38 = vld [vmem:[#allocation12 + $0x4] ss:$8 sps:$4 sm:$0xff]  }
 0x4a8   :  { %2998 = vmatprep.subr.bf16.mxu1 %v8262_v38 }
 0x4aa   :  { %2602 = vmatpush1.bf16.msra.mxu0 %v8197_v39  ;;  %v8263_v39 = vld [vmem:[%s10869_s3 + $0x1e0] ss:$16 sps:$4 sm:$0xff]  }
 0x4ab   :  { %2603 = vmatprep.subr.bf16.mxu0 %v8202_v40  ;;  %v8265_v40 = vld [vmem:[%s10869_s3 + $0x1e4] ss:$16 sps:$4 sm:$0xff]  }
 0x4ae   :  { %2604 = vmatpush1.bf16.msra.mxu0 %v8200_v42  ;;  %v8269_v42 = vld [vmem:[%s10869_s3 + $0x200] ss:$16 sps:$4 sm:$0xff]  }
 0x4af   :  { %2605 = vmatprep.subr.bf16.mxu0 %v8205_v41  ;;  %v8271_v41 = vld [vmem:[%s10869_s3 + $0x204] ss:$16 sps:$4 sm:$0xff]  }
 0x4b2   :  { %2606 = vmatpush1.bf16.msra.mxu0 %v8203_v43  ;;  %v8275_v43 = vld [vmem:[%s10869_s3 + $0x220] ss:$16 sps:$4 sm:$0xff]  }
 0x4b3   :  { %3313 = vmatprep.subr.bf16.mxu0 %v8208_v44  ;;  %v8277_v44 = vld [vmem:[%s10869_s3 + $0x224] ss:$16 sps:$4 sm:$0xff]  }
 0x4b5   :  { %7081 = vmatmul.mubr.msk.bf16.vlgmr.msra.gmra.mrb[16].mxu0 %vm2269_vm7, %v2518_v49  ;;  %v8289_v49 = vld [vmem:[%s10869_s3 + $0x264] ss:$16 sps:$4 sm:$0xff]  }
 0x4b6   :  { %3314 = vmatpush1.bf16.msra.mxu0 %v8206_v48  ;;  %3345 = vmatprep.mubr.bf16.mxu0 %v8859_v0  ;;  %v8287_v48 = vld [vmem:[%s10869_s3 + $0x260] ss:$16 sps:$4 sm:$0xff]  }
 0x4b7   :  { %7161 = vmatprep.subr.msk.bf16.mxu0 %vm161_vm0, %v8209_v51  ;;  %v8295_v51 = vld [vmem:[%s10869_s3 + $0x284] ss:$16 sps:$4 sm:$0xff]  }
 0x4ba   :  { %3316 = vmatpush1.bf16.msra.mxu0 %v3308_v55  ;;  %v8307_v55 = vld [vmem:[%s10869_s3 + $0x2c4] ss:$16 sps:$4 sm:$0xff]  }
 0x4bb   :  { %3396 = vmatprep.subr.bf16.mxu0 %v8214_v56  ;;  %v8305_v56 = vld [vmem:[%s10869_s3 + $0x2c0] ss:$16 sps:$4 sm:$0xff]  }
 0x4bd   :  { %7162 = vmatmul.mubr.msk.bf16.vlgmr.msra.gmra.mrb[20].mxu0 %vm154_vm1, %v3277_v57  ;;  %v8311_v57 = vld [vmem:[%s10869_s3 + $0x2e0] ss:$16 sps:$4 sm:$0xff]  }
 0x4be   :  { %3355 = vmatprep.mubr.bf16.mxu0 %v8859_v0  ;;  %3397 = vmatpush1.bf16.msra.mxu0 %v8212_v58  ;;  %v8313_v58 = vld [vmem:[%s10869_s3 + $0x2e4] ss:$16 sps:$4 sm:$0xff]  }
 0x4bf   :  { %7168 = vmatprep.subr.msk.bf16.mxu0 %vm161_vm0, %v8215_v59  ;;  %v8317_v59 = vld [vmem:[%s10869_s3 + $0x300] ss:$16 sps:$4 sm:$0xff]  }
 0x4c2   :  { %3399 = vmatpush1.bf16.msra.mxu0 %v3391_v3  ;;  %v8331_v3 = vld [vmem:[%s10869_s3 + $0x4] ss:$16 sps:$4 sm:$0xff]  }
 0x4c3   :  { %3489 = vmatprep.subr.bf16.mxu0 %v8220_v6  ;;  %v2646_v6 = vld [vmem:[#allocation11] ss:$2 sm:$0x3] }
 0x4c4   :  { %v2651_v9 = vrot.slane %v2646_v6, %v9271_v31 }
 0x4c5   :  { %7163 = vmatmul.mubr.msk.bf16.gmra.mrb[24].mxu0 %vm154_vm1, %v3278_v35  ;;  %v2663_v35 = vld [vmem:[#allocation11 + $0x1] ss:$2 sm:$0x3] }
 0x4c6   :  { %3428 = vmatprep.mubr.bf16.mxu0 %v8859_v0  ;;  %v2672_v1 = vrot.slane %v2663_v35, %v9274_v34 }
 0x4cd   :  { %7169 = vmatmul.mubr.msk.bf16.vlgmr.msra.gmra.mrb[20].mxu0 %vm154_vm1, %v3267_v21  ;;  %v2655_v21 = vrot.slane %v2646_v6, %v9274_v34 }
 0x4ce   :  { %3438 = vmatprep.mubr.bf16.mxu0 %v8859_v0  ;;  %3490 = vmatpush1.bf16.msra.mxu0 %v8218_v11 }
 0x4cf   :  { %7183 = vmatprep.subr.msk.bf16.mxu0 %vm161_vm0, %v8221_v13  ;;  %v2668_v13 = vrot.slane %v2663_v35, %v9271_v31 }
 0x4d2   :  { %3492 = vmatpush1.bf16.msra.mxu0 %v3484_v2 }
 0x4d3   :  { %4026 = vmatprep.subr.bf16.mxu0 %v8253_v26 }
 0x4d5   :  { %7170 = vmatmul.mubr.msk.bf16.gmra.mrb[24].mxu0 %vm154_vm1, %v3268_v4 }
 0x4d6   :  { %3521 = vmatprep.mubr.bf16.mxu0 %v8859_v0 }
 0x4dd   :  { %7184 = vmatmul.mubr.msk.bf16.vlgmr.msra.gmra.mrb[20].mxu0 %vm154_vm1, %v3453_v8 }
 0x4de   :  { %3531 = vmatprep.mubr.bf16.mxu0 %v8859_v0  ;;  %4027 = vmatpush1.bf16.msra.mxu0 %v8251_v25 }
 0x4df   :  { %4028 = vmatprep.subr.bf16.mxu0 %v8259_v29 }
 0x4e2   :  { %4029 = vmatpush1.bf16.msra.mxu0 %v8257_v32 }
 0x4e3   :  { %4030 = vmatprep.subr.bf16.mxu0 %v8265_v40  ;;  %v8260_v40 = vld [vmem:[#allocation12] ss:$8 sps:$4 sm:$0xff]  }
 0x4e5   :  { %7185 = vmatmul.mubr.msk.bf16.gmra.mrb[24].mxu0 %vm154_vm1, %v3454_v15 }
 0x4e6   :  { %4031 = vmatpush1.bf16.msra.mxu0 %v8263_v39 }
 0x4e7   :  { %4032 = vmatprep.subr.bf16.mxu0 %v8271_v41  ;;  %v8268_v41 = vld [vmem:[#allocation12 + $0x14] ss:$8 sps:$4 sm:$0xff]  }
 0x4ea   :  { %4033 = vmatpush1.bf16.msra.mxu0 %v8269_v42 }
 0x4eb   :  { %4034 = vmatprep.subr.bf16.mxu0 %v8277_v44  ;;  %v8266_v44 = vld [vmem:[#allocation12 + $0x10] ss:$8 sps:$4 sm:$0xff]  }
 0x4ee   :  { %4035 = vmatpush1.bf16.msra.mxu0 %v8275_v43 }
 0x4ef   :  { %4036 = vmatprep.subr.bf16.mxu0 %v8283_v47  ;;  %v8272_v47 = vld [vmem:[#allocation12 + $0x20] ss:$8 sps:$4 sm:$0xff]  }
 0x4f2   :  { %4037 = vmatpush1.bf16.msra.mxu0 %v8281_v46  ;;  %v8274_v46 = vld [vmem:[#allocation12 + $0x24] ss:$8 sps:$4 sm:$0xff]  }
 0x4f3   :  { %4038 = vmatprep.subr.bf16.mxu0 %v8289_v49  ;;  %v8278_v49 = vld [vmem:[#allocation12 + $0x30] ss:$8 sps:$4 sm:$0xff]  }
 0x4f6   :  { %4039 = vmatpush1.bf16.msra.mxu0 %v8287_v48  ;;  %v8280_v48 = vld [vmem:[#allocation12 + $0x34] ss:$8 sps:$4 sm:$0xff]  }
 0x4f7   :  { %4040 = vmatprep.subr.bf16.mxu0 %v8295_v51  ;;  %v3558_v51 = vld [vmem:[#allocation6] ss:$2 sm:$0x3] }
 0x4fa   :  { %4041 = vmatpush1.bf16.msra.mxu0 %v8293_v52  ;;  %v8286_v52 = vld [vmem:[#allocation12 + $0x44] ss:$8 sps:$4 sm:$0xff]  }
 0x4fb   :  { %4042 = vmatprep.subr.bf16.mxu0 %v8301_v53  ;;  %v3578_v53 = vld [vmem:[#allocation6 + $0x1] ss:$2 sm:$0x3] }
 0x4fe   :  { %4043 = vmatpush1.bf16.msra.mxu0 %v8299_v54  ;;  %v3563_v54 = vrot.slane %v3558_v51, %v9271_v31 }
 0x4ff   :  { %4044 = vmatprep.subr.bf16.mxu0 %v8307_v55  ;;  %v8284_v55 = vld [vmem:[#allocation12 + $0x40] ss:$8 sps:$4 sm:$0xff]  }
 0x502   :  { %4045 = vmatpush1.bf16.msra.mxu0 %v8305_v56 }
 0x503   :  { %4046 = vmatprep.subr.bf16.mxu0 %v8313_v58 }
 0x506   :  { %4047 = vmatpush1.bf16.msra.mxu0 %v8311_v57  ;;  %v3567_v57 = vrot.slane %v3558_v51, %v9274_v34  ;;  %v8314_v51 = vld [vmem:[#allocation12 + $0x90] ss:$8 sps:$4 sm:$0xff]  }
 0x507   :  { %4048 = vmatprep.subr.bf16.mxu0 %v8319_v50 }
 0x50a   :  { %4049 = vmatpush1.bf16.msra.mxu0 %v8317_v59  ;;  %v3583_v59 = vrot.slane %v3578_v53, %v9271_v31 }
 0x50b   :  { %4050 = vmatprep.subr.bf16.mxu0 %v8325_v45 }
 0x50e   :  { %4051 = vmatpush1.bf16.msra.mxu0 %v8323_v63  ;;  %v8292_v63 = vld [vmem:[#allocation12 + $0x54] ss:$8 sps:$4 sm:$0xff]  }
 0x50f   :  { %4394 = vmatprep.subr.bf16.mxu0 %v8331_v3  ;;  %v3587_v3 = vrot.slane %v3578_v53, %v9274_v34  ;;  %v8322_v53 = vld [vmem:[#allocation12 + $0x144] ss:$8 sps:$4 sm:$0xff]  }
 0x588   :  { %v2629_v30 = vpop.f32.mrb[16].mxu0 }
 0x589   :  { %v2642_v11 = vmax.f32 %v2629_v30, 0.0  ;;  %v2631_v28 = vpop.f32.mrb[17].mxu0 }
 0x58a   :  { %v2643_v14 = vmax.f32 %v2631_v28, 0.0  ;;  %v2633_v2 = vpop.f32.mrb[18].mxu0 }
 0x58b   :  { %v2658_v4 = vmul.f32 %v2651_v9, %v2642_v11  ;;  %v2644_v5 = vmax.f32 %v2633_v2, 0.0  ;;  %v2635_v7 = vpop.f32.mrb[19].mxu0  ;;  %v8290_v11 = vld [vmem:[#allocation12 + $0x50] ss:$8 sps:$4 sm:$0xff]  }
 0x58c   :  { %v2659_v8 = vmul.f32 %v2655_v21, %v2643_v14  ;;  %v2645_v10 = vmax.f32 %v2635_v7, 0.0 }
 0x58d   :  { %v10015_v12 = vadd.f32 %v2668_v13, %v2658_v4  ;;  %v2660_v15 = vmul.f32 %v2651_v9, %v2644_v5 }
 0x58e   :  { %v2676_v16 = vadd.f32 %v2672_v1, %v2659_v8  ;;  %v2661_v17 = vmul.f32 %v2655_v21, %v2645_v10  ;;  %v8296_v10 = vld [vmem:[#allocation12 + $0x60] ss:$8 sps:$4 sm:$0xff]  }
 0x58f   :  { %2679 = vst [vmem:[#allocation5] sm:$0xff] %v10015_v12  ;;  %v2677_v18 = vadd.f32 %v2668_v13, %v2660_v15 }
 0x590   :  { %2681 = vst.msk [vmem:[#allocation5 + $0x8] sm:$0xff] %vm2680_vm9, %v2676_v16  ;;  %v2678_v19 = vadd.f32 %v2672_v1, %v2661_v17  ;;  %v8298_v1 = vld [vmem:[#allocation12 + $0x64] ss:$8 sps:$4 sm:$0xff]   ;;  %v8304_v17 = vld [vmem:[#allocation12 + $0x74] ss:$8 sps:$4 sm:$0xff]  }
 0x591   :  { %2682 = vst [vmem:[#allocation5 + $0x10] sm:$0x3] %v2677_v18 }
 0x592   :  { %2684 = vst.msk [vmem:[#allocation5 + $0x18] sm:$0x3] %vm2683_vm10, %v2678_v19 }
 0x596   :  { %v2709_v20 = vld [vmem:[#allocation5] sm:$0xfe] }
 0x597   :  { %v2710_v23 = vld [vmem:[#allocation5 + $0x8] sm:$0xfe] }
 0x598   :  { %v2711_v22 = vld [vmem:[#allocation5 + $0x10] sm:$0x1]  ;;  %v2686_v38 = vld [vmem:[#allocation5 + $0x8] sm:$0xff] }
 0x599   :  { %v2712_v24 = vld [vmem:[#allocation5 + $0x18] sm:$0x1]  ;;  %v2713_v25 = vpack.c.bf16 %v2711_v22, %v2709_v20  ;;  %v2688_v43 = vpack.c.bf16 %v2686_v38, %v2686_v38 }
 0x59a   :  { %v2714_v26 = vpack.c.bf16 %v2712_v24, %v2710_v23 }
 0x59b   :  { %v2739_v27 = vshll.u32 %v2713_v25, 16  ;;  %v2737_v37 = vshrl.u32 %v2713_v25, 16 }
 0x59c   :  { %v2746_v29 = vshll.u32 %v2714_v26, 16  ;;  %v2744_v33 = vshrl.u32 %v2714_v26, 16 }
 0x59d   :  { %v2741_v32 = vrot.slane %v2739_v27, 1  ;;  %v8302_v27 = vld [vmem:[#allocation12 + $0x70] ss:$8 sps:$4 sm:$0xff]  }
 0x59e   :  { %v2748_v36 = vrot.slane %v2746_v29, 1 }
 0x59f   :  { %v2742_v42 = vor.u32 %v2741_v32, %v2737_v37 }
 0x5a0   :  { %v2749_v39 = vor.u32 %v2748_v36, %v2744_v33  ;;  %v8310_v33 = vld [vmem:[#allocation12 + $0x84] ss:$8 sps:$4 sm:$0xff]  }
 0x5a2   :  { %7102 = vmatprep.mubr.msk.bf16.mxu1 %vm2680_vm9, %v2749_v39 }
 0x5a3   :  { %2887 = vmatmul.mubr.bf16.vlgmr.msra.gmra.mrb[28].mxu1 %v2742_v42 }
 0x5a4   :  { %2999 = vmatpush1.bf16.msra.mxu1 %v8260_v40  ;;  %7123 = vmatprep.mubr.msk.bf16.mxu1 %vm2680_vm9, %v2688_v43  ;;  %v8308_v43 = vld [vmem:[#allocation12 + $0x80] ss:$8 sps:$4 sm:$0xff]  }
 0x5a5   :  { %3000 = vmatprep.subr.bf16.mxu1 %v8268_v41 }
 0x5a8   :  { %3001 = vmatpush1.bf16.msra.mxu1 %v8266_v44  ;;  %v8316_v44 = vld [vmem:[#allocation12 + $0x94] ss:$8 sps:$4 sm:$0xff]  }
 0x5a9   :  { %3002 = vmatprep.subr.bf16.mxu1 %v8274_v46 }
 0x5ac   :  { %3003 = vmatpush1.bf16.msra.mxu1 %v8272_v47 }
 0x5ad   :  { %3004 = vmatprep.subr.bf16.mxu1 %v8280_v48  ;;  %v3042_v48 = vld [vmem:[#allocation5 + $0x18] sm:$0x3] }
 0x5b0   :  { %3005 = vmatpush1.bf16.msra.mxu1 %v8278_v49  ;;  %v3523_v56 = vpop.f32.mrb[20].mxu0 }
 0x5b1   :  { %3006 = vmatprep.subr.bf16.mxu1 %v8286_v52  ;;  %v3550_v58 = vmax.f32 %v3523_v56, 0.0  ;;  %v3525_v50 = vpop.f32.mrb[21].mxu0 }
 0x5b2   :  { %v3551_v45 = vmax.f32 %v3525_v50, 0.0  ;;  %v3527_v6 = vpop.f32.mrb[22].mxu0 }
 0x5b3   :  { %v3570_v35 = vmul.f32 %v3563_v54, %v3550_v58  ;;  %v3552_v9 = vmax.f32 %v3527_v6, 0.0  ;;  %v3529_v30 = vpop.f32.mrb[23].mxu0  ;;  %v8328_v6 = vld [vmem:[#allocation12 + $0x154] ss:$8 sps:$4 sm:$0xff]  }
 0x5b4   :  { %3007 = vmatpush1.bf16.msra.mxu1 %v8284_v55  ;;  %v3571_v21 = vmul.f32 %v3567_v57, %v3551_v45  ;;  %v3553_v13 = vmax.f32 %v3529_v30, 0.0 }
 0x5b5   :  { %v3590_v28 = vadd.f32 %v3583_v59, %v3570_v35  ;;  %3008 = vmatprep.subr.bf16.mxu1 %v8292_v63  ;;  %v3572_v14 = vmul.f32 %v3563_v54, %v3552_v9 }
 0x5b6   :  { %v3591_v2 = vadd.f32 %v3587_v3, %v3571_v21  ;;  %v3573_v4 = vmul.f32 %v3567_v57, %v3553_v13 }
 0x5b7   :  { %3598 = vst [vmem:[#allocation2] sm:$0xff] %v3590_v28  ;;  %v10026_v5 = vadd.f32 %v3583_v59, %v3572_v14 }
 0x5b8   :  { %3599 = vst.msk [vmem:[#allocation2 + $0x8] sm:$0xff] %vm456_vm2, %v3591_v2  ;;  %3009 = vmatpush1.bf16.msra.mxu1 %v8290_v11  ;;  %v3593_v7 = vadd.f32 %v3587_v3, %v3573_v4  ;;  %v3533_v8 = vpop.f32.mrb[24].mxu0 }
 0x5b9   :  { %v3554_v15 = vmax.f32 %v3533_v8, 0.0  ;;  %v3535_v16 = vpop.f32.mrb[25].mxu0  ;;  %3010 = vmatprep.subr.bf16.mxu1 %v8298_v1  ;;  %v10030_v18 = vpack.c.bf16 %v10026_v5, %v3590_v28  ;;  %v8326_v28 = vld [vmem:[#allocation12 + $0x150] ss:$8 sps:$4 sm:$0xff]  }
 0x5ba   :  { %3601 = vst.msk [vmem:[#allocation2 + $0x18] sm:$0xff] %vm456_vm2, %v3593_v7  ;;  %v3555_v19 = vmax.f32 %v3535_v16, 0.0  ;;  %v3537_v20 = vpop.f32.mrb[26].mxu0  ;;  %v8329_v8 = vld [vmem:[%s10869_s3] ss:$16 sps:$4 sm:$0xff]  }
 0x5bb   :  { %v3574_v22 = vmul.f32 %v3563_v54, %v3554_v15  ;;  %v3556_v23 = vmax.f32 %v3537_v20, 0.0  ;;  %v3539_v24 = vpop.f32.mrb[27].mxu0  ;;  %v8332_v16 = vld [vmem:[#allocation12 + $0x160] ss:$8 sps:$4 sm:$0xff]   ;;  %v8340_v20 = vld [vmem:[#allocation12 + $0x174] ss:$8 sps:$4 sm:$0xff]  }
 0x5bc   :  { %v3575_v25 = vmul.f32 %v3567_v57, %v3555_v19  ;;  %3011 = vmatpush1.bf16.msra.mxu1 %v8296_v10  ;;  %v3557_v26 = vmax.f32 %v3539_v24, 0.0  ;;  %v8338_v24 = vld [vmem:[#allocation12 + $0x170] ss:$8 sps:$4 sm:$0xff]  }
 0x5bd   :  { %v10033_v29 = vadd.f32 %v3583_v59, %v3574_v22  ;;  %v3576_v32 = vmul.f32 %v3563_v54, %v3556_v23  ;;  %3012 = vmatprep.subr.bf16.mxu1 %v8304_v17  ;;  %v3040_v54 = vld [vmem:[#allocation5 + $0x8] sm:$0xfc]  ;;  %v8337_v17 = vld [vmem:[%s10869_s3 + $0x24] ss:$16 sps:$4 sm:$0xff]   ;;  %v8335_v23 = vld [vmem:[%s10869_s3 + $0x20] ss:$16 sps:$4 sm:$0xff]  }
 0x5be   :  { %v3595_v36 = vadd.f32 %v3587_v3, %v3575_v25  ;;  %v3577_v37 = vmul.f32 %v3567_v57, %v3557_v26  ;;  %v3668_v38 = vld [vmem:[#allocation2] sm:$0xfe]  ;;  %v3044_v55 = vpack.c.bf16 %v3042_v48, %v3040_v54 }
 0x5bf   :  { %v3596_v39 = vadd.f32 %v3583_v59, %v3576_v32  ;;  %v3669_v40 = vld [vmem:[#allocation2 + $0x8] sm:$0xfe]  ;;  %v3672_v42 = vpack.c.bf16 %v10026_v5, %v3668_v38  ;;  %v8343_v25 = vld [vmem:[%s10869_s3 + $0x44] ss:$16 sps:$4 sm:$0xff]  }
 0x5c0   :  { %3603 = vst.msk [vmem:[#allocation2 + $0x28] sm:$0xff] %vm456_vm2, %v3595_v36  ;;  %v3597_v41 = vadd.f32 %v3587_v3, %v3577_v37  ;;  %3013 = vmatpush1.bf16.msra.mxu1 %v8302_v27  ;;  %v8320_v59 = vld [vmem:[#allocation12 + $0x140] ss:$8 sps:$4 sm:$0xff]   ;;  %v2687_v3 = vpack.c.bf16 %v10015_v12, %v10015_v12  ;;  %v3069_v30 = vrot.slane %v3044_v55, 1  ;;  %v8334_v12 = vld [vmem:[#allocation12 + $0x164] ss:$8 sps:$4 sm:$0xff]  }
 0x5c1   :  { %3604 = vst [vmem:[#allocation2 + $0x30] sm:$0x3] %v3596_v39  ;;  %3014 = vmatprep.subr.bf16.mxu1 %v8310_v33  ;;  %v10037_v46 = vld [vmem:[#allocation2 + $0x18] sm:$0xff]  ;;  %v3731_v49 = vshll.u32 %v3672_v42, 16  ;;  %v3729_v57 = vshrl.u32 %v3672_v42, 16  ;;  %v3607_v26 = vld [vmem:[#allocation2 + $0x8] sm:$0xff] }
 0x5c2   :  { %3605 = vst.msk [vmem:[#allocation2 + $0x38] sm:$0x3] %vm463_vm3, %v3597_v41  ;;  %v3673_v47 = vpack.c.bf16 %v10037_v46, %v3669_v40  ;;  %v8346_v27 = vld [vmem:[#allocation12 + $0x184] ss:$8 sps:$4 sm:$0xff]   ;;  %v8341_v33 = vld [vmem:[%s10869_s3 + $0x40] ss:$16 sps:$4 sm:$0xff]   ;;  %v10079_v36 = vpack.c.bf16 %v10037_v46, %v3607_v26 }
 0x5c3   :  { %v3733_v58 = vrot.slane %v3731_v49, 1  ;;  %v8344_v37 = vld [vmem:[#allocation12 + $0x180] ss:$8 sps:$4 sm:$0xff]   ;;  %v8349_v38 = vld [vmem:[%s10869_s3 + $0x64] ss:$16 sps:$4 sm:$0xff]  }
 0x5c4   :  { %3015 = vmatpush1.bf16.msra.mxu1 %v8308_v43  ;;  %v3743_v52 = vshll.u32 %v3673_v47, 16  ;;  %v3741_v50 = vshrl.u32 %v3673_v47, 16  ;;  %v8352_v39 = vld [vmem:[#allocation12 + $0x194] ss:$8 sps:$4 sm:$0xff]   ;;  %v8347_v40 = vld [vmem:[%s10869_s3 + $0x60] ss:$16 sps:$4 sm:$0xff]  }
 0x5c5   :  { %3016 = vmatprep.subr.bf16.mxu1 %v8316_v44  ;;  %v3734_v11 = vor.u32 %v3733_v58, %v3729_v57  ;;  %v8350_v42 = vld [vmem:[#allocation12 + $0x190] ss:$8 sps:$4 sm:$0xff]   ;;  %v8355_v41 = vld [vmem:[%s10869_s3 + $0x84] ss:$16 sps:$4 sm:$0xff]   ;;  %v8356_v47 = vld [vmem:[#allocation12 + $0x1a0] ss:$8 sps:$4 sm:$0xff]  }
 0x5c6   :  { %v3745_v63 = vrot.slane %v3743_v52, 1  ;;  %v8358_v43 = vld [vmem:[#allocation12 + $0x1a4] ss:$8 sps:$4 sm:$0xff]   ;;  %v8353_v44 = vld [vmem:[%s10869_s3 + $0x80] ss:$16 sps:$4 sm:$0xff]  }
 0x5c7   :  { %v10041_v56 = vld [vmem:[#allocation2 + $0x28] sm:$0xff]  ;;  %v8361_v48 = vld [vmem:[%s10869_s3 + $0xa4] ss:$16 sps:$4 sm:$0xff]   ;;  %v8362_v52 = vld [vmem:[#allocation12 + $0x1b0] ss:$8 sps:$4 sm:$0xff]  }
 0x5c8   :  { %3017 = vmatpush1.bf16.msra.mxu1 %v8314_v51  ;;  %v3670_v45 = vld [vmem:[#allocation2 + $0x30] sm:$0x1]  ;;  %v3746_v14 = vor.u32 %v3745_v63, %v3741_v50  ;;  %v8364_v49 = vld [vmem:[#allocation12 + $0x1b4] ss:$8 sps:$4 sm:$0xff]   ;;  %v8370_v54 = vld [vmem:[#allocation12 + $0x1c4] ss:$8 sps:$4 sm:$0xff]  }
 0x5c9   :  { %3174 = vmatprep.subr.bf16.mxu1 %v8322_v53  ;;  %v3671_v35 = vld [vmem:[#allocation2 + $0x38] sm:$0x1]  ;;  %v3674_v9 = vpack.c.bf16 %v3670_v45, %v10033_v29  ;;  %v8359_v51 = vld [vmem:[%s10869_s3 + $0xa0] ss:$16 sps:$4 sm:$0xff]   ;;  %v8367_v53 = vld [vmem:[%s10869_s3 + $0xc4] ss:$16 sps:$4 sm:$0xff]  }
 0x5ca   :  { %v3675_v21 = vpack.c.bf16 %v3671_v35, %v10041_v56  ;;  %v8365_v55 = vld [vmem:[%s10869_s3 + $0xc0] ss:$16 sps:$4 sm:$0xff]   ;;  %v8373_v58 = vld [vmem:[%s10869_s3 + $0xe4] ss:$16 sps:$4 sm:$0xff]   ;;  %v8412_v26 = vld [vmem:[%s10869_s3 + $0x24c] ss:$16 sps:$4 sm:$0xff]  }
 0x5cb   :  { %3031 = vmatmul.mubr.bf16.vlgmr.msra.gmra.mrb[28].mxu1 %v2687_v3  ;;  %v3736_v13 = vshll.u32 %v3674_v9, 16  ;;  %v3752_v22 = vshrl.u32 %v3674_v9, 16  ;;  %v8368_v57 = vld [vmem:[#allocation12 + $0x1c0] ss:$8 sps:$4 sm:$0xff]   ;;  %v8374_v45 = vld [vmem:[#allocation12 + $0x1d0] ss:$8 sps:$4 sm:$0xff]  }
 0x5cc   :  { %3175 = vmatpush1.bf16.msra.mxu1 %v8320_v59  ;;  %7144 = vmatprep.mubr.msk.bf16.mxu1 %vm2680_vm9, %v3069_v30  ;;  %v3748_v1 = vshll.u32 %v3675_v21, 16  ;;  %v3755_v2 = vshrl.u32 %v3675_v21, 16  ;;  %v8376_v59 = vld [vmem:[#allocation12 + $0x1d4] ss:$8 sps:$4 sm:$0xff]   ;;  %v3041_v50 = vld [vmem:[#allocation5 + $0x10] sm:$0x3] }
 0x5cd   :  { %3176 = vmatprep.subr.bf16.mxu1 %v8328_v6  ;;  %v3738_v4 = vrot.slane %v3736_v13, 1  ;;  %v8371_v63 = vld [vmem:[%s10869_s3 + $0xe0] ss:$16 sps:$4 sm:$0xff]   ;;  %v8379_v3 = vld [vmem:[%s10869_s3 + $0x104] ss:$16 sps:$4 sm:$0xff]  }
 0x5ce   :  { %v3750_v7 = vrot.slane %v3748_v1, 1  ;;  %v3039_v6 = vld [vmem:[#allocation5] sm:$0xfc]  ;;  %v8382_v9 = vld [vmem:[%s10869_s3 + $0x1ac] ss:$16 sps:$4 sm:$0xff]  }
 0x5cf   :  { %v10052_v10 = vsel %vm588_vm5, %v3734_v11, %v3738_v4  ;;  %v10073_v32 = vor.u32 %v3752_v22, %v3738_v4  ;;  %v3043_v35 = vpack.c.bf16 %v3041_v50, %v3039_v6  ;;  %v8377_v30 = vld [vmem:[%s10869_s3 + $0x100] ss:$16 sps:$4 sm:$0xff]   ;;  %v8380_v21 = vld [vmem:[%s10869_s3 + $0x1a8] ss:$16 sps:$4 sm:$0xff]   ;;  %v8385_v11 = vld [vmem:[%s10869_s3 + $0x124] ss:$16 sps:$4 sm:$0xff]  }
 0x5d0   :  { %3177 = vmatpush1.bf16.msra.mxu1 %v8326_v28  ;;  %v10055_v15 = vsel %vm588_vm5, %v3746_v14, %v3750_v7  ;;  %v10060_v19 = vor.u32 %v3755_v2, %v3750_v7  ;;  %v8388_v28 = vld [vmem:[%s10869_s3 + $0x1cc] ss:$16 sps:$4 sm:$0xff]   ;;  %v8383_v14 = vld [vmem:[%s10869_s3 + $0x120] ss:$16 sps:$4 sm:$0xff]   ;;  %v8386_v1 = vld [vmem:[%s10869_s3 + $0x1c8] ss:$16 sps:$4 sm:$0xff]  }
 0x5d1   :  { %7290 = vmatprep.mubr.msk.bf16.mxu0 %vm456_vm2, %v10055_v15  ;;  %3178 = vmatprep.subr.bf16.mxu1 %v8334_v12  ;;  %v3068_v13 = vrot.slane %v3043_v35, 1  ;;  %v8391_v2 = vld [vmem:[%s10869_s3 + $0x144] ss:$16 sps:$4 sm:$0xff]   ;;  %v8394_v12 = vld [vmem:[%s10869_s3 + $0x1ec] ss:$16 sps:$4 sm:$0xff]  }
 0x5d2   :  { %4059 = vmatmul.mubr.bf16.vlgmr.msra.gmra.mrb[28].mxu0 %v10052_v10  ;;  %v8389_v4 = vld [vmem:[%s10869_s3 + $0x140] ss:$16 sps:$4 sm:$0xff]   ;;  %v8392_v7 = vld [vmem:[%s10869_s3 + $0x1e8] ss:$16 sps:$4 sm:$0xff]   ;;  %v8406_v22 = vld [vmem:[%s10869_s3 + $0x22c] ss:$16 sps:$4 sm:$0xff]  }
 0x5d3   :  { %4395 = vmatpush1.bf16.msra.mxu0 %v8329_v8  ;;  %7291 = vmatprep.mubr.msk.bf16.mxu0 %vm456_vm2, %v10060_v19  ;;  %v8397_v8 = vld [vmem:[%s10869_s3 + $0x164] ss:$16 sps:$4 sm:$0xff]   ;;  %v8442_v35 = vld [vmem:[%s10869_s3 + $0x2ec] ss:$16 sps:$4 sm:$0xff]  }
 0x5d4   :  { %3179 = vmatpush1.bf16.msra.mxu1 %v8332_v16  ;;  %4396 = vmatprep.subr.bf16.mxu0 %v8337_v17  ;;  %v8395_v16 = vld [vmem:[%s10869_s3 + $0x160] ss:$16 sps:$4 sm:$0xff]   ;;  %v8398_v17 = vld [vmem:[%s10869_s3 + $0x208] ss:$16 sps:$4 sm:$0xff]   ;;  %v8433_v50 = vld [vmem:[%s10869_s3 + $0x3c4] ss:$16 sps:$4 sm:$0xff]  }
 0x5d5   :  { %3180 = vmatprep.subr.bf16.mxu1 %v8340_v20  ;;  %v8403_v20 = vld [vmem:[%s10869_s3 + $0x184] ss:$16 sps:$4 sm:$0xff]  }
 0x5d6   :  { %v8439_v6 = vld [vmem:[%s10869_s3 + $0x3e4] ss:$16 sps:$4 sm:$0xff]  }
 0x5d7   :  { %4397 = vmatpush1.bf16.msra.mxu0 %v8335_v23  ;;  %v8401_v23 = vld [vmem:[%s10869_s3 + $0x180] ss:$16 sps:$4 sm:$0xff]  }
 0x5d8   :  { %3181 = vmatpush1.bf16.msra.mxu1 %v8338_v24  ;;  %4398 = vmatprep.subr.bf16.mxu0 %v8343_v25  ;;  %v8404_v24 = vld [vmem:[%s10869_s3 + $0x228] ss:$16 sps:$4 sm:$0xff]   ;;  %v8409_v25 = vld [vmem:[%s10869_s3 + $0x344] ss:$16 sps:$4 sm:$0xff]  }
 0x5d9   :  { %3182 = vmatprep.subr.bf16.mxu1 %v8346_v27  ;;  %v8407_v27 = vld [vmem:[%s10869_s3 + $0x340] ss:$16 sps:$4 sm:$0xff]  }
 0x5da   :  { %4069 = vmatmul.mubr.bf16.gmra.mrb[32].mxu0 %v10073_v32 }
 0x5db   :  { %4399 = vmatpush1.bf16.msra.mxu0 %v8341_v33  ;;  %7346 = vmatprep.mubr.msk.bf16.mxu0 %vm456_vm2, %v10079_v36  ;;  %v4497_v33 = vld [vmem:[#allocation2 + $0x8] sm:$0xfc] }
 0x5dc   :  { %3183 = vmatpush1.bf16.msra.mxu1 %v8344_v37  ;;  %4400 = vmatprep.subr.bf16.mxu0 %v8349_v38  ;;  %v4499_v37 = vld [vmem:[#allocation2 + $0x38] sm:$0x3] }
 0x5dd   :  { %3184 = vmatprep.subr.bf16.mxu1 %v8352_v39  ;;  %v8410_v38 = vld [vmem:[%s10869_s3 + $0x248] ss:$16 sps:$4 sm:$0xff]   ;;  %v8415_v39 = vld [vmem:[%s10869_s3 + $0x364] ss:$16 sps:$4 sm:$0xff]  }
 0x5df   :  { %4401 = vmatpush1.bf16.msra.mxu0 %v8347_v40  ;;  %v10193_v40 = vpack.c.bf16 %v10041_v56, %v10041_v56 }
 0x5e0   :  { %3185 = vmatpush1.bf16.msra.mxu1 %v8350_v42  ;;  %4402 = vmatprep.subr.bf16.mxu0 %v8355_v41  ;;  %v8418_v42 = vld [vmem:[%s10869_s3 + $0x26c] ss:$16 sps:$4 sm:$0xff]   ;;  %v4501_v41 = vpack.c.bf16 %v10037_v46, %v4497_v33  ;;  %v8421_v46 = vld [vmem:[%s10869_s3 + $0x384] ss:$16 sps:$4 sm:$0xff]   ;;  %v4498_v33 = vld [vmem:[#allocation2 + $0x30] sm:$0x3] }
 0x5e1   :  { %3186 = vmatprep.subr.bf16.mxu1 %v8358_v43  ;;  %v4503_v43 = vpack.c.bf16 %v4499_v37, %v10041_v56  ;;  %v8424_v56 = vld [vmem:[%s10869_s3 + $0x28c] ss:$16 sps:$4 sm:$0xff]   ;;  %v8473_v37 = vld [vmem:[%s10869_s3 + $0x4a0] ss:$16 sps:$4 sm:$0xff]  }
 0x5e3   :  { %4403 = vmatpush1.bf16.msra.mxu0 %v8353_v44  ;;  %v8413_v44 = vld [vmem:[%s10869_s3 + $0x360] ss:$16 sps:$4 sm:$0xff]  }
 0x5e4   :  { %3187 = vmatpush1.bf16.msra.mxu1 %v8356_v47  ;;  %4404 = vmatprep.subr.bf16.mxu0 %v8361_v48  ;;  %v8416_v47 = vld [vmem:[%s10869_s3 + $0x268] ss:$16 sps:$4 sm:$0xff]   ;;  %v4563_v48 = vrot.slane %v4501_v41, 1  ;;  %v4502_v41 = vpack.c.bf16 %v4498_v33, %v10033_v29 }
 0x5e5   :  { %3188 = vmatprep.subr.bf16.mxu1 %v8364_v49  ;;  %v10215_v49 = vrot.slane %v4503_v43, 1  ;;  %v8482_v43 = vld [vmem:[%s10869_s3 + $0x88] ss:$16 sps:$4 sm:$0xff]  }
 0x5e7   :  { %4405 = vmatpush1.bf16.msra.mxu0 %v8359_v51  ;;  %v8419_v51 = vld [vmem:[%s10869_s3 + $0x380] ss:$16 sps:$4 sm:$0xff]  }
 0x5e8   :  { %3189 = vmatpush1.bf16.msra.mxu1 %v8362_v52  ;;  %4406 = vmatprep.subr.bf16.mxu0 %v8367_v53  ;;  %v10222_v52 = vpack.c.bf16 %v10033_v29, %v10033_v29  ;;  %v8422_v53 = vld [vmem:[%s10869_s3 + $0x288] ss:$16 sps:$4 sm:$0xff]  }
 0x5e9   :  { %3190 = vmatprep.subr.bf16.mxu1 %v8370_v54  ;;  %v8427_v54 = vld [vmem:[%s10869_s3 + $0x3a4] ss:$16 sps:$4 sm:$0xff]   ;;  %v8485_v29 = vld [vmem:[%s10869_s3 + $0xa8] ss:$16 sps:$4 sm:$0xff]  }
 0x5eb   :  { %4407 = vmatpush1.bf16.msra.mxu0 %v8365_v55  ;;  %v8430_v55 = vld [vmem:[%s10869_s3 + $0x2ac] ss:$16 sps:$4 sm:$0xff]  }
 0x5ec   :  { %3191 = vmatpush1.bf16.msra.mxu1 %v8368_v57  ;;  %4408 = vmatprep.subr.bf16.mxu0 %v8373_v58  ;;  %v10236_v57 = vsel %vm1422_vm4, %v4563_v48, %v10215_v49  ;;  %v8425_v58 = vld [vmem:[%s10869_s3 + $0x3a0] ss:$16 sps:$4 sm:$0xff]   ;;  %v8488_v48 = vld [vmem:[%s10869_s3 + $0xc8] ss:$16 sps:$4 sm:$0xff]  }
 0x5ed   :  { %3192 = vmatprep.subr.bf16.mxu1 %v8376_v59  ;;  %v8428_v59 = vld [vmem:[%s10869_s3 + $0x2a8] ss:$16 sps:$4 sm:$0xff]  }
 0x5ef   :  { %4409 = vmatpush1.bf16.msra.mxu0 %v8371_v63  ;;  %v8436_v63 = vld [vmem:[%s10869_s3 + $0x2cc] ss:$16 sps:$4 sm:$0xff]  }
 0x5f0   :  { %3193 = vmatpush1.bf16.msra.mxu1 %v8374_v45  ;;  %4410 = vmatprep.subr.bf16.mxu0 %v8379_v3  ;;  %v8431_v45 = vld [vmem:[%s10869_s3 + $0x3c0] ss:$16 sps:$4 sm:$0xff]   ;;  %v8434_v3 = vld [vmem:[%s10869_s3 + $0x2c8] ss:$16 sps:$4 sm:$0xff]  }
 0x5f1   :  { %4077 = vmatprep.subr.bf16.mxu1 %v8382_v9  ;;  %v8437_v9 = vld [vmem:[%s10869_s3 + $0x3e0] ss:$16 sps:$4 sm:$0xff]  }
 0x5f3   :  { %3207 = vmatmul.mubr.bf16.vlgmr.msra.gmra.mrb[28].mxu1 %v3068_v13  ;;  %4411 = vmatpush1.bf16.msra.mxu0 %v8377_v30  ;;  %v8440_v30 = vld [vmem:[%s10869_s3 + $0x2e8] ss:$16 sps:$4 sm:$0xff]   ;;  %v8443_v13 = vld [vmem:[%s10869_s3 + $0x400] ss:$16 sps:$4 sm:$0xff]  }
 0x5f4   :  { %4078 = vmatpush1.bf16.msra.mxu1 %v8380_v21  ;;  %4412 = vmatprep.subr.bf16.mxu0 %v8385_v11  ;;  %v8445_v21 = vld [vmem:[%s10869_s3 + $0x404] ss:$16 sps:$4 sm:$0xff]   ;;  %v8448_v11 = vld [vmem:[%s10869_s3 + $0x30c] ss:$16 sps:$4 sm:$0xff]  }
 0x5f5   :  { %4079 = vmatprep.subr.bf16.mxu1 %v8388_v28  ;;  %7292 = vmatprep.mubr.msk.bf16.mxu1 %vm456_vm2, %v10055_v15  ;;  %v8400_v15 = vld [vmem:[%s10869_s3 + $0x20c] ss:$16 sps:$4 sm:$0xff]   ;;  %v8446_v28 = vld [vmem:[%s10869_s3 + $0x308] ss:$16 sps:$4 sm:$0xff]  }
 0x5f7   :  { %4413 = vmatpush1.bf16.msra.mxu0 %v8383_v14  ;;  %v8451_v14 = vld [vmem:[%s10869_s3 + $0x424] ss:$16 sps:$4 sm:$0xff]  }
 0x5f8   :  { %4080 = vmatpush1.bf16.msra.mxu1 %v8386_v1  ;;  %4414 = vmatprep.subr.bf16.mxu0 %v8391_v2  ;;  %v8454_v1 = vld [vmem:[%s10869_s3 + $0x32c] ss:$16 sps:$4 sm:$0xff]   ;;  %v8449_v2 = vld [vmem:[%s10869_s3 + $0x420] ss:$16 sps:$4 sm:$0xff]  }
 0x5f9   :  { %4081 = vmatprep.subr.bf16.mxu1 %v8394_v12  ;;  %v8452_v12 = vld [vmem:[%s10869_s3 + $0x328] ss:$16 sps:$4 sm:$0xff]  }
 0x5fb   :  { %4415 = vmatpush1.bf16.msra.mxu0 %v8389_v4  ;;  %v8457_v4 = vld [vmem:[%s10869_s3 + $0x444] ss:$16 sps:$4 sm:$0xff]  }
 0x5fc   :  { %4082 = vmatpush1.bf16.msra.mxu1 %v8392_v7  ;;  %4416 = vmatprep.subr.bf16.mxu0 %v8397_v8  ;;  %v8460_v7 = vld [vmem:[%s10869_s3 + $0xc] ss:$16 sps:$4 sm:$0xff]   ;;  %v8455_v8 = vld [vmem:[%s10869_s3 + $0x440] ss:$16 sps:$4 sm:$0xff]  }
 0x5fd   :  { %4083 = vmatprep.subr.bf16.mxu1 %v8400_v15  ;;  %v8458_v15 = vld [vmem:[%s10869_s3 + $0x8] ss:$16 sps:$4 sm:$0xff]  }
 0x5ff   :  { %4417 = vmatpush1.bf16.msra.mxu0 %v8395_v16  ;;  %v8463_v16 = vld [vmem:[%s10869_s3 + $0x464] ss:$16 sps:$4 sm:$0xff]  }
 0x600   :  { %4084 = vmatpush1.bf16.msra.mxu1 %v8398_v17  ;;  %4418 = vmatprep.subr.bf16.mxu0 %v8403_v20  ;;  %v8466_v17 = vld [vmem:[%s10869_s3 + $0x2c] ss:$16 sps:$4 sm:$0xff]   ;;  %v8461_v20 = vld [vmem:[%s10869_s3 + $0x460] ss:$16 sps:$4 sm:$0xff]  }
 0x601   :  { %4085 = vmatprep.subr.bf16.mxu1 %v8406_v22  ;;  %v8464_v22 = vld [vmem:[%s10869_s3 + $0x28] ss:$16 sps:$4 sm:$0xff]  }
 0x603   :  { %4419 = vmatpush1.bf16.msra.mxu0 %v8401_v23  ;;  %v8469_v23 = vld [vmem:[%s10869_s3 + $0x484] ss:$16 sps:$4 sm:$0xff]  }
 0x604   :  { %4086 = vmatpush1.bf16.msra.mxu1 %v8404_v24  ;;  %4834 = vmatprep.subr.bf16.mxu0 %v8409_v25  ;;  %v8470_v24 = vld [vmem:[%s10869_s3 + $0x48] ss:$16 sps:$4 sm:$0xff]   ;;  %v8475_v25 = vld [vmem:[%s10869_s3 + $0x4a4] ss:$16 sps:$4 sm:$0xff]  }
 0x605   :  { %4087 = vmatprep.subr.bf16.mxu1 %v8412_v26  ;;  %v8478_v26 = vld [vmem:[%s10869_s3 + $0x6c] ss:$16 sps:$4 sm:$0xff]  }
 0x606   :  { %4427 = vmatmul.mubr.bf16.vlgmr.msra.gmra.mrb[28].mxu0 %v10030_v18 }
 0x607   :  { %7347 = vmatprep.mubr.msk.bf16.mxu0 %vm456_vm2, %v10193_v40  ;;  %4835 = vmatpush1.bf16.msra.mxu0 %v8407_v27  ;;  %v4496_v27 = vld [vmem:[#allocation2] sm:$0xfc] }
 0x608   :  { %4088 = vmatpush1.bf16.msra.mxu1 %v8410_v38  ;;  %4836 = vmatprep.subr.bf16.mxu0 %v8415_v39  ;;  %v8476_v38 = vld [vmem:[%s10869_s3 + $0x68] ss:$16 sps:$4 sm:$0xff]   ;;  %v8481_v39 = vld [vmem:[%s10869_s3 + $0x4c4] ss:$16 sps:$4 sm:$0xff]  }
 0x609   :  { %4089 = vmatprep.subr.bf16.mxu1 %v8418_v42  ;;  %v4500_v42 = vpack.c.bf16 %v10026_v5, %v4496_v27  ;;  %v8487_v5 = vld [vmem:[%s10869_s3 + $0xac] ss:$16 sps:$4 sm:$0xff]  }
 0x60b   :  { %4837 = vmatpush1.bf16.msra.mxu0 %v8413_v44  ;;  %v4560_v44 = vrot.slane %v4500_v42, 1 }
 0x60c   :  { %4090 = vmatpush1.bf16.msra.mxu1 %v8416_v47  ;;  %4838 = vmatprep.subr.bf16.mxu0 %v8421_v46  ;;  %v10362_v47 = vrot.slane %v4502_v41, 1 }
 0x60d   :  { %4091 = vmatprep.subr.bf16.mxu1 %v8424_v56  ;;  %v8490_v56 = vld [vmem:[%s10869_s3 + $0xcc] ss:$16 sps:$4 sm:$0xff]  }
 0x60e   :  { %4437 = vmatmul.mubr.bf16.gmra.mrb[32].mxu0 %v10222_v52  ;;  %v10372_v46 = vsel %vm1422_vm4, %v4560_v44, %v10362_v47  ;;  %v4960_v44 = vld [vmem:[#allocation9] ss:$2 sm:$0xf] }
 0x60f   :  { %4839 = vmatpush1.bf16.msra.mxu0 %v8419_v51  ;;  %7454 = vmatprep.mubr.msk.bf16.mxu0 %vm456_vm2, %v10236_v57  ;;  %v8493_v51 = vld [vmem:[%s10869_s3 + $0xec] ss:$16 sps:$4 sm:$0xff]  }
 0x610   :  { %4092 = vmatpush1.bf16.msra.mxu1 %v8422_v53  ;;  %4840 = vmatprep.subr.bf16.mxu0 %v8427_v54  ;;  %v8491_v53 = vld [vmem:[%s10869_s3 + $0xe8] ss:$16 sps:$4 sm:$0xff]   ;;  %v8496_v54 = vld [vmem:[%s10869_s3 + $0x10c] ss:$16 sps:$4 sm:$0xff]  }
 0x611   :  { %4093 = vmatprep.subr.bf16.mxu1 %v8430_v55  ;;  %v8494_v55 = vld [vmem:[%s10869_s3 + $0x108] ss:$16 sps:$4 sm:$0xff]  }
 0x613   :  { %4841 = vmatpush1.bf16.msra.mxu0 %v8425_v58  ;;  %v8499_v58 = vld [vmem:[%s10869_s3 + $0x12c] ss:$16 sps:$4 sm:$0xff]  }
 0x614   :  { %4094 = vmatpush1.bf16.msra.mxu1 %v8428_v59  ;;  %4842 = vmatprep.subr.bf16.mxu0 %v8433_v50  ;;  %v8497_v59 = vld [vmem:[%s10869_s3 + $0x128] ss:$16 sps:$4 sm:$0xff]   ;;  %v8502_v50 = vld [vmem:[%s10869_s3 + $0x14c] ss:$16 sps:$4 sm:$0xff]  }
 0x615   :  { %4095 = vmatprep.subr.bf16.mxu1 %v8436_v63  ;;  %v8500_v63 = vld [vmem:[%s10869_s3 + $0x148] ss:$16 sps:$4 sm:$0xff]  }
 0x617   :  { %4843 = vmatpush1.bf16.msra.mxu0 %v8431_v45  ;;  %v8505_v45 = vld [vmem:[%s10869_s3 + $0x16c] ss:$16 sps:$4 sm:$0xff]  }
 0x618   :  { %4096 = vmatpush1.bf16.msra.mxu1 %v8434_v3  ;;  %4844 = vmatprep.subr.bf16.mxu0 %v8439_v6  ;;  %v8503_v3 = vld [vmem:[%s10869_s3 + $0x168] ss:$16 sps:$4 sm:$0xff]   ;;  %v8508_v6 = vld [vmem:[%s10869_s3 + $0x18c] ss:$16 sps:$4 sm:$0xff]  }
 0x619   :  { %4097 = vmatprep.subr.bf16.mxu1 %v8442_v35  ;;  %v8506_v35 = vld [vmem:[%s10869_s3 + $0x188] ss:$16 sps:$4 sm:$0xff]  }
 0x61b   :  { %4845 = vmatpush1.bf16.msra.mxu0 %v8437_v9  ;;  %v8511_v9 = vld [vmem:[%s10869_s3 + $0x34c] ss:$16 sps:$4 sm:$0xff]  }
 0x61c   :  { %4098 = vmatpush1.bf16.msra.mxu1 %v8440_v30  ;;  %4846 = vmatprep.subr.bf16.mxu0 %v8445_v21  ;;  %v8509_v30 = vld [vmem:[%s10869_s3 + $0x348] ss:$16 sps:$4 sm:$0xff]   ;;  %v8514_v21 = vld [vmem:[%s10869_s3 + $0x36c] ss:$16 sps:$4 sm:$0xff]  }
 0x61d   :  { %4099 = vmatprep.subr.bf16.mxu1 %v8448_v11  ;;  %v8512_v11 = vld [vmem:[%s10869_s3 + $0x368] ss:$16 sps:$4 sm:$0xff]  }
 0x61f   :  { %4847 = vmatpush1.bf16.msra.mxu0 %v8443_v13  ;;  %v8517_v13 = vld [vmem:[%s10869_s3 + $0x38c] ss:$16 sps:$4 sm:$0xff]  }
 0x620   :  { %4100 = vmatpush1.bf16.msra.mxu1 %v8446_v28  ;;  %4848 = vmatprep.subr.bf16.mxu0 %v8451_v14  ;;  %v8515_v28 = vld [vmem:[%s10869_s3 + $0x388] ss:$16 sps:$4 sm:$0xff]   ;;  %v8523_v14 = vld [vmem:[%s10869_s3 + $0x3cc] ss:$16 sps:$4 sm:$0xff]  }
 0x621   :  { %4101 = vmatprep.subr.bf16.mxu1 %v8454_v1  ;;  %v8521_v1 = vld [vmem:[%s10869_s3 + $0x3c8] ss:$16 sps:$4 sm:$0xff]  }
 0x623   :  { %4849 = vmatpush1.bf16.msra.mxu0 %v8449_v2  ;;  %v8529_v2 = vld [vmem:[%s10869_s3 + $0x40c] ss:$16 sps:$4 sm:$0xff]  }
 0x624   :  { %4102 = vmatpush1.bf16.msra.mxu1 %v8452_v12  ;;  %4850 = vmatprep.subr.bf16.mxu0 %v8457_v4  ;;  %v8527_v12 = vld [vmem:[%s10869_s3 + $0x408] ss:$16 sps:$4 sm:$0xff]   ;;  %v8532_v4 = vld [vmem:[%s10869_s3 + $0x42c] ss:$16 sps:$4 sm:$0xff]  }
 0x625   :  { %4445 = vmatprep.subr.bf16.mxu1 %v8460_v7  ;;  %v8530_v7 = vld [vmem:[%s10869_s3 + $0x428] ss:$16 sps:$4 sm:$0xff]  }
 0x627   :  { %4110 = vmatmul.mubr.bf16.vlgmr.msra.gmra.mrb[32].mxu1 %v10052_v10  ;;  %4851 = vmatpush1.bf16.msra.mxu0 %v8455_v8  ;;  %v8472_v10 = vld [vmem:[%s10869_s3 + $0x4c] ss:$16 sps:$4 sm:$0xff]  }
 0x628   :  { %7293 = vmatprep.mubr.msk.bf16.mxu1 %vm456_vm2, %v10060_v19  ;;  %4446 = vmatpush1.bf16.msra.mxu1 %v8458_v15  ;;  %v8467_v19 = vld [vmem:[%s10869_s3 + $0x480] ss:$16 sps:$4 sm:$0xff]   ;;  %v8535_v8 = vld [vmem:[%s10869_s3 + $0x44c] ss:$16 sps:$4 sm:$0xff]   ;;  %v8533_v15 = vld [vmem:[%s10869_s3 + $0x448] ss:$16 sps:$4 sm:$0xff]  }
 0x629   :  { %4852 = vmatprep.subr.bf16.mxu0 %v8463_v16  ;;  %4447 = vmatprep.subr.bf16.mxu1 %v8466_v17  ;;  %v8538_v16 = vld [vmem:[%s10869_s3 + $0x46c] ss:$16 sps:$4 sm:$0xff]   ;;  %v8536_v17 = vld [vmem:[%s10869_s3 + $0x468] ss:$16 sps:$4 sm:$0xff]  }
 0x62b   :  { %4853 = vmatpush1.bf16.msra.mxu0 %v8461_v20  ;;  %v8541_v20 = vld [vmem:[%s10869_s3 + $0x48c] ss:$16 sps:$4 sm:$0xff]  }
 0x62c   :  { %4448 = vmatpush1.bf16.msra.mxu1 %v8464_v22  ;;  %4854 = vmatprep.subr.bf16.mxu0 %v8469_v23  ;;  %v8539_v22 = vld [vmem:[%s10869_s3 + $0x488] ss:$16 sps:$4 sm:$0xff]   ;;  %v8544_v23 = vld [vmem:[%s10869_s3 + $0x4ac] ss:$16 sps:$4 sm:$0xff]  }
 0x62d   :  { %4449 = vmatprep.subr.bf16.mxu1 %v8472_v10  ;;  %v8542_v10 = vld [vmem:[%s10869_s3 + $0x4a8] ss:$16 sps:$4 sm:$0xff]  }
 0x62f   :  { %4120 = vmatmul.mubr.bf16.gmra.mrb[36].mxu1 %v10073_v32  ;;  %4855 = vmatpush1.bf16.msra.mxu0 %v8467_v19  ;;  %v8484_v32 = vld [vmem:[%s10869_s3 + $0x8c] ss:$16 sps:$4 sm:$0xff]  }
 0x630   :  { %4450 = vmatpush1.bf16.msra.mxu1 %v8470_v24  ;;  %7348 = vmatprep.mubr.msk.bf16.mxu1 %vm456_vm2, %v10079_v36  ;;  %v8479_v36 = vld [vmem:[%s10869_s3 + $0x4c0] ss:$16 sps:$4 sm:$0xff]   ;;  %v8547_v19 = vld [vmem:[%s10869_s3 + $0x4cc] ss:$16 sps:$4 sm:$0xff]   ;;  %v8545_v24 = vld [vmem:[%s10869_s3 + $0x4c8] ss:$16 sps:$4 sm:$0xff]  }
 0x631   :  { %4856 = vmatprep.subr.bf16.mxu0 %v8475_v25  ;;  %4451 = vmatprep.subr.bf16.mxu1 %v8478_v26 }
 0x633   :  { %4857 = vmatpush1.bf16.msra.mxu0 %v8473_v37 }
 0x634   :  { %4452 = vmatpush1.bf16.msra.mxu1 %v8476_v38  ;;  %4858 = vmatprep.subr.bf16.mxu0 %v8481_v39 }
 0x635   :  { %4453 = vmatprep.subr.bf16.mxu1 %v8484_v32 }
 0x637   :  { %4859 = vmatpush1.bf16.msra.mxu0 %v8479_v36 }
 0x638   :  { %4454 = vmatpush1.bf16.msra.mxu1 %v8482_v43 }
 0x639   :  { %4455 = vmatprep.subr.bf16.mxu1 %v8487_v5  ;;  %v4994_v5 = vld [vmem:[#allocation9 + $0x1] ss:$2 sm:$0xf] }
 0x63a   :  { %4867 = vmatmul.mubr.bf16.vlgmr.msra.gmra.mrb[28].mxu0 %v10372_v46 }
 0x63b   :  { %7455 = vmatprep.mubr.msk.bf16.mxu0 %vm456_vm2, %v10215_v49 }
 0x63c   :  { %4456 = vmatpush1.bf16.msra.mxu1 %v8485_v29 }
 0x63d   :  { %4457 = vmatprep.subr.bf16.mxu1 %v8490_v56 }
 0x640   :  { %4458 = vmatpush1.bf16.msra.mxu1 %v8488_v48  ;;  %v4973_v48 = vrot.slane %v4960_v44, %v9645_v61 }
 0x641   :  { %4459 = vmatprep.subr.bf16.mxu1 %v8493_v51 }
 0x642   :  { %4877 = vmatmul.mubr.bf16.gmra.mrb[32].mxu0 %v10362_v47 }
 0x643   :  { %5130 = vmatprep.mubr.f32.mxu0 %v8860_v60 }
 0x644   :  { %4460 = vmatpush1.bf16.msra.mxu1 %v8491_v53 }
 0x645   :  { %4461 = vmatprep.subr.bf16.mxu1 %v8496_v54  ;;  %v4977_v54 = vrot.slane %v4960_v44, %v9648_v62 }
 0x648   :  { %4462 = vmatpush1.bf16.msra.mxu1 %v8494_v55 }
 0x649   :  { %4463 = vmatprep.subr.bf16.mxu1 %v8499_v58  ;;  %v4999_v58 = vrot.slane %v4994_v5, %v9271_v31 }
 0x64c   :  { %4464 = vmatpush1.bf16.msra.mxu1 %v8497_v59 }
 0x64d   :  { %4465 = vmatprep.subr.bf16.mxu1 %v8502_v50  ;;  %v5007_v50 = vrot.slane %v4994_v5, %v9645_v61 }
 0x650   :  { %4466 = vmatpush1.bf16.msra.mxu1 %v8500_v63 }
 0x651   :  { %4467 = vmatprep.subr.bf16.mxu1 %v8505_v45 }
 0x654   :  { %4468 = vmatpush1.bf16.msra.mxu1 %v8503_v3  ;;  %v5003_v3 = vrot.slane %v4994_v5, %v9274_v34 }
 0x655   :  { %4469 = vmatprep.subr.bf16.mxu1 %v8508_v6 }
 0x658   :  { %4470 = vmatpush1.bf16.msra.mxu1 %v8506_v35  ;;  %v5011_v35 = vrot.slane %v4994_v5, %v9648_v62 }
 0x659   :  { %4885 = vmatprep.subr.bf16.mxu1 %v8511_v9 }
 0x65b   :  { %4478 = vmatmul.mubr.bf16.vlgmr.msra.gmra.mrb[32].mxu1 %v10030_v18  ;;  %v8520_v18 = vld [vmem:[%s10869_s3 + $0x3ac] ss:$16 sps:$4 sm:$0xff]  }
 0x65c   :  { %7349 = vmatprep.mubr.msk.bf16.mxu1 %vm456_vm2, %v10193_v40  ;;  %4886 = vmatpush1.bf16.msra.mxu1 %v8509_v30  ;;  %v8518_v40 = vld [vmem:[%s10869_s3 + $0x3a8] ss:$16 sps:$4 sm:$0xff]  }
 0x65d   :  { %4887 = vmatprep.subr.bf16.mxu1 %v8514_v21 }
 0x660   :  { %4888 = vmatpush1.bf16.msra.mxu1 %v8512_v11 }
 0x661   :  { %4889 = vmatprep.subr.bf16.mxu1 %v8517_v13 }
 0x663   :  { %4488 = vmatmul.mubr.bf16.gmra.mrb[36].mxu1 %v10222_v52  ;;  %v8526_v52 = vld [vmem:[%s10869_s3 + $0x3ec] ss:$16 sps:$4 sm:$0xff]  }
 0x664   :  { %4890 = vmatpush1.bf16.msra.mxu1 %v8515_v28  ;;  %7456 = vmatprep.mubr.msk.bf16.mxu1 %vm456_vm2, %v10236_v57  ;;  %v8524_v57 = vld [vmem:[%s10869_s3 + $0x3e8] ss:$16 sps:$4 sm:$0xff]  }
 0x665   :  { %4891 = vmatprep.subr.bf16.mxu1 %v8520_v18 }
 0x668   :  { %4892 = vmatpush1.bf16.msra.mxu1 %v8518_v40 }
 0x669   :  { %4893 = vmatprep.subr.bf16.mxu1 %v8523_v14 }
 0x66c   :  { %4894 = vmatpush1.bf16.msra.mxu1 %v8521_v1 }
 0x66d   :  { %4895 = vmatprep.subr.bf16.mxu1 %v8526_v52 }
 0x670   :  { %4896 = vmatpush1.bf16.msra.mxu1 %v8524_v57 }
 0x671   :  { %4897 = vmatprep.subr.bf16.mxu1 %v8529_v2 }
 0x674   :  { %4898 = vmatpush1.bf16.msra.mxu1 %v8527_v12 }
 0x675   :  { %4899 = vmatprep.subr.bf16.mxu1 %v8532_v4 }
 0x678   :  { %4900 = vmatpush1.bf16.msra.mxu1 %v8530_v7 }
 0x679   :  { %4901 = vmatprep.subr.bf16.mxu1 %v8535_v8 }
 0x67c   :  { %4902 = vmatpush1.bf16.msra.mxu1 %v8533_v15 }
 0x67d   :  { %4903 = vmatprep.subr.bf16.mxu1 %v8538_v16 }
 0x680   :  { %4904 = vmatpush1.bf16.msra.mxu1 %v8536_v17 }
 0x681   :  { %4905 = vmatprep.subr.bf16.mxu1 %v8541_v20 }
 0x684   :  { %4906 = vmatpush1.bf16.msra.mxu1 %v8539_v22 }
 0x685   :  { %4907 = vmatprep.subr.bf16.mxu1 %v8544_v23 }
 0x688   :  { %4908 = vmatpush1.bf16.msra.mxu1 %v8542_v10 }
 0x689   :  { %4909 = vmatprep.subr.bf16.mxu1 %v8547_v19 }
 0x68c   :  { %4910 = vmatpush1.bf16.msra.mxu1 %v8545_v24 }
 0x68f   :  { %4918 = vmatmul.mubr.bf16.vlgmr.msra.gmra.mrb[32].mxu1 %v10372_v46  ;;  %v4969_v46 = vrot.slane %v4960_v44, %v9274_v34 }
 0x690   :  { %7457 = vmatprep.mubr.msk.bf16.mxu1 %vm456_vm2, %v10215_v49 }
 0x697   :  { %4928 = vmatmul.mubr.bf16.gmra.mrb[36].mxu1 %v10362_v47  ;;  %v4965_v47 = vrot.slane %v4960_v44, %v9271_v31 }
 0x698   :  { %5530 = vmatprep.mubr.bf16.mxu1 %v8859_v0 }
 0x6c6   :  { %v10510_v25 = vpop.f32.mrb[28].mxu1 }
 0x6c7   :  { %v10512_v26 = vpop.f32.mrb[29].mxu1 }
 0x6c8   :  { %v3212_v27 = vpop.f32.mrb[30].mxu1 }
 0x6c9   :  { %v3213_v33 = vpop.f32.mrb[31].mxu1 }
 0x70d   :  { %v4868_v37 = vpop.f32.mrb[28].mxu0 }
 0x70e   :  { %v4870_v38 = vpop.f32.mrb[29].mxu0  ;;  %v4948_v49 = vmax.f32 %v4868_v37, 0.0 }
 0x70f   :  { %v4872_v39 = vpop.f32.mrb[30].mxu0  ;;  %v4949_v29 = vmax.f32 %v4870_v38, 0.0 }
 0x710   :  { %v4874_v32 = vpop.f32.mrb[31].mxu0  ;;  %v4952_v56 = vmax.f32 %v4872_v39, 0.0  ;;  %v4982_v55 = vmul.f32 %v4965_v47, %v4948_v49 }
 0x711   :  { %v4953_v51 = vmax.f32 %v4874_v32, 0.0  ;;  %v4983_v45 = vmul.f32 %v4969_v46, %v4949_v29  ;;  %v5058_v29 = vld [vmem:[%s10871_s5] sm:$0xff] }
 0x712   :  { %v4986_v30 = vmul.f32 %v4965_v47, %v4952_v56  ;;  %v5016_v14 = vadd.f32 %v4999_v58, %v4982_v55  ;;  %v8548_v56 = vld [vmem:[%s10872_s6 + $0x40] sm:$0xff]   ;;  %v8551_v55 = vld [vmem:[%s10872_s6 + $0x8] sm:$0xff]  }
 0x713   :  { %v4987_v28 = vmul.f32 %v4969_v46, %v4953_v51  ;;  %v5017_v61 = vadd.f32 %v5003_v3, %v4983_v45  ;;  %v8549_v51 = vld [vmem:[%s10872_s6] sm:$0xff]  }
 0x714   :  { %v5020_v7 = vadd.f32 %v4999_v58, %v4986_v30  ;;  %v8556_v45 = vld [vmem:[%s10872_s6 + $0x60] sm:$0xff]   ;;  %v8561_v30 = vld [vmem:[%s10872_s6 + $0x30] sm:$0xff]  }
 0x715   :  { %v4878_v42 = vpop.f32.mrb[32].mxu0  ;;  %v5021_v62 = vadd.f32 %v5003_v3, %v4987_v28  ;;  %v8566_v28 = vld [vmem:[%s10873_s7 + $0x64] ss:$8 sps:$4 sm:$0xff]  }
 0x716   :  { %v4880_v41 = vpop.f32.mrb[33].mxu0  ;;  %v4956_v1 = vmax.f32 %v4878_v42, 0.0  ;;  %5498 = vmatprep.subr.bf16.mxu1 %v8566_v28 }
 0x717   :  { %v4882_v36 = vpop.f32.mrb[34].mxu0  ;;  %v4957_v2 = vmax.f32 %v4880_v41, 0.0 }
 0x718   :  { %v4883_v43 = vpop.f32.mrb[35].mxu0  ;;  %v4990_v22 = vmul.f32 %v4965_v47, %v4956_v1  ;;  %v8570_v1 = vld [vmem:[%s10873_s7 + $0x80] ss:$8 sps:$4 sm:$0xff]  }
 0x719   :  { %v4991_v24 = vmul.f32 %v4969_v46, %v4957_v2  ;;  %v5059_v46 = vld [vmem:[%s10871_s5 + $0x8] sm:$0xf] }
 0x71a   :  { %v5024_v36 = vadd.f32 %v4999_v58, %v4990_v22  ;;  %v8552_v58 = vld [vmem:[%s10872_s6 + $0x50] sm:$0xff]  }
 0x71b   :  { %v5025_v44 = vadd.f32 %v5003_v3, %v4991_v24  ;;  %v8557_v3 = vld [vmem:[%s10872_s6 + $0x20] sm:$0xff]  }
 0x71c   :  { %v8576_v24 = vld [vmem:[%s10873_s7 + $0xa0] ss:$8 sps:$4 sm:$0xff]  }
 0x762   :  { %v4919_v53 = vpop.f32.mrb[32].mxu1 }
 0x763   :  { %v4950_v59 = vmax.f32 %v4919_v53, 0.0  ;;  %v4921_v63 = vpop.f32.mrb[33].mxu1  ;;  %v8550_v53 = vld [vmem:[%s10872_s6 + $0x48] sm:$0xff]  }
 0x764   :  { %v4951_v6 = vmax.f32 %v4921_v63, 0.0  ;;  %v4923_v9 = vpop.f32.mrb[34].mxu1  ;;  %v8555_v63 = vld [vmem:[%s10872_s6 + $0x18] sm:$0xff]  }
 0x765   :  { %v4984_v21 = vmul.f32 %v4973_v48, %v4950_v59  ;;  %v4954_v11 = vmax.f32 %v4923_v9, 0.0  ;;  %v4925_v13 = vpop.f32.mrb[35].mxu1  ;;  %v8553_v59 = vld [vmem:[%s10872_s6 + $0x10] sm:$0xff]  }
 0x766   :  { %v4985_v18 = vmul.f32 %v4977_v54, %v4951_v6  ;;  %v4955_v40 = vmax.f32 %v4925_v13, 0.0  ;;  %v8558_v6 = vld [vmem:[%s10872_s6 + $0x68] sm:$0xff]   ;;  %v8560_v9 = vld [vmem:[%s10872_s6 + $0x70] sm:$0xff]  }
 0x767   :  { %v5018_v52 = vadd.f32 %v5007_v50, %v4984_v21  ;;  %v4988_v57 = vmul.f32 %v4973_v48, %v4954_v11  ;;  %v8562_v21 = vld [vmem:[%s10872_s6 + $0x78] sm:$0xff]   ;;  %v8564_v13 = vld [vmem:[%s10873_s7 + $0x60] ss:$8 sps:$4 sm:$0xff]  }
 0x768   :  { %v5019_v12 = vadd.f32 %v5011_v35, %v4985_v18  ;;  %v4989_v4 = vmul.f32 %v4977_v54, %v4955_v40  ;;  %v8563_v11 = vld [vmem:[%s10872_s6 + $0x38] sm:$0xff]   ;;  %5499 = vmatpush1.bf16.msra.mxu1 %v8564_v13  ;;  %v8600_v13 = vld [vmem:[%s10873_s7 + $0xc0] ss:$8 sps:$4 sm:$0xff]  }
 0x769   :  { %v5052_v8 = vmax.f32 %v5016_v14, %v5018_v52  ;;  %v5022_v15 = vadd.f32 %v5007_v50, %v4988_v57  ;;  %v8569_v18 = vld [vmem:[%s10873_s7 + $0x74] ss:$8 sps:$4 sm:$0xff]   ;;  %v8567_v40 = vld [vmem:[%s10873_s7 + $0x70] ss:$8 sps:$4 sm:$0xff]   ;;  %v8572_v14 = vld [vmem:[%s10873_s7 + $0x84] ss:$8 sps:$4 sm:$0xff]  }
 0x76a   :  { %v5023_v16 = vadd.f32 %v5011_v35, %v4989_v4  ;;  %v4929_v17 = vpop.f32.mrb[36].mxu1  ;;  %v5053_v20 = vmax.f32 %v5017_v61, %v5019_v12  ;;  %5500 = vmatprep.subr.bf16.mxu1 %v8569_v18  ;;  %v8605_v18 = vld [vmem:[%s10873_s7 + $0xd4] ss:$8 sps:$4 sm:$0xff]  }
 0x76b   :  { %v5054_v23 = vmax.f32 %v5020_v7, %v5022_v15  ;;  %v4958_v10 = vmax.f32 %v4929_v17, 0.0  ;;  %v4931_v19 = vpop.f32.mrb[37].mxu1 }
 0x76c   :  { %v4959_v27 = vmax.f32 %v4931_v19, 0.0  ;;  %v4933_v33 = vpop.f32.mrb[38].mxu1  ;;  %v5055_v37 = vmax.f32 %v5021_v62, %v5023_v16  ;;  %5501 = vmatpush1.bf16.msra.mxu1 %v8567_v40  ;;  %v8578_v19 = vld [vmem:[%s10873_s7 + $0xa4] ss:$8 sps:$4 sm:$0xff]   ;;  %v8603_v40 = vld [vmem:[%s10873_s7 + $0xd0] ss:$8 sps:$4 sm:$0xff]  }
 0x76d   :  { %v4992_v38 = vmul.f32 %v4973_v48, %v4958_v10  ;;  %v4934_v39 = vpop.f32.mrb[39].mxu1  ;;  %v7693_v32 = vpack.c.bf16 %v5054_v23, %v5052_v8  ;;  %v7460_v48 = vld [vmem:[%s10871_s5 + $0x10] sm:$0xff]  ;;  %5502 = vmatprep.subr.bf16.mxu1 %v8572_v14  ;;  %v8608_v14 = vld [vmem:[%s10873_s7 + $0xe4] ss:$8 sps:$4 sm:$0xff]  }
 0x76e   :  { %v4993_v42 = vmul.f32 %v4977_v54, %v4959_v27  ;;  %v7691_v41 = vpack.c.bf16 %v5055_v37, %v5053_v20  ;;  %v7461_v54 = vld [vmem:[%s10871_s5 + $0x18] sm:$0xf]  ;;  %v8575_v23 = vld [vmem:[%s10873_s7 + $0x94] ss:$8 sps:$4 sm:$0xff]   ;;  %v8584_v37 = vld [vmem:[%s10873_s7 + $0x4] ss:$8 sps:$4 sm:$0xff]  }
 0x76f   :  { %v5026_v43 = vadd.f32 %v5007_v50, %v4992_v38  ;;  %v8554_v50 = vld [vmem:[%s10872_s6 + $0x58] sm:$0xff]   ;;  %v8618_v38 = vld [vmem:[#allocation12 + $0xa0] ss:$8 sps:$4 sm:$0xff]   ;;  %v8620_v39 = vld [vmem:[#allocation12 + $0xa4] ss:$8 sps:$4 sm:$0xff]  }
 0x770   :  { %v5027_v49 = vadd.f32 %v5011_v35, %v4993_v42  ;;  %7692 = vmatprep.subr.bf16.mxu0 %v7691_v41  ;;  %v8559_v35 = vld [vmem:[%s10872_s6 + $0x28] sm:$0xff]   ;;  %5503 = vmatpush1.bf16.msra.mxu1 %v8570_v1  ;;  %v8573_v10 = vld [vmem:[%s10873_s7 + $0x90] ss:$8 sps:$4 sm:$0xff]   ;;  %v8581_v27 = vld [vmem:[%s10873_s7 + $0xb4] ss:$8 sps:$4 sm:$0xff]  }
 0x771   :  { %v5056_v5 = vmax.f32 %v5024_v36, %v5026_v43  ;;  %7694 = vmatpush1.bf16.msra.mxu0 %v7693_v32  ;;  %5504 = vmatprep.subr.bf16.mxu1 %v8575_v23  ;;  %v8579_v33 = vld [vmem:[%s10873_s7 + $0xb0] ss:$8 sps:$4 sm:$0xff]   ;;  %v8624_v36 = vld [vmem:[#allocation12 + $0xc0] ss:$8 sps:$4 sm:$0xff]   ;;  %v8629_v43 = vld [vmem:[#allocation12 + $0xd4] ss:$8 sps:$4 sm:$0xff]  }
 0x772   :  { %v5057_v47 = vmax.f32 %v5025_v44, %v5027_v49  ;;  %v8621_v42 = vld [vmem:[#allocation12 + $0xb0] ss:$8 sps:$4 sm:$0xff]   ;;  %v8606_v1 = vld [vmem:[%s10873_s7 + $0xe0] ss:$8 sps:$4 sm:$0xff]   ;;  %v8641_v23 = vld [vmem:[#allocation12 + $0x114] ss:$8 sps:$4 sm:$0xff]  }
 0x773   :  { %v8627_v44 = vld [vmem:[#allocation12 + $0xd0] ss:$8 sps:$4 sm:$0xff]  }
 0x774   :  { %5070 = vmatprep.subr.mxu0 %v5057_v47  ;;  %5505 = vmatpush1.bf16.msra.mxu1 %v8573_v10  ;;  %v8639_v10 = vld [vmem:[#allocation12 + $0x110] ss:$8 sps:$4 sm:$0xff]  }
 0x775   :  { %5071 = vmatpush1.msra.mxu0 %v5056_v5  ;;  %5506 = vmatprep.subr.bf16.mxu1 %v8578_v19  ;;  %v8644_v19 = vld [vmem:[#allocation12 + $0x124] ss:$8 sps:$4 sm:$0xff]  }
 0x776   :  { %7458 = vmatmul.mubr.msk.f32.vlgmr.msra.gmra.mrb[36].mxu0 %vm1924_vm6, %v5058_v29  ;;  %7696 = vmatprep.subr.bf16.mxu0 %v7691_v41  ;;  %v8626_v41 = vld [vmem:[#allocation12 + $0xc4] ss:$8 sps:$4 sm:$0xff]  }
 0x777   :  { %7698 = vmatpush1.bf16.msra.mxu0 %v7693_v32  ;;  %5136 = vmatprep.mubr.f32.mxu0 %v8860_v60  ;;  %v8623_v32 = vld [vmem:[#allocation12 + $0xb4] ss:$8 sps:$4 sm:$0xff]  }
 0x778   :  { %5155 = vmatprep.subr.mxu0 %v5057_v47  ;;  %5507 = vmatpush1.bf16.msra.mxu1 %v8576_v24  ;;  %v8642_v24 = vld [vmem:[#allocation12 + $0x120] ss:$8 sps:$4 sm:$0xff]  }
 0x779   :  { %5508 = vmatprep.subr.bf16.mxu1 %v8581_v27  ;;  %v8647_v27 = vld [vmem:[#allocation12 + $0x134] ss:$8 sps:$4 sm:$0xff]  }
 0x77a   :  { %7459 = vmatmul.mubr.msk.f32.gmra.mrb[38].mxu0 %vm1924_vm6, %v5059_v46 }
 0x77b   :  { %5156 = vmatpush1.msra.mxu0 %v5056_v5  ;;  %5215 = vmatprep.mubr.f32.mxu0 %v8860_v60 }
 0x77c   :  { %7635 = vmatprep.subr.bf16.mxu0 %v8548_v56  ;;  %5509 = vmatpush1.bf16.msra.mxu1 %v8579_v33  ;;  %v8645_v33 = vld [vmem:[#allocation12 + $0x130] ss:$8 sps:$4 sm:$0xff]  }
 0x77d   :  { %5604 = vmatprep.subr.bf16.mxu1 %v8584_v37  ;;  %v8650_v37 = vld [vmem:[#allocation12 + $0x4] ss:$8 sps:$4 sm:$0xff]  }
 0x77e   :  { %7462 = vmatmul.mubr.msk.f32.vlgmr.msra.gmra.mrb[40].mxu0 %vm1924_vm6, %v7460_v48  ;;  %v8582_v48 = vld [vmem:[%s10873_s7] ss:$8 sps:$4 sm:$0xff]  }
 0x77f   :  { %5221 = vmatprep.mubr.f32.mxu0 %v8860_v60  ;;  %7636 = vmatpush3.bf16.msra.mxu0 %v8549_v51 }
 0x780   :  { %7637 = vmatprep.subr.bf16.mxu0 %v8550_v53 }
 0x782   :  { %7463 = vmatmul.mubr.msk.f32.gmra.mrb[42].mxu0 %vm1924_vm6, %v7461_v54 }
 0x783   :  { %7638 = vmatpush3.bf16.msra.mxu0 %v8551_v55  ;;  %v8587_v55 = vld [vmem:[%s10873_s7 + $0x14] ss:$8 sps:$4 sm:$0xff]  }
 0x784   :  { %7639 = vmatprep.subr.bf16.mxu0 %v8552_v58  ;;  %v8585_v58 = vld [vmem:[%s10873_s7 + $0x10] ss:$8 sps:$4 sm:$0xff]  }
 0x787   :  { %7640 = vmatpush3.bf16.msra.mxu0 %v8553_v59  ;;  %v8590_v59 = vld [vmem:[%s10873_s7 + $0x24] ss:$8 sps:$4 sm:$0xff]  }
 0x788   :  { %7641 = vmatprep.subr.bf16.mxu0 %v8554_v50  ;;  %v8588_v50 = vld [vmem:[%s10873_s7 + $0x20] ss:$8 sps:$4 sm:$0xff]  }
 0x78b   :  { %7642 = vmatpush3.bf16.msra.mxu0 %v8555_v63  ;;  %v8593_v63 = vld [vmem:[%s10873_s7 + $0x34] ss:$8 sps:$4 sm:$0xff]  }
 0x78c   :  { %7643 = vmatprep.subr.bf16.mxu0 %v8556_v45  ;;  %v8591_v45 = vld [vmem:[%s10873_s7 + $0x30] ss:$8 sps:$4 sm:$0xff]  }
 0x78f   :  { %7644 = vmatpush3.bf16.msra.mxu0 %v8557_v3  ;;  %v8596_v3 = vld [vmem:[%s10873_s7 + $0x44] ss:$8 sps:$4 sm:$0xff]  }
 0x790   :  { %7645 = vmatprep.subr.bf16.mxu0 %v8558_v6  ;;  %v8594_v6 = vld [vmem:[%s10873_s7 + $0x40] ss:$8 sps:$4 sm:$0xff]  }
 0x793   :  { %7646 = vmatpush3.bf16.msra.mxu0 %v8559_v35  ;;  %v8599_v35 = vld [vmem:[%s10873_s7 + $0x54] ss:$8 sps:$4 sm:$0xff]  }
 0x794   :  { %7647 = vmatprep.subr.bf16.mxu0 %v8560_v9  ;;  %v8597_v9 = vld [vmem:[%s10873_s7 + $0x50] ss:$8 sps:$4 sm:$0xff]  }
 0x797   :  { %7648 = vmatpush3.bf16.msra.mxu0 %v8561_v30  ;;  %v8602_v30 = vld [vmem:[%s10873_s7 + $0xc4] ss:$8 sps:$4 sm:$0xff]  }
 0x798   :  { %7649 = vmatprep.subr.bf16.mxu0 %v8562_v21 }
 0x79b   :  { %7650 = vmatpush3.bf16.msra.mxu0 %v8563_v11 }
 0x79c   :  { %5980 = vmatprep.subr.bf16.mxu0 %v8620_v39  ;;  %v6389_v39 = vld [vmem:[%s10877_s11 + $0x8] sm:$0xff] }
 0x849   :  { %v5132_v52 = vpop.f32.mrb[36].mxu0 }
 0x84a   :  { %v5134_v57 = vpop.f32.mrb[37].mxu0 }
 0x84d   :  { %v5138_v61 = vpop.f32.mrb[38].mxu0 }
 0x84e   :  { %v5140_v2 = vpop.f32.mrb[39].mxu0 }
 0x851   :  { %v5217_v12 = vpop.f32.mrb[40].mxu0 }
 0x852   :  { %v5228_v4 = vmax.f32 %v5132_v52, %v5217_v12  ;;  %v5219_v7 = vpop.f32.mrb[41].mxu0  ;;  %v8611_v52 = vld [vmem:[%s10873_s7 + $0xf4] ss:$8 sps:$4 sm:$0xff]   ;;  %v8615_v12 = vld [vmem:[%s10873_s7 + $0x110] ss:$8 sps:$4 sm:$0xff]  }
 0x853   :  { %v5229_v8 = vmax.f32 %v5134_v57, %v5219_v7  ;;  %v8614_v57 = vld [vmem:[%s10873_s7 + $0x104] ss:$8 sps:$4 sm:$0xff]  }
 0x855   :  { %v5223_v15 = vpop.f32.mrb[42].mxu0 }
 0x856   :  { %v5230_v62 = vmax.f32 %v5138_v61, %v5223_v15  ;;  %v5225_v16 = vpop.f32.mrb[43].mxu0  ;;  %v8612_v61 = vld [vmem:[%s10873_s7 + $0x100] ss:$8 sps:$4 sm:$0xff]   ;;  %v8632_v15 = vld [vmem:[#allocation12 + $0xe4] ss:$8 sps:$4 sm:$0xff]  }
 0x857   :  { %v5231_v17 = vmax.f32 %v5140_v2, %v5225_v16  ;;  %v8617_v2 = vld [vmem:[%s10873_s7 + $0x114] ss:$8 sps:$4 sm:$0xff]  }
 0x858   :  { %v5232_v20 = vpack.c.bf16 %v5230_v62, %v5228_v4  ;;  %v8630_v62 = vld [vmem:[#allocation12 + $0xe0] ss:$8 sps:$4 sm:$0xff]   ;;  %v8635_v16 = vld [vmem:[#allocation12 + $0xf4] ss:$8 sps:$4 sm:$0xff]  }
 0x859   :  { %v5233_v22 = vpack.c.bf16 %v5231_v17, %v5229_v8  ;;  %v8633_v17 = vld [vmem:[#allocation12 + $0xf0] ss:$8 sps:$4 sm:$0xff]  }
 0x85b   :  { %5394 = vmatprep.mubr.bf16.mxu0 %v5233_v22  ;;  %v8636_v22 = vld [vmem:[#allocation12 + $0x100] ss:$8 sps:$4 sm:$0xff]  }
 0x85c   :  { %5395 = vmatmul.mubr.bf16.vlgmr.msra.gmra.mrb[44].mxu0 %v5232_v20  ;;  %v8638_v20 = vld [vmem:[#allocation12 + $0x104] ss:$8 sps:$4 sm:$0xff]  }
 0x85d   :  { %5981 = vmatpush1.bf16.msra.mxu0 %v8618_v38  ;;  %v6388_v38 = vld [vmem:[%s10877_s11] sm:$0xff] }
 0x85e   :  { %5982 = vmatprep.subr.bf16.mxu0 %v8623_v32  ;;  %v6390_v32 = vld [vmem:[%s10877_s11 + $0x10] sm:$0xff] }
 0x861   :  { %5983 = vmatpush1.bf16.msra.mxu0 %v8621_v42  ;;  %v8861_v42 = vmov 0.0|0.0  }
 0x862   :  { %5984 = vmatprep.subr.bf16.mxu0 %v8626_v41  ;;  %v7700_v41 = vpack.c.bf16 %v6389_v39, %v6388_v38  ;;  %v8651_v38 = vld [vmem:[#allocation12 + $0x10] ss:$8 sps:$4 sm:$0xff]   ;;  %v8656_v39 = vld [vmem:[#allocation12 + $0x24] ss:$8 sps:$4 sm:$0xff]  }
 0x865   :  { %5985 = vmatpush1.bf16.msra.mxu0 %v8624_v36  ;;  %v6391_v36 = vld [vmem:[%s10877_s11 + $0x18] sm:$0xff] }
 0x866   :  { %5986 = vmatprep.subr.bf16.mxu0 %v8629_v43  ;;  %v7703_v43 = vpack.c.bf16 %v6391_v36, %v6390_v32  ;;  %v8654_v32 = vld [vmem:[#allocation12 + $0x20] ss:$8 sps:$4 sm:$0xff]   ;;  %v8657_v36 = vld [vmem:[#allocation12 + $0x30] ss:$8 sps:$4 sm:$0xff]  }
 0x869   :  { %5987 = vmatpush1.bf16.msra.mxu0 %v8627_v44  ;;  %v6392_v44 = vld [vmem:[%s10877_s11 + $0x20] sm:$0xff] }
 0x86a   :  { %5988 = vmatprep.subr.bf16.mxu0 %v8632_v15 }
 0x86d   :  { %5989 = vmatpush1.bf16.msra.mxu0 %v8630_v62 }
 0x86e   :  { %5990 = vmatprep.subr.bf16.mxu0 %v8635_v16 }
 0x871   :  { %5991 = vmatpush1.bf16.msra.mxu0 %v8633_v17 }
 0x872   :  { %5992 = vmatprep.subr.bf16.mxu0 %v8638_v20 }
 0x875   :  { %5993 = vmatpush1.bf16.msra.mxu0 %v8636_v22 }
 0x876   :  { %5994 = vmatprep.subr.bf16.mxu0 %v8641_v23 }
 0x879   :  { %5995 = vmatpush1.bf16.msra.mxu0 %v8639_v10 }
 0x87a   :  { %5996 = vmatprep.subr.bf16.mxu0 %v8644_v19 }
 0x87d   :  { %5997 = vmatpush1.bf16.msra.mxu0 %v8642_v24  ;;  %v8648_v24 = vld [vmem:[#allocation12] ss:$8 sps:$4 sm:$0xff]  }
 0x87e   :  { %5998 = vmatprep.subr.bf16.mxu0 %v8647_v27 }
 0x881   :  { %5999 = vmatpush1.bf16.msra.mxu0 %v8645_v33  ;;  %v8653_v33 = vld [vmem:[#allocation12 + $0x14] ss:$8 sps:$4 sm:$0xff]  }
 0x882   :  { %6124 = vmatprep.subr.bf16.mxu0 %v8650_v37 }
 0x92f   :  { %v7651_v49 = vpop.f32.mrb[44].mxu0 }
 0x930   :  { %v7652_v5 = vpop.f32.mrb[45].mxu0 }
 0x931   :  { %v7653_v47 = vadd.f32 %v7652_v5, %v7651_v49  ;;  %v7654_v29 = vpop.f32.mrb[46].mxu0  ;;  %v6393_v49 = vld [vmem:[%s10877_s11 + $0x28] sm:$0xff] }
 0x932   :  { %v7655_v46 = vpop.f32.mrb[47].mxu0  ;;  %v7706_v5 = vpack.c.bf16 %v6393_v49, %v6392_v44  ;;  %v8660_v44 = vld [vmem:[#allocation12 + $0x40] ss:$8 sps:$4 sm:$0xff]   ;;  %v8665_v49 = vld [vmem:[#allocation12 + $0x54] ss:$8 sps:$4 sm:$0xff]  }
 0x933   :  { %5403 = vst.msk [vmem:[#allocation4] sm:$0xff] %vm2269_vm7, %v7653_v47  ;;  %v7656_v56 = vadd.f32 %v7655_v46, %v7654_v29  ;;  %v6394_v47 = vld [vmem:[%s10877_s11 + $0x30] sm:$0xff]  ;;  %v6395_v29 = vld [vmem:[%s10877_s11 + $0x38] sm:$0xff] }
 0x934   :  { %v7709_v46 = vpack.c.bf16 %v6395_v29, %v6394_v47  ;;  %v8668_v47 = vld [vmem:[#allocation12 + $0x64] ss:$8 sps:$4 sm:$0xff]   ;;  %v8666_v29 = vld [vmem:[#allocation12 + $0x60] ss:$8 sps:$4 sm:$0xff]  }
 0x935   :  { %5404 = vst.msk [vmem:[#allocation4 + $0x8] sm:$0xf] %vm2271_vm8, %v7656_v56  ;;  %v6396_v56 = vld [vmem:[%s10877_s11 + $0x40] sm:$0xff] }
 0x93a   :  { %v5405_v11 = vld [vmem:[#allocation4] sm:$0xff] }
 0x93c   :  { %v5420_v51 = vld [vmem:[#allocation4 + $0x1] sm:$0xff]  ;;  %v5421_v53 = vld [vmem:[#allocation4 + $0x9] sm:$0x3] }
 0x93d   :  { %v5422_v54 = vpack.c.bf16 %v5421_v53, %v5420_v51  ;;  %v5406_v21 = vld [vmem:[#allocation4 + $0x8] sm:$0x3]  ;;  %v5648_v7 = vld [vmem:[#allocation4 + $0xa] sm:$0x3]  ;;  %v6398_v53 = vld [vmem:[%s10877_s11 + $0x50] sm:$0xff] }
 0x93e   :  { %v5407_v28 = vpack.c.bf16 %v5406_v21, %v5405_v11  ;;  %v5647_v4 = vld [vmem:[#allocation4 + $0x2] sm:$0xff] }
 0x93f   :  { %7504 = vmatmul.mubr.msk.bf16.vlgmr.msra.gmra.mrb[40].mxu1 %vm2269_vm7, %v5422_v54  ;;  %v5649_v8 = vpack.c.bf16 %v5648_v7, %v5647_v4  ;;  %v6399_v54 = vld [vmem:[%s10877_s11 + $0x58] sm:$0xff] }
 0x940   :  { %5605 = vmatpush1.bf16.msra.mxu1 %v8582_v48  ;;  %5636 = vmatprep.mubr.bf16.mxu1 %v8859_v0  ;;  %v6397_v48 = vld [vmem:[%s10877_s11 + $0x48] sm:$0xff] }
 0x941   :  { %5606 = vmatprep.subr.bf16.mxu1 %v8587_v55  ;;  %v7712_v51 = vpack.c.bf16 %v6397_v48, %v6396_v56  ;;  %v5776_v55 = vld [vmem:[#allocation11] ss:$2 sm:$0x3]  ;;  %v8669_v56 = vld [vmem:[#allocation12 + $0x70] ss:$8 sps:$4 sm:$0xff]  }
 0x942   :  { %v8674_v48 = vld [vmem:[#allocation12 + $0x84] ss:$8 sps:$4 sm:$0xff]  }
 0x944   :  { %5607 = vmatpush1.bf16.msra.mxu1 %v8585_v58  ;;  %v5792_v58 = vld [vmem:[#allocation11 + $0x1] ss:$2 sm:$0x3] }
 0x945   :  { %5608 = vmatprep.subr.bf16.mxu1 %v8590_v59  ;;  %v7715_v59 = vpack.c.bf16 %v6399_v54, %v6398_v53  ;;  %v8677_v53 = vld [vmem:[#allocation12 + $0x94] ss:$8 sps:$4 sm:$0xff]  }
 0x948   :  { %5609 = vmatpush1.bf16.msra.mxu1 %v8588_v50  ;;  %v5781_v50 = vrot.slane %v5776_v55, %v9271_v31 }
 0x949   :  { %5610 = vmatprep.subr.bf16.mxu1 %v8593_v63 }
 0x94c   :  { %5611 = vmatpush1.bf16.msra.mxu1 %v8591_v45  ;;  %v5785_v45 = vrot.slane %v5776_v55, %v9274_v34  ;;  %v8675_v55 = vld [vmem:[#allocation12 + $0x90] ss:$8 sps:$4 sm:$0xff]  }
 0x94d   :  { %5612 = vmatprep.subr.bf16.mxu1 %v8596_v3 }
 0x950   :  { %5613 = vmatpush1.bf16.msra.mxu1 %v8594_v6  ;;  %v5797_v6 = vrot.slane %v5792_v58, %v9271_v31 }
 0x951   :  { %5614 = vmatprep.subr.bf16.mxu1 %v8599_v35 }
 0x954   :  { %5615 = vmatpush1.bf16.msra.mxu1 %v8597_v9 }
 0x955   :  { %5725 = vmatprep.subr.bf16.mxu1 %v8602_v30  ;;  %v5801_v30 = vrot.slane %v5792_v58, %v9274_v34  ;;  %v8680_v58 = vld [vmem:[#allocation12 + $0x144] ss:$8 sps:$4 sm:$0xff]  }
 0x957   :  { %7517 = vmatmul.mubr.msk.bf16.vlgmr.msra.gmra.mrb[40].mxu1 %vm2269_vm7, %v5407_v28 }
 0x958   :  { %5726 = vmatpush1.bf16.msra.mxu1 %v8600_v13  ;;  %5757 = vmatprep.mubr.bf16.mxu1 %v8859_v0  ;;  %v8609_v0 = vld [vmem:[%s10873_s7 + $0xf0] ss:$8 sps:$4 sm:$0xff]  }
 0x959   :  { %5727 = vmatprep.subr.bf16.mxu1 %v8605_v18 }
 0x95c   :  { %5728 = vmatpush1.bf16.msra.mxu1 %v8603_v40 }
 0x95d   :  { %5729 = vmatprep.subr.bf16.mxu1 %v8608_v14 }
 0x960   :  { %5730 = vmatpush1.bf16.msra.mxu1 %v8606_v1 }
 0x961   :  { %5731 = vmatprep.subr.bf16.mxu1 %v8611_v52 }
 0x964   :  { %5732 = vmatpush1.bf16.msra.mxu1 %v8609_v0 }
 0x965   :  { %5733 = vmatprep.subr.bf16.mxu1 %v8614_v57 }
 0x968   :  { %5734 = vmatpush1.bf16.msra.mxu1 %v8612_v61 }
 0x969   :  { %5735 = vmatprep.subr.bf16.mxu1 %v8617_v2 }
 0x96c   :  { %5736 = vmatpush1.bf16.msra.mxu1 %v8615_v12 }
 0x96d   :  { %7699 = vmatprep.subr.bf16.mxu1 %v8861_v42 }
 0x96f   :  { %7542 = vmatmul.mubr.msk.bf16.vlgmr.msra.gmra.mrb[40].mxu1 %vm2269_vm7, %v5649_v8 }
 0x970   :  { %7701 = vmatpush1.bf16.msra.mxu1 %v7700_v41  ;;  %v8659_v41 = vld [vmem:[#allocation12 + $0x34] ss:$8 sps:$4 sm:$0xff]  }
 0x971   :  { %7702 = vmatprep.subr.bf16.mxu1 %v8861_v42 }
 0x974   :  { %7704 = vmatpush1.bf16.msra.mxu1 %v7703_v43  ;;  %v8662_v43 = vld [vmem:[#allocation12 + $0x44] ss:$8 sps:$4 sm:$0xff]  }
 0x975   :  { %7705 = vmatprep.subr.bf16.mxu1 %v8861_v42 }
 0x978   :  { %7707 = vmatpush1.bf16.msra.mxu1 %v7706_v5  ;;  %v8663_v5 = vld [vmem:[#allocation12 + $0x50] ss:$8 sps:$4 sm:$0xff]  }
 0x979   :  { %7708 = vmatprep.subr.bf16.mxu1 %v8861_v42 }
 0x97c   :  { %7710 = vmatpush1.bf16.msra.mxu1 %v7709_v46  ;;  %v8671_v46 = vld [vmem:[#allocation12 + $0x74] ss:$8 sps:$4 sm:$0xff]  }
 0x97d   :  { %7711 = vmatprep.subr.bf16.mxu1 %v8861_v42 }
 0x980   :  { %7713 = vmatpush1.bf16.msra.mxu1 %v7712_v51  ;;  %v8672_v51 = vld [vmem:[#allocation12 + $0x80] ss:$8 sps:$4 sm:$0xff]  }
 0x981   :  { %7714 = vmatprep.subr.bf16.mxu1 %v8861_v42 }
 0x984   :  { %7716 = vmatpush1.bf16.msra.mxu1 %v7715_v59 }
 0x985   :  { %7717 = vmatprep.subr.bf16.mxu1 %v8861_v42 }
 0xa42   :  { %v5759_v63 = vpop.f32.mrb[40].mxu1 }
 0xa43   :  { %v5772_v3 = vmax.f32 %v5759_v63, 0.0  ;;  %v5761_v35 = vpop.f32.mrb[41].mxu1  ;;  %v8678_v63 = vld [vmem:[#allocation12 + $0x140] ss:$8 sps:$4 sm:$0xff]  }
 0xa44   :  { %v5773_v9 = vmax.f32 %v5761_v35, 0.0  ;;  %v5763_v21 = vpop.f32.mrb[42].mxu1  ;;  %v8681_v35 = vld [vmem:[#allocation12 + $0x150] ss:$8 sps:$4 sm:$0xff]  }
 0xa45   :  { %v5788_v11 = vmul.f32 %v5781_v50, %v5772_v3  ;;  %v5774_v13 = vmax.f32 %v5763_v21, 0.0  ;;  %v5765_v28 = vpop.f32.mrb[43].mxu1  ;;  %v8683_v3 = vld [vmem:[#allocation12 + $0x154] ss:$8 sps:$4 sm:$0xff]  }
 0xa46   :  { %v5789_v18 = vmul.f32 %v5785_v45, %v5773_v9  ;;  %v5775_v40 = vmax.f32 %v5765_v28, 0.0  ;;  %v8686_v9 = vld [vmem:[#allocation12 + $0x164] ss:$8 sps:$4 sm:$0xff]   ;;  %v8689_v21 = vld [vmem:[#allocation12 + $0x174] ss:$8 sps:$4 sm:$0xff]  }
 0xa47   :  { %v10751_v14 = vadd.f32 %v5797_v6, %v5788_v11  ;;  %v5790_v1 = vmul.f32 %v5781_v50, %v5774_v13  ;;  %v8687_v11 = vld [vmem:[#allocation12 + $0x170] ss:$8 sps:$4 sm:$0xff]   ;;  %v8692_v13 = vld [vmem:[#allocation12 + $0x184] ss:$8 sps:$4 sm:$0xff]   ;;  %v8690_v28 = vld [vmem:[#allocation12 + $0x180] ss:$8 sps:$4 sm:$0xff]  }
 0xa48   :  { %v5805_v52 = vadd.f32 %v5801_v30, %v5789_v18  ;;  %v5791_v0 = vmul.f32 %v5785_v45, %v5775_v40  ;;  %v8695_v18 = vld [vmem:[#allocation12 + $0x194] ss:$8 sps:$4 sm:$0xff]   ;;  %v8693_v40 = vld [vmem:[#allocation12 + $0x190] ss:$8 sps:$4 sm:$0xff]  }
 0xa49   :  { %5808 = vst [vmem:[#allocation5] sm:$0xff] %v10751_v14  ;;  %v5806_v57 = vadd.f32 %v5797_v6, %v5790_v1  ;;  %v5814_v45 = vpack.c.bf16 %v10751_v14, %v10751_v14  ;;  %v8698_v14 = vld [vmem:[#allocation12 + $0x1a4] ss:$8 sps:$4 sm:$0xff]   ;;  %v8696_v1 = vld [vmem:[#allocation12 + $0x1a0] ss:$8 sps:$4 sm:$0xff]  }
 0xa4a   :  { %5809 = vst.msk [vmem:[#allocation5 + $0x8] sm:$0xff] %vm2680_vm9, %v5805_v52  ;;  %v5807_v61 = vadd.f32 %v5801_v30, %v5791_v0  ;;  %v8684_v30 = vld [vmem:[#allocation12 + $0x160] ss:$8 sps:$4 sm:$0xff]   ;;  %v8701_v52 = vld [vmem:[#allocation12 + $0x1b4] ss:$8 sps:$4 sm:$0xff]  }
 0xa4b   :  { %5810 = vst [vmem:[#allocation5 + $0x10] sm:$0x3] %v5806_v57  ;;  %v8699_v0 = vld [vmem:[#allocation12 + $0x1b0] ss:$8 sps:$4 sm:$0xff]   ;;  %v8704_v57 = vld [vmem:[#allocation12 + $0x1c4] ss:$8 sps:$4 sm:$0xff]  }
 0xa4c   :  { %5811 = vst.msk [vmem:[#allocation5 + $0x18] sm:$0x3] %vm2683_vm10, %v5807_v61  ;;  %v8702_v61 = vld [vmem:[#allocation12 + $0x1c0] ss:$8 sps:$4 sm:$0xff]  }
 0xa50   :  { %v5836_v2 = vld [vmem:[#allocation5] sm:$0xfe] }
 0xa51   :  { %v5837_v4 = vld [vmem:[#allocation5 + $0x8] sm:$0xfe] }
 0xa52   :  { %v5838_v12 = vld [vmem:[#allocation5 + $0x10] sm:$0x1]  ;;  %v5813_v10 = vld [vmem:[#allocation5 + $0x8] sm:$0xff] }
 0xa53   :  { %v5839_v7 = vld [vmem:[#allocation5 + $0x18] sm:$0x1]  ;;  %v5840_v8 = vpack.c.bf16 %v5838_v12, %v5836_v2  ;;  %v5815_v37 = vpack.c.bf16 %v5813_v10, %v5813_v10  ;;  %v6166_v59 = vld [vmem:[#allocation5 + $0x8] sm:$0xfc]  ;;  %v6167_v12 = vld [vmem:[#allocation5 + $0x10] sm:$0x3] }
 0xa54   :  { %v5841_v15 = vpack.c.bf16 %v5839_v7, %v5837_v4  ;;  %v6168_v54 = vld [vmem:[#allocation5 + $0x18] sm:$0x3]  ;;  %v8707_v2 = vld [vmem:[#allocation12 + $0x1d4] ss:$8 sps:$4 sm:$0xff]   ;;  %v8705_v4 = vld [vmem:[#allocation12 + $0x1d0] ss:$8 sps:$4 sm:$0xff]  }
 0xa55   :  { %v5865_v62 = vshll.u32 %v5840_v8, 16  ;;  %v5863_v23 = vshrl.u32 %v5840_v8, 16  ;;  %v6170_v50 = vpack.c.bf16 %v6168_v54, %v6166_v59  ;;  %v6165_v7 = vld [vmem:[#allocation5] sm:$0xfc]  ;;  %v6404_v10 = vld [vmem:[%s10877_s11 + $0x80] sm:$0xff] }
 0xa56   :  { %v5872_v16 = vshll.u32 %v5841_v15, 16  ;;  %v5870_v20 = vshrl.u32 %v5841_v15, 16  ;;  %v6169_v8 = vpack.c.bf16 %v6167_v12, %v6165_v7 }
 0xa57   :  { %v5867_v17 = vrot.slane %v5865_v62, 1  ;;  %v6194_v6 = vrot.slane %v6170_v50, 1  ;;  %v6400_v62 = vld [vmem:[%s10877_s11 + $0x60] sm:$0xff] }
 0xa58   :  { %v5874_v22 = vrot.slane %v5872_v16, 1  ;;  %v6193_v15 = vrot.slane %v6169_v8, 1  ;;  %v6401_v16 = vld [vmem:[%s10877_s11 + $0x68] sm:$0xff]  ;;  %v6358_v50 = vld [vmem:[#allocation14 + $0x1] ss:$2 sm:$0x3] }
 0xa59   :  { %v5868_v27 = vor.u32 %v5867_v17, %v5863_v23  ;;  %v7718_v17 = vpack.c.bf16 %v6401_v16, %v6400_v62 }
 0xa5a   :  { %v5875_v19 = vor.u32 %v5874_v22, %v5870_v20  ;;  %v6402_v20 = vld [vmem:[%s10877_s11 + $0x70] sm:$0xff]  ;;  %v6403_v22 = vld [vmem:[%s10877_s11 + $0x78] sm:$0xff] }
 0xa5b   :  { %7719 = vmatpush1.bf16.msra.mxu1 %v7718_v17  ;;  %v7721_v23 = vpack.c.bf16 %v6403_v22, %v6402_v20 }
 0xa5c   :  { %7563 = vmatprep.mubr.msk.bf16.mxu0 %vm2680_vm9, %v5875_v19  ;;  %7720 = vmatprep.subr.bf16.mxu1 %v8861_v42  ;;  %v6405_v19 = vld [vmem:[%s10877_s11 + $0x88] sm:$0xff] }
 0xa5d   :  { %6013 = vmatmul.mubr.bf16.vlgmr.msra.gmra.mrb[48].mxu0 %v5868_v27  ;;  %v6406_v27 = vld [vmem:[%s10877_s11 + $0x90] sm:$0xff] }
 0xa5e   :  { %6125 = vmatpush1.bf16.msra.mxu0 %v8648_v24  ;;  %7584 = vmatprep.mubr.msk.bf16.mxu0 %vm2680_vm9, %v5815_v37  ;;  %v7724_v24 = vpack.c.bf16 %v6405_v19, %v6404_v10 }
 0xa5f   :  { %6126 = vmatprep.subr.bf16.mxu0 %v8653_v33  ;;  %7722 = vmatpush1.bf16.msra.mxu1 %v7721_v23  ;;  %v6407_v33 = vld [vmem:[%s10877_s11 + $0x98] sm:$0xff] }
 0xa60   :  { %7723 = vmatprep.subr.bf16.mxu1 %v8861_v42  ;;  %v7727_v37 = vpack.c.bf16 %v6407_v33, %v6406_v27 }
 0xa62   :  { %6127 = vmatpush1.bf16.msra.mxu0 %v8651_v38  ;;  %v6408_v38 = vld [vmem:[%s10877_s11 + $0xa0] sm:$0xff] }
 0xa63   :  { %6128 = vmatprep.subr.bf16.mxu0 %v8656_v39  ;;  %7725 = vmatpush1.bf16.msra.mxu1 %v7724_v24  ;;  %v6409_v39 = vld [vmem:[%s10877_s11 + $0xa8] sm:$0xff] }
 0xa64   :  { %7726 = vmatprep.subr.bf16.mxu1 %v8861_v42 }
 0xa66   :  { %6129 = vmatpush1.bf16.msra.mxu0 %v8654_v32  ;;  %v6410_v32 = vld [vmem:[%s10877_s11 + $0xb0] sm:$0xff] }
 0xa67   :  { %6130 = vmatprep.subr.bf16.mxu0 %v8659_v41  ;;  %7728 = vmatpush1.bf16.msra.mxu1 %v7727_v37  ;;  %v7730_v41 = vpack.c.bf16 %v6409_v39, %v6408_v38  ;;  %v6498_v38 = vld [vmem:[%s10879_s13] sm:$0xff]  ;;  %v6499_v39 = vld [vmem:[%s10879_s13 + $0x8] sm:$0xff] }
 0xa68   :  { %7729 = vmatprep.subr.bf16.mxu1 %v8861_v42 }
 0xa6a   :  { %6131 = vmatpush1.bf16.msra.mxu0 %v8657_v36  ;;  %v6411_v36 = vld [vmem:[%s10877_s11 + $0xb8] sm:$0xff] }
 0xa6b   :  { %6132 = vmatprep.subr.bf16.mxu0 %v8662_v43  ;;  %7731 = vmatpush1.bf16.msra.mxu1 %v7730_v41  ;;  %v7733_v43 = vpack.c.bf16 %v6411_v36, %v6410_v32  ;;  %v7736_v32 = vpack.c.bf16 %v6499_v39, %v6498_v38  ;;  %v6500_v41 = vld [vmem:[%s10879_s13 + $0x10] sm:$0xff]  ;;  %v6501_v36 = vld [vmem:[%s10879_s13 + $0x18] sm:$0xff] }
 0xa6c   :  { %7732 = vmatprep.subr.bf16.mxu1 %v8861_v42 }
 0xa6e   :  { %6133 = vmatpush1.bf16.msra.mxu0 %v8660_v44  ;;  %v3219_v44 = vld [vmem:[#allocation14] ss:$2 sm:$0x3] }
 0xa6f   :  { %6134 = vmatprep.subr.bf16.mxu0 %v8665_v49  ;;  %7734 = vmatpush1.bf16.msra.mxu1 %v7733_v43  ;;  %v3218_v49 = vmax.f32 %v10512_v26, 0.0  ;;  %v7739_v43 = vpack.c.bf16 %v6501_v36, %v6500_v41 }
 0xa70   :  { %7735 = vmatprep.subr.bf16.mxu1 %v8861_v42 }
 0xa72   :  { %6135 = vmatpush1.bf16.msra.mxu0 %v8663_v5  ;;  %v3228_v5 = vrot.slane %v3219_v44, %v9274_v34 }
 0xa73   :  { %6136 = vmatprep.subr.bf16.mxu0 %v8668_v47  ;;  %v3217_v47 = vmax.f32 %v10510_v25, 0.0 }
 0xa76   :  { %6137 = vmatpush1.bf16.msra.mxu0 %v8666_v29  ;;  %v3224_v29 = vrot.slane %v3219_v44, %v9271_v31 }
 0xa77   :  { %6138 = vmatprep.subr.bf16.mxu0 %v8671_v46  ;;  %v3234_v46 = vld [vmem:[#allocation14 + $0x1] ss:$2 sm:$0x3] }
 0xa7a   :  { %6139 = vmatpush1.bf16.msra.mxu0 %v8669_v56  ;;  %v3232_v56 = vmul.f32 %v3228_v5, %v3218_v49  ;;  %v7607_v49 = vld [vmem:[%s10878_s12] ss:$0 sm:$0xff] }
 0xa7b   :  { %6140 = vmatprep.subr.bf16.mxu0 %v8674_v48  ;;  %v3243_v48 = vrot.slane %v3234_v46, %v9274_v34 }
 0xa7d   :  { %v3247_v54 = vadd.f32 %v3243_v48, %v3232_v56  ;;  %v6589_v48 = vld [vmem:[%s10881_s15 + $0x8] sm:$0xff] }
 0xa7e   :  { %6141 = vmatpush1.bf16.msra.mxu0 %v8672_v51  ;;  %v3231_v51 = vmul.f32 %v3224_v29, %v3217_v47  ;;  %v7608_v29 = vld [vmem:[%s10878_s12 + $0x1] ss:$0 sm:$0xff] }
 0xa7f   :  { %6142 = vmatprep.subr.bf16.mxu0 %v8677_v53  ;;  %v3239_v53 = vrot.slane %v3234_v46, %v9271_v31  ;;  %v3255_v59 = vsel %vm3254_vm11, %v3247_v54, 0.0  ;;  %v7610_v54 = vld [vmem:[%s10880_s14] ss:$0 sm:$0xff] }
 0xa80   :  { %v3256_v25 = vrot.slane %v3255_v59, 4 }
 0xa82   :  { %6143 = vmatpush1.bf16.msra.mxu0 %v8675_v55  ;;  %v3246_v55 = vadd.f32 %v3239_v53, %v3231_v51 }
 0xa83   :  { %6299 = vmatprep.subr.bf16.mxu0 %v8680_v58  ;;  %v6344_v58 = vld [vmem:[#allocation14] ss:$2 sm:$0x3] }
 0xa84   :  { %v3248_v26 = vrot.slane %v3246_v55, 4 }
 0xa85   :  { %6157 = vmatmul.mubr.bf16.vlgmr.msra.gmra.mrb[48].mxu0 %v5814_v45 }
 0xa86   :  { %6300 = vmatpush1.bf16.msra.mxu0 %v8678_v63  ;;  %7605 = vmatprep.mubr.msk.bf16.mxu0 %vm2680_vm9, %v6194_v6  ;;  %v6349_v63 = vrot.slane %v6344_v58, %v9271_v31  ;;  %v3249_v6 = vadd.f32 %v3248_v26, %v3246_v55 }
 0xa87   :  { %6301 = vmatprep.subr.bf16.mxu0 %v8683_v3  ;;  %v6353_v3 = vrot.slane %v6344_v58, %v9274_v34 }
 0xa8a   :  { %6302 = vmatpush1.bf16.msra.mxu0 %v8681_v35 }
 0xa8b   :  { %6303 = vmatprep.subr.bf16.mxu0 %v8686_v9  ;;  %v6363_v9 = vrot.slane %v6358_v50, %v9271_v31 }
 0xa8e   :  { %6304 = vmatpush1.bf16.msra.mxu0 %v8684_v30 }
 0xa8f   :  { %6305 = vmatprep.subr.bf16.mxu0 %v8689_v21 }
 0xa92   :  { %6306 = vmatpush1.bf16.msra.mxu0 %v8687_v11  ;;  %v6367_v11 = vrot.slane %v6358_v50, %v9274_v34 }
 0xa93   :  { %6307 = vmatprep.subr.bf16.mxu0 %v8692_v13 }
 0xa96   :  { %6308 = vmatpush1.bf16.msra.mxu0 %v8690_v28 }
 0xa97   :  { %6309 = vmatprep.subr.bf16.mxu0 %v8695_v18 }
 0xa9a   :  { %6310 = vmatpush1.bf16.msra.mxu0 %v8693_v40  ;;  %v3257_v40 = vadd.f32 %v3256_v25, %v3255_v59 }
 0xa9b   :  { %6311 = vmatprep.subr.bf16.mxu0 %v8698_v14 }
 0xa9e   :  { %6312 = vmatpush1.bf16.msra.mxu0 %v8696_v1  ;;  %v3250_v1 = vrot.slane %v3249_v6, 2 }
 0xa9f   :  { %6313 = vmatprep.subr.bf16.mxu0 %v8701_v52 }
 0xaa0   :  { %v3251_v12 = vadd.f32 %v3250_v1, %v3249_v6 }
 0xaa2   :  { %6314 = vmatpush1.bf16.msra.mxu0 %v8699_v0  ;;  %v3252_v16 = vrot.slane %v3251_v12, 1 }
 0xaa3   :  { %6315 = vmatprep.subr.bf16.mxu0 %v8704_v57 }
 0xaa4   :  { %v3253_v10 = vadd.f32 %v3252_v16, %v3251_v12 }
 0xaa6   :  { %6316 = vmatpush1.bf16.msra.mxu0 %v8702_v61  ;;  %v3258_v61 = vrot.slane %v3257_v40, 2 }
 0xaa7   :  { %6317 = vmatprep.subr.bf16.mxu0 %v8707_v2 }
 0xaa8   :  { %v3259_v8 = vadd.f32 %v3258_v61, %v3257_v40 }
 0xaaa   :  { %6318 = vmatpush1.bf16.msra.mxu0 %v8705_v4  ;;  %v3260_v17 = vrot.slane %v3259_v8, 1 }
 0xaac   :  { %v3261_v24 = vadd.f32 %v3260_v17, %v3259_v8 }
 0xaad   :  { %6332 = vmatmul.mubr.bf16.vlgmr.msra.gmra.mrb[48].mxu0 %v6193_v15 }
 0xb80   :  { %v6333_v45 = vpop.f32.mrb[48].mxu0 }
 0xb81   :  { %v6342_v35 = vmax.f32 %v6333_v45, 0.0  ;;  %v6335_v30 = vpop.f32.mrb[49].mxu0 }
 0xb82   :  { %v6343_v21 = vmax.f32 %v6335_v30, 0.0  ;;  %v6337_v13 = vpop.f32.mrb[50].mxu0 }
 0xb83   :  { %v6356_v28 = vmul.f32 %v6349_v63, %v6342_v35  ;;  %v6338_v18 = vpop.f32.mrb[51].mxu0 }
 0xb84   :  { %v6357_v14 = vmul.f32 %v6353_v3, %v6343_v21 }
 0xb85   :  { %v6370_v52 = vadd.f32 %v6363_v9, %v6356_v28 }
 0xb86   :  { %v6371_v0 = vadd.f32 %v6367_v11, %v6357_v14 }
 0xb87   :  { %v6372_v57 = vrot.slane %v6370_v52, 4 }
 0xb88   :  { %v6378_v2 = vsel %vm3254_vm11, %v6371_v0, 0.0 }
 0xb89   :  { %v6373_v4 = vadd.f32 %v6372_v57, %v6370_v52  ;;  %v6379_v7 = vrot.slane %v6378_v2, 4 }
 0xb8b   :  { %v6374_v31 = vrot.slane %v6373_v4, 2  ;;  %v6380_v15 = vadd.f32 %v6379_v7, %v6378_v2 }
 0xb8d   :  { %v6375_v62 = vadd.f32 %v6374_v31, %v6373_v4  ;;  %v6381_v34 = vrot.slane %v6380_v15, 2 }
 0xb8f   :  { %v6382_v20 = vadd.f32 %v6381_v34, %v6380_v15  ;;  %v6376_v22 = vrot.slane %v6375_v62, 1 }
 0xb91   :  { %v6383_v23 = vrot.slane %v6382_v20, 1  ;;  %v6377_v19 = vadd.f32 %v6376_v22, %v6375_v62 }
 0xb93   :  { %v6384_v27 = vadd.f32 %v6383_v23, %v6382_v20  ;;  %v6386_v33 = vsel %vm6385_vm12, %v3253_v10, %v6377_v19 }
 0xb95   :  { %v6387_v37 = vsel %vm6385_vm12, %v3261_v24, %v6384_v27 }
 0xb96   :  { %7606 = vmatprep.mubr.msk.f32.mxu1 %vm3254_vm11, %v6387_v37 }
 0xb97   :  { %6480 = vmatmul.mubr.f32.vlgmr.msra.gmra.mrb[44].mxu1 %v6386_v33 }
 0xb98   :  { %7737 = vmatpush3.bf16.msra.mxu1 %v7736_v32  ;;  %7673 = vmatprep.mubr.msk.f32.mxu1 %vm8862_vm13, %v8860_v60 }
 0xb99   :  { %7738 = vmatprep.subr.bf16.mxu1 %v8861_v42 }
 0xb9c   :  { %7740 = vmatpush3.bf16.msra.mxu1 %v7739_v43 }
 0xb9d   :  { %7741 = vmatprep.subr.bf16.mxu1 %v8861_v42  ;;  %v6588_v42 = vld [vmem:[%s10881_s15] sm:$0xff] }
 0xb9e   :  { %v7742_v51 = vpack.c.bf16 %v6589_v48, %v6588_v42 }
 0xc6a   :  { %v6481_v44 = vpop.f32.mrb[44].mxu1 }
 0xc6b   :  { %v6485_v5 = vmax.f32 %v6481_v44, 0.0  ;;  %v6483_v47 = vpop.f32.mrb[45].mxu1 }
 0xc6d   :  { %v6491_v46 = vmul.f32 %v7607_v49, %v6485_v5 }
 0xc6f   :  { %v6497_v56 = vadd.f32 %v7608_v29, %v6491_v46 }
 0xc71   :  { %7674 = vmatmul.mubr.msk.f32.vlgmr.msra.gmra.mrb[46].mxu1 %vm2680_vm9, %v6497_v56 }
 0xc72   :  { %7680 = vmatprep.mubr.msk.f32.mxu1 %vm8862_vm13, %v8860_v60  ;;  %7743 = vmatpush3.bf16.msra.mxu1 %v7742_v51  ;;  %v7611_v60 = vld [vmem:[%s10880_s14 + $0x1] ss:$0 sm:$0xff]  ;;  %s8863_s14 = smov [#allocation15]  }
 0xc73   :  { %s6685_s15 = sshll.u32 %s8863_s14, 4  ;;  %s6686_s15 = int_to_ptr.vmem [resolvable:$true] %s6685_s15 }
 0xc74   :  { %s8822_s26 = scalar_lea.vmem %s6686_s15, 32  ;;  %p8827_p13 = scmp.lt.s32.totalorder %s6686_s15, %s6686_s15 }
 0xc75   :  { %p8823_p12 = scmp.ne.s32.totalorder %s6686_s15, %s8822_s26  ;;  %p8828_p0 = scmp.lt.s32.totalorder %s8822_s26, %s8822_s26 }
 0xc77   :  { %p8829_p1 = por %p8828_p0, %p8827_p13 }
 0xc79   :  { %p8830_p2 = pnand %p8829_p1, %p8823_p12 }
 0xd44   :  { %v6571_v53 = vpop.f32.mrb[46].mxu1 }
 0xd45   :  { %v6575_v55 = vmax.f32 %v6571_v53, 0.0  ;;  %v7675_v58 = vpop.f32.mrb[47].mxu1 }
 0xd47   :  { %v6581_v59 = vmul.f32 %v7610_v54, %v6575_v55 }
 0xd49   :  { %v6587_v26 = vadd.f32 %v7611_v60, %v6581_v59 }
 0xd4b   :  { %7681 = vmatmul.mubr.msk.f32.vlgmr.msra.gmra.mrb[48].mxu1 %vm6590_vm14, %v6587_v26 }
 0xe1e   :  { %v6660_v50 = vpop.f32.mrb[48].mxu1 }
 0xe1f   :  { %v7682_v63 = vpop.f32.mrb[49].mxu1  ;;  %v6665_v25 = vsel %vm6664_vm15, %v6660_v50, -inf }
 0xe20   :  { %6666 = vmax.xlane.f32.xlu0 %v6665_v25 }
 0xead   :  { %v6667_v45 = vpop.xlane.xlu0 %6666 }
 0xeae   :  { %v6668_v3 = vsub.f32 %v6660_v50, %v6667_v45 }
 0xeb0   :  { %v6669_v6 = vmul.f32 1.442695, %v6668_v3 }
 0xeb2   :  { %8708 = vpow2.f32 %v6669_v6 }
 0xebc   :  { %v8709_v35 = vpop.eup %8708 }
 0xebd   :  { %v6671_v9 = vsel %vm6664_vm15, %v8709_v35, 0.0 }
 0xebe   :  { %6672 = vadd.xlane.f32.xlu0 %v6671_v9 }
 0xf4b   :  { %v6673_v30 = vpop.xlane.xlu0 %6672 }
 0xf4c   :  { %8710 = vlog2.f32 %v6673_v30 }
 0xf56   :  { %v8711_v21 = vpop.eup %8710 }
 0xf57   :  { %v6675_v11 = vmul.f32 0.6931472, %v8711_v21 }
 0xf59   :  { %v6677_v13 = vsub.f32 %v6668_v3, %v6675_v11 }
 0xf5b   :  { %6678 = vst.msk [vmem:[#allocation15] sm:$0x3] %vm6664_vm15, %v6677_v13 }
 0xf5c   :  { %8833 = shalt.err (!%p8830_p2)
}
 0xf5d   :  { %s8834_s9 = scalar_lea.hbm %s10882_s16, 32 }
 0xf5e   :  { %p8835_p3 = scmp.ne.s32.totalorder %s10882_s16, %s8834_s9  ;;  %p8838_p4 = scmp.lt.u32.totalorder %s8834_s9, %s10882_s16 }
 0xf60   :  { %p8840_p5 = pnand %p8838_p4, %p8835_p3 }
 0xf62   :  { %8843 = shalt.err (!%p8840_p5)
}
 0xf63   :  { %6688 = dma.vmem_to_hbm [thread:$0]  %s6686_s15, 32, %s10882_s16, [#allocation8]  }
 0xf64   :  { %8850 = dma.done.wait [#allocation8], 32  }
 0xf65   :  { %8851 = vsyncadd [#allocation8], 4294967264 }
 0xf66   :  { %6692 = vsyncpa [#allocation7], 1 }
 0xf67   :  { %6693 = vsyncpa [#allocation10], 1 }
 0xf68   :  { %6694 = vsyncpa [#allocation13], 1 }
 0xf69   :  { %6695 = vsyncpa [#allocation8], 1 }

</bundles_post_ra>
